<compile_context>
chip_gen: v6e
topology: v6e:2x2x1
jax: 0.10.0
libtpu: 0.0.40
codegen_flags: <defaults>
</compile_context>

<pallas_src>
import functools
import math

import jax
import jax.numpy as jnp
from jax.experimental import pallas as pl
from jax.experimental.pallas import tpu as pltpu

BN_EPS = 1e-5

# Rational activation, version "A", degrees (5, 4):
#   R(x) = (a0 + a1 x + ... + a5 x^5) / (1 + |b0||x| + |b1||x|^2 + |b2||x|^3 + |b3||x|^4)
# Deterministic init approximating LeakyReLU(0.01) (library default shape),
# baked in as static Python floats (denominator coefficients already as |b_i|).
RAT_NUM = (0.02979246, 0.61837738, 2.32335207, 3.05202660, 1.48548002, 0.25103717)
RAT_DEN_ABS = (1.14132462, 2.38160759, 0.38976192, 0.33267534)


def _rational(y):
  """Pade [5/4] 'version A' rational activation on an f32 tile."""
  a0, a1, a2, a3, a4, a5 = RAT_NUM
  d0, d1, d2, d3 = RAT_DEN_ABS
  p = a0 + y * (a1 + y * (a2 + y * (a3 + y * (a4 + y * a5))))
  ax = jnp.abs(y)
  q = 1.0 + ax * (d0 + ax * (d1 + ax * (d2 + ax * d3)))
  # q >= 1 by construction; approximate reciprocal goes to the EUP slot.
  return p * pl.reciprocal(q, approx=True)


# ----------------------------------------------------------------------------
# Pallas kernels
# ----------------------------------------------------------------------------
def _conv_kernel(w_ref, b_ref, p_ref, o_ref):
  """out = rational(W @ P + bias)  on a (Cout, tm) lane-dense tile."""
  acc = jnp.dot(w_ref[...], p_ref[...], preferred_element_type=jnp.float32)
  o_ref[...] = _rational(acc + b_ref[...]).astype(o_ref.dtype)


def _conv_res_kernel(w_ref, b_ref, p_ref, r_ref, o_ref):
  """out = rational(W @ P + bias + residual)."""
  acc = jnp.dot(w_ref[...], p_ref[...], preferred_element_type=jnp.float32)
  y = acc + b_ref[...] + r_ref[...].astype(jnp.float32)
  o_ref[...] = _rational(y).astype(o_ref.dtype)


def _conv_ds_kernel(w_ref, b_ref, p_ref, o_ref, s_ref, *, cout):
  """Downsample-block head: one wide MXU pass computes both
     conv1(3x3)+BN1+rational (rows [:cout]) and 1x1 shortcut+BN_sc (rows [cout:])."""
  acc = jnp.dot(w_ref[...], p_ref[...], preferred_element_type=jnp.float32)
  y = acc + b_ref[...]
  o_ref[...] = _rational(y[:cout]).astype(o_ref.dtype)
  s_ref[...] = y[cout:].astype(s_ref.dtype)


# ----------------------------------------------------------------------------
# pallas_call wrappers
# ----------------------------------------------------------------------------
_PARAMS = pltpu.CompilerParams(dimension_semantics=("parallel",))


def _choose_tile(m):
  m128 = -(-m // 128) * 128
  for tm in (512, 256, 128):
    if m128 % tm == 0:
      return tm, m128
  return 128, m128


def _pad_m(x, m_pad):
  m = x.shape[-1]
  return x if m == m_pad else jnp.pad(x, ((0, 0), (0, m_pad - m)))


def conv_bn_rat(p, w, b):
  K, M = p.shape
  cout = w.shape[0]
  tm, m_pad = _choose_tile(M)
  out = pl.pallas_call(
      _conv_kernel,
      out_shape=jax.ShapeDtypeStruct((cout, m_pad), jnp.bfloat16),
      grid=(m_pad // tm,),
      in_specs=[
          pl.BlockSpec((cout, K), lambda i: (0, 0)),   # folded weights (resident)
          pl.BlockSpec((cout, 1), lambda i: (0, 0)),   # BN bias (resident)
          pl.BlockSpec((K, tm), lambda i: (0, i)),     # patches tile (bf16)
      ],
      out_specs=pl.BlockSpec((cout, tm), lambda i: (0, i)),
      compiler_params=_PARAMS,
  )(w, b, _pad_m(p, m_pad))
  return out[:, :M] if m_pad != M else out


def conv_bn_res_rat(p, w, b, residual):
  K, M = p.shape
  cout = w.shape[0]
  tm, m_pad = _choose_tile(M)
  out = pl.pallas_call(
      _conv_res_kernel,
      out_shape=jax.ShapeDtypeStruct((cout, m_pad), jnp.bfloat16),
      grid=(m_pad // tm,),
      in_specs=[
          pl.BlockSpec((cout, K), lambda i: (0, 0)),
          pl.BlockSpec((cout, 1), lambda i: (0, 0)),
          pl.BlockSpec((K, tm), lambda i: (0, i)),
          pl.BlockSpec((cout, tm), lambda i: (0, i)),  # residual tile (bf16)
      ],
      out_specs=pl.BlockSpec((cout, tm), lambda i: (0, i)),
      compiler_params=_PARAMS,
  )(w, b, _pad_m(p, m_pad), _pad_m(residual, m_pad))
  return out[:, :M] if m_pad != M else out


def conv_ds_fused(p, w_comb, b_comb, cout):
  K, M = p.shape
  tm, m_pad = _choose_tile(M)
  out, sc = pl.pallas_call(
      functools.partial(_conv_ds_kernel, cout=cout),
      out_shape=(jax.ShapeDtypeStruct((cout, m_pad), jnp.bfloat16),
                 jax.ShapeDtypeStruct((cout, m_pad), jnp.bfloat16)),
      grid=(m_pad // tm,),
      in_specs=[
          pl.BlockSpec((2 * cout, K), lambda i: (0, 0)),
          pl.BlockSpec((2 * cout, 1), lambda i: (0, 0)),
          pl.BlockSpec((K, tm), lambda i: (0, i)),
      ],
      out_specs=(pl.BlockSpec((cout, tm), lambda i: (0, i)),
                 pl.BlockSpec((cout, tm), lambda i: (0, i))),
      compiler_params=_PARAMS,
  )(w_comb, b_comb, _pad_m(p, m_pad))
  if m_pad != M:
    out, sc = out[:, :M], sc[:, :M]
  return out, sc


# ----------------------------------------------------------------------------
# Glue: im2col (K-major, channel-first), parameter init, model assembly
# ----------------------------------------------------------------------------
def conv_patches(x, ksize, stride, padding):
  """im2col in (K, M) layout from a channel-first (C, N, H, W) activation.

  K = k*k*C with tap-major ordering (dy, dx, ci); M = N*Hout*Wout.
  # TODO(synk): perf review suggests accumulating the 9 taps inside the kernel to
  # avoid this 9x-duplicated HBM buffer; the stride-2 downsample convs need
  # element-granular strided halo windows that BlockSpec can't express cleanly,
  # so that rewrite is left for a follow-up (traffic is halved here via bf16).
  """
  C, N, H, W = x.shape
  Ho = (H + 2 * padding - ksize) // stride + 1
  Wo = (W + 2 * padding - ksize) // stride + 1
  xp = jnp.pad(x, ((0, 0), (0, 0), (padding, padding), (padding, padding)))
  taps = []
  for dy in range(ksize):
    for dx in range(ksize):
      taps.append(xp[:, :, dy:dy + stride * (Ho - 1) + 1:stride,
                     dx:dx + stride * (Wo - 1) + 1:stride])
  pat = jnp.concatenate(taps, axis=0)            # (k*k*C, N, Ho, Wo)
  return pat.reshape(ksize * ksize * C, N * Ho * Wo), (N, Ho, Wo)


def _init_conv(key, cout, cin, k):
  # kaiming_normal_, mode='fan_out', nonlinearity='relu'
  fan_out = cout * k * k
  std = math.sqrt(2.0 / fan_out)
  return jax.random.normal(key, (cout, cin, k, k), jnp.float32) * std


def _bn_fold(c):
  # BatchNorm2d eval-mode fold: weight=1, bias=0, running_mean=0, running_var=1.
  gamma = jnp.ones((c,), jnp.float32)
  beta = jnp.zeros((c,), jnp.float32)
  mean = jnp.zeros((c,), jnp.float32)
  var = jnp.ones((c,), jnp.float32)
  scale = gamma / jnp.sqrt(var + BN_EPS)           # folded into the conv weights
  bias = (beta - mean * scale)[:, None]            # (c, 1) f32, added in-kernel
  return scale, bias


def _fold_w(w, scale, dtype=jnp.bfloat16):
  # (cout, cin, k, k) * scale[cout] -> (cout, k*k*cin), tap-major K order.
  cout = w.shape[0]
  wf = w * scale[:, None, None, None]
  return jnp.transpose(wf, (0, 2, 3, 1)).reshape(cout, -1).astype(dtype)


def build_params(key, layers=(1, 1, 1), num_classes=10):
  params = {}
  keys = iter(jax.random.split(key, 64))

  s1, b1 = _bn_fold(16)
  params["conv1_w"] = _fold_w(_init_conv(next(keys), 16, 3, 3), s1)
  params["conv1_b"] = b1

  planes_in = 16
  blocks = []
  planes_out_list = [16, 32, 64][:len(layers)]
  for li, (planes_out, nb) in enumerate(zip(planes_out_list, layers)):
    layer_stride = 1 if li == 0 else 2
    for bi in range(nb):
      stride = layer_stride if bi == 0 else 1
      downsample = (bi == 0) and (stride != 1 or planes_out != planes_in)
      w1 = _init_conv(next(keys), planes_out, planes_in, 3)
      sc1, bb1 = _bn_fold(planes_out)
      w2 = _init_conv(next(keys), planes_out, planes_out, 3)
      sc2, bb2 = _bn_fold(planes_out)
      bp = {"stride": stride, "downsample": downsample, "cout": planes_out,
            "w2": _fold_w(w2, sc2), "b2": bb2}
      if downsample:
        wsc = _init_conv(next(keys), planes_out, planes_in, 1)
        scs, bbs = _bn_fold(planes_out)
        w1_mat = _fold_w(w1, sc1, dtype=jnp.float32)          # (cout, 9*cin)
        wsc_mat = wsc[:, :, 0, 0] * scs[:, None]              # (cout, cin)
        # 1x1 shortcut columns live at the centre tap (dy=dx=1) of the 3x3 im2col.
        wsc_emb = jnp.zeros((planes_out, 9 * planes_in), jnp.float32)
        wsc_emb = wsc_emb.at[:, 4 * planes_in:5 * planes_in].set(wsc_mat)
        bp["w1sc"] = jnp.concatenate([w1_mat, wsc_emb], 0).astype(jnp.bfloat16)
        bp["b1sc"] = jnp.concatenate([bb1, bbs], 0)           # (2*cout, 1)
      else:
        bp["w1"] = _fold_w(w1, sc1)
        bp["b1"] = bb1
      blocks.append(bp)
      planes_in = planes_out
  params["blocks"] = blocks

  out_size = planes_out_list[-1]
  bound = 1.0 / math.sqrt(out_size)
  params["fc_w"] = jax.random.uniform(next(keys), (out_size, num_classes),
                                      jnp.float32, -bound, bound)
  params["fc_b"] = jax.random.uniform(next(keys), (num_classes,),
                                      jnp.float32, -bound, bound)
  return params


def basic_block(x, bp):
  """x: (Cin, N, H, W) bf16 -> (Cout, N, Ho, Wo) bf16."""
  cout = bp["cout"]
  p1, (n, ho, wo) = conv_patches(x, 3, bp["stride"], 1)
  if bp["downsample"]:
    # conv1(3x3)+BN1+rational and 1x1 shortcut+BN_sc in one fused MXU pass.
    out1, sc = conv_ds_fused(p1, bp["w1sc"], bp["b1sc"], cout)
  else:
    out1 = conv_bn_rat(p1, bp["w1"], bp["b1"])
    sc = x.reshape(cout, n * ho * wo)              # identity shortcut (Cin == Cout)
  p2, _ = conv_patches(out1.reshape(cout, n, ho, wo), 3, 1, 1)
  out2 = conv_bn_res_rat(p2, bp["w2"], bp["b2"], sc)
  return out2.reshape(cout, n, ho, wo)


def rational_resnet_forward(x_nchw, params):
  # NCHW (PyTorch convention) -> channel-first (C, N, H, W) bf16 internal layout.
  x = jnp.transpose(x_nchw, (1, 0, 2, 3)).astype(jnp.bfloat16)
  p, (n, h, w) = conv_patches(x, 3, 1, 1)
  out = conv_bn_rat(p, params["conv1_w"], params["conv1_b"])
  out = out.reshape(-1, n, h, w)
  for bp in params["blocks"]:
    out = basic_block(out, bp)
  # TODO(synk): LTH mask application is a no-op here (mask=None path of the module).
  # AdaptiveAvgPool2d((1,1)) + flatten + Linear in plain JAX: per perf review, a
  # (N,64)x(64,10) matmul as a separate pallas_call is pure launch overhead.
  pooled = jnp.mean(out.astype(jnp.float32), axis=(2, 3))        # (C, N)
  return pooled.T @ params["fc_w"] + params["fc_b"]              # (N, num_classes)


if __name__ == "__main__":
  key = jax.random.PRNGKey(0)
  kx, kp = jax.random.split(key)
  x = jax.random.normal(kx, (2, 3, 16, 16), jnp.float32)   # NCHW, like PyTorch
  params = build_params(kp, layers=(1, 1, 1), num_classes=10)

  fwd = jax.jit(lambda inp: rational_resnet_forward(inp, params))
  out = fwd(x)
  jax.block_until_ready(out)
  assert out.shape == (2, 10) and out.dtype == jnp.float32
  print("KERNEL_OK")
</pallas_src>

<mosaic_0001>
module attributes {stable_mosaic.version = 11 : i64} {
  func.func @_conv_kernel(%arg0: i32, %arg1: memref<16x27xbf16, #tpu.memory_space<vmem>>, %arg2: memref<16x1xf32, #tpu.memory_space<vmem>>, %arg3: memref<27x512xbf16, #tpu.memory_space<vmem>>, %arg4: memref<16x512xbf16, #tpu.memory_space<vmem>>) attributes {dimension_semantics = [#tpu.dimension_semantics<parallel>], iteration_bounds = array<i64: 1>, scalar_prefetch = 0 : i64, scratch_operands = 0 : i64, tpu.core_type = #tpu.core_type<tc>, window_params = [{pipeline_mode = #tpu.pipeline_mode<synchronous>, transform_indices = @transform_0, window_bounds = array<i64: 16, 27>}, {pipeline_mode = #tpu.pipeline_mode<synchronous>, transform_indices = @transform_1, window_bounds = array<i64: 16, 1>}, {transform_indices = @transform_2, window_bounds = array<i64: 27, 512>}, {transform_indices = @transform_3, window_bounds = array<i64: 16, 512>}]} {
    %c0 = arith.constant 0 : index
    %c0_0 = arith.constant 0 : index
    %0 = vector.load %arg1[%c0, %c0_0] : memref<16x27xbf16, #tpu.memory_space<vmem>>, vector<16x27xbf16>
    %c0_1 = arith.constant 0 : index
    %c0_2 = arith.constant 0 : index
    %1 = vector.load %arg3[%c0_1, %c0_2] : memref<27x512xbf16, #tpu.memory_space<vmem>>, vector<27x512xbf16>
    %cst = arith.constant dense<0.000000e+00> : vector<16x512xf32>
    %2 = tpu.matmul %0, %1, %cst {dimension_numbers = #tpu.dot_dimension_numbers<[1], [0], [0], [1], [0, 0, 1, 1], [], []>} : vector<16x27xbf16>, vector<27x512xbf16>, vector<16x512xf32> -> vector<16x512xf32>
    %c0_3 = arith.constant 0 : index
    %c0_4 = arith.constant 0 : index
    %3 = vector.load %arg2[%c0_3, %c0_4] : memref<16x1xf32, #tpu.memory_space<vmem>>, vector<16x1xf32>
    %4 = vector.broadcast %3 : vector<16x1xf32> to vector<16x512xf32>
    %5 = arith.addf %2, %4 : vector<16x512xf32>
    %cst_5 = arith.constant 0.25103718 : f32
    %6 = vector.broadcast %cst_5 : f32 to vector<16x512xf32>
    %7 = arith.mulf %5, %6 : vector<16x512xf32>
    %cst_6 = arith.constant 1.48548007 : f32
    %8 = vector.broadcast %cst_6 : f32 to vector<16x512xf32>
    %9 = arith.addf %8, %7 : vector<16x512xf32>
    %10 = arith.mulf %5, %9 : vector<16x512xf32>
    %cst_7 = arith.constant 3.05202651 : f32
    %11 = vector.broadcast %cst_7 : f32 to vector<16x512xf32>
    %12 = arith.addf %11, %10 : vector<16x512xf32>
    %13 = arith.mulf %5, %12 : vector<16x512xf32>
    %cst_8 = arith.constant 2.3233521 : f32
    %14 = vector.broadcast %cst_8 : f32 to vector<16x512xf32>
    %15 = arith.addf %14, %13 : vector<16x512xf32>
    %16 = arith.mulf %5, %15 : vector<16x512xf32>
    %cst_9 = arith.constant 0.618377387 : f32
    %17 = vector.broadcast %cst_9 : f32 to vector<16x512xf32>
    %18 = arith.addf %17, %16 : vector<16x512xf32>
    %19 = arith.mulf %5, %18 : vector<16x512xf32>
    %cst_10 = arith.constant 0.0297924597 : f32
    %20 = vector.broadcast %cst_10 : f32 to vector<16x512xf32>
    %21 = arith.addf %20, %19 : vector<16x512xf32>
    %22 = math.absf %5 : vector<16x512xf32>
    %cst_11 = arith.constant 0.332675338 : f32
    %23 = vector.broadcast %cst_11 : f32 to vector<16x512xf32>
    %24 = arith.mulf %22, %23 : vector<16x512xf32>
    %cst_12 = arith.constant 0.389761925 : f32
    %25 = vector.broadcast %cst_12 : f32 to vector<16x512xf32>
    %26 = arith.addf %25, %24 : vector<16x512xf32>
    %27 = arith.mulf %22, %26 : vector<16x512xf32>
    %cst_13 = arith.constant 2.38160753 : f32
    %28 = vector.broadcast %cst_13 : f32 to vector<16x512xf32>
    %29 = arith.addf %28, %27 : vector<16x512xf32>
    %30 = arith.mulf %22, %29 : vector<16x512xf32>
    %cst_14 = arith.constant 1.14132464 : f32
    %31 = vector.broadcast %cst_14 : f32 to vector<16x512xf32>
    %32 = arith.addf %31, %30 : vector<16x512xf32>
    %33 = arith.mulf %22, %32 : vector<16x512xf32>
    %cst_15 = arith.constant 1.000000e+00 : f32
    %34 = vector.broadcast %cst_15 : f32 to vector<16x512xf32>
    %35 = arith.addf %34, %33 : vector<16x512xf32>
    %36 = tpu.reciprocal %35 {approx = true} : vector<16x512xf32> -> vector<16x512xf32>
    %37 = arith.mulf %21, %36 : vector<16x512xf32>
    %38 = arith.truncf %37 : vector<16x512xf32> to vector<16x512xbf16>
    %c0_16 = arith.constant 0 : index
    %c0_17 = arith.constant 0 : index
    %39 = vector.load %arg4[%c0_16, %c0_17] : memref<16x512xbf16, #tpu.memory_space<vmem>>, vector<16x512xbf16>
    tpu.vector_store %arg4[%c0_16, %c0_17], %38 {strides = array<i32>} : memref<16x512xbf16, #tpu.memory_space<vmem>>, vector<16x512xbf16>,
    return
  }
  func.func @transform_0(%arg0: i32) -> (i32, i32) {
    %c0_i32 = arith.constant 0 : i32
    %c0_i32_0 = arith.constant 0 : i32
    %c0_i32_1 = arith.constant 0 : i32
    return %c0_i32, %c0_i32_0 : i32, i32
  }
  func.func @transform_1(%arg0: i32) -> (i32, i32) {
    %c0_i32 = arith.constant 0 : i32
    %c0_i32_0 = arith.constant 0 : i32
    %c0_i32_1 = arith.constant 0 : i32
    return %c0_i32, %c0_i32_0 : i32, i32
  }
  func.func @transform_2(%arg0: i32) -> (i32, i32) {
    %c0_i32 = arith.constant 0 : i32
    %c0_i32_0 = arith.constant 0 : i32
    return %c0_i32, %arg0 : i32, i32
  }
  func.func @transform_3(%arg0: i32) -> (i32, i32) {
    %c0_i32 = arith.constant 0 : i32
    %c0_i32_0 = arith.constant 0 : i32
    return %c0_i32, %arg0 : i32, i32
  }
}

module attributes {stable_mosaic.version = 11 : i64} {
  func.func @_conv_kernel(%arg0: i32, %arg1: memref<16x144xbf16, #tpu.memory_space<vmem>>, %arg2: memref<16x1xf32, #tpu.memory_space<vmem>>, %arg3: memref<144x512xbf16, #tpu.memory_space<vmem>>, %arg4: memref<16x512xbf16, #tpu.memory_space<vmem>>) attributes {dimension_semantics = [#tpu.dimension_semantics<parallel>], iteration_bounds = array<i64: 1>, scalar_prefetch = 0 : i64, scratch_operands = 0 : i64, tpu.core_type = #tpu.core_type<tc>, window_params = [{pipeline_mode = #tpu.pipeline_mode<synchronous>, transform_indices = @transform_0, window_bounds = array<i64: 16, 144>}, {pipeline_mode = #tpu.pipeline_mode<synchronous>, transform_indices = @transform_1, window_bounds = array<i64: 16, 1>}, {transform_indices = @transform_2, window_bounds = array<i64: 144, 512>}, {transform_indices = @transform_3, window_bounds = array<i64: 16, 512>}]} {
    %c0 = arith.constant 0 : index
    %c0_0 = arith.constant 0 : index
    %0 = vector.load %arg1[%c0, %c0_0] : memref<16x144xbf16, #tpu.memory_space<vmem>>, vector<16x144xbf16>
    %c0_1 = arith.constant 0 : index
    %c0_2 = arith.constant 0 : index
    %1 = vector.load %arg3[%c0_1, %c0_2] : memref<144x512xbf16, #tpu.memory_space<vmem>>, vector<144x512xbf16>
    %cst = arith.constant dense<0.000000e+00> : vector<16x512xf32>
    %2 = tpu.matmul %0, %1, %cst {dimension_numbers = #tpu.dot_dimension_numbers<[1], [0], [0], [1], [0, 0, 1, 1], [], []>} : vector<16x144xbf16>, vector<144x512xbf16>, vector<16x512xf32> -> vector<16x512xf32>
    %c0_3 = arith.constant 0 : index
    %c0_4 = arith.constant 0 : index
    %3 = vector.load %arg2[%c0_3, %c0_4] : memref<16x1xf32, #tpu.memory_space<vmem>>, vector<16x1xf32>
    %4 = vector.broadcast %3 : vector<16x1xf32> to vector<16x512xf32>
    %5 = arith.addf %2, %4 : vector<16x512xf32>
    %cst_5 = arith.constant 0.25103718 : f32
    %6 = vector.broadcast %cst_5 : f32 to vector<16x512xf32>
    %7 = arith.mulf %5, %6 : vector<16x512xf32>
    %cst_6 = arith.constant 1.48548007 : f32
    %8 = vector.broadcast %cst_6 : f32 to vector<16x512xf32>
    %9 = arith.addf %8, %7 : vector<16x512xf32>
    %10 = arith.mulf %5, %9 : vector<16x512xf32>
    %cst_7 = arith.constant 3.05202651 : f32
    %11 = vector.broadcast %cst_7 : f32 to vector<16x512xf32>
    %12 = arith.addf %11, %10 : vector<16x512xf32>
    %13 = arith.mulf %5, %12 : vector<16x512xf32>
    %cst_8 = arith.constant 2.3233521 : f32
    %14 = vector.broadcast %cst_8 : f32 to vector<16x512xf32>
    %15 = arith.addf %14, %13 : vector<16x512xf32>
    %16 = arith.mulf %5, %15 : vector<16x512xf32>
    %cst_9 = arith.constant 0.618377387 : f32
    %17 = vector.broadcast %cst_9 : f32 to vector<16x512xf32>
    %18 = arith.addf %17, %16 : vector<16x512xf32>
    %19 = arith.mulf %5, %18 : vector<16x512xf32>
    %cst_10 = arith.constant 0.0297924597 : f32
    %20 = vector.broadcast %cst_10 : f32 to vector<16x512xf32>
    %21 = arith.addf %20, %19 : vector<16x512xf32>
    %22 = math.absf %5 : vector<16x512xf32>
    %cst_11 = arith.constant 0.332675338 : f32
    %23 = vector.broadcast %cst_11 : f32 to vector<16x512xf32>
    %24 = arith.mulf %22, %23 : vector<16x512xf32>
    %cst_12 = arith.constant 0.389761925 : f32
    %25 = vector.broadcast %cst_12 : f32 to vector<16x512xf32>
    %26 = arith.addf %25, %24 : vector<16x512xf32>
    %27 = arith.mulf %22, %26 : vector<16x512xf32>
    %cst_13 = arith.constant 2.38160753 : f32
    %28 = vector.broadcast %cst_13 : f32 to vector<16x512xf32>
    %29 = arith.addf %28, %27 : vector<16x512xf32>
    %30 = arith.mulf %22, %29 : vector<16x512xf32>
    %cst_14 = arith.constant 1.14132464 : f32
    %31 = vector.broadcast %cst_14 : f32 to vector<16x512xf32>
    %32 = arith.addf %31, %30 : vector<16x512xf32>
    %33 = arith.mulf %22, %32 : vector<16x512xf32>
    %cst_15 = arith.constant 1.000000e+00 : f32
    %34 = vector.broadcast %cst_15 : f32 to vector<16x512xf32>
    %35 = arith.addf %34, %33 : vector<16x512xf32>
    %36 = tpu.reciprocal %35 {approx = true} : vector<16x512xf32> -> vector<16x512xf32>
    %37 = arith.mulf %21, %36 : vector<16x512xf32>
    %38 = arith.truncf %37 : vector<16x512xf32> to vector<16x512xbf16>
    %c0_16 = arith.constant 0 : index
    %c0_17 = arith.constant 0 : index
    %39 = vector.load %arg4[%c0_16, %c0_17] : memref<16x512xbf16, #tpu.memory_space<vmem>>, vector<16x512xbf16>
    tpu.vector_store %arg4[%c0_16, %c0_17], %38 {strides = array<i32>} : memref<16x512xbf16, #tpu.memory_space<vmem>>, vector<16x512xbf16>,
    return
  }
  func.func @transform_0(%arg0: i32) -> (i32, i32) {
    %c0_i32 = arith.constant 0 : i32
    %c0_i32_0 = arith.constant 0 : i32
    %c0_i32_1 = arith.constant 0 : i32
    return %c0_i32, %c0_i32_0 : i32, i32
  }
  func.func @transform_1(%arg0: i32) -> (i32, i32) {
    %c0_i32 = arith.constant 0 : i32
    %c0_i32_0 = arith.constant 0 : i32
    %c0_i32_1 = arith.constant 0 : i32
    return %c0_i32, %c0_i32_0 : i32, i32
  }
  func.func @transform_2(%arg0: i32) -> (i32, i32) {
    %c0_i32 = arith.constant 0 : i32
    %c0_i32_0 = arith.constant 0 : i32
    return %c0_i32, %arg0 : i32, i32
  }
  func.func @transform_3(%arg0: i32) -> (i32, i32) {
    %c0_i32 = arith.constant 0 : i32
    %c0_i32_0 = arith.constant 0 : i32
    return %c0_i32, %arg0 : i32, i32
  }
}

module attributes {stable_mosaic.version = 11 : i64} {
  func.func @_conv_res_kernel(%arg0: i32, %arg1: memref<16x144xbf16, #tpu.memory_space<vmem>>, %arg2: memref<16x1xf32, #tpu.memory_space<vmem>>, %arg3: memref<144x512xbf16, #tpu.memory_space<vmem>>, %arg4: memref<16x512xbf16, #tpu.memory_space<vmem>>, %arg5: memref<16x512xbf16, #tpu.memory_space<vmem>>) attributes {dimension_semantics = [#tpu.dimension_semantics<parallel>], iteration_bounds = array<i64: 1>, scalar_prefetch = 0 : i64, scratch_operands = 0 : i64, tpu.core_type = #tpu.core_type<tc>, window_params = [{pipeline_mode = #tpu.pipeline_mode<synchronous>, transform_indices = @transform_0, window_bounds = array<i64: 16, 144>}, {pipeline_mode = #tpu.pipeline_mode<synchronous>, transform_indices = @transform_1, window_bounds = array<i64: 16, 1>}, {transform_indices = @transform_2, window_bounds = array<i64: 144, 512>}, {transform_indices = @transform_3, window_bounds = array<i64: 16, 512>}, {transform_indices = @transform_4, window_bounds = array<i64: 16, 512>}]} {
    %c0 = arith.constant 0 : index
    %c0_0 = arith.constant 0 : index
    %0 = vector.load %arg1[%c0, %c0_0] : memref<16x144xbf16, #tpu.memory_space<vmem>>, vector<16x144xbf16>
    %c0_1 = arith.constant 0 : index
    %c0_2 = arith.constant 0 : index
    %1 = vector.load %arg3[%c0_1, %c0_2] : memref<144x512xbf16, #tpu.memory_space<vmem>>, vector<144x512xbf16>
    %cst = arith.constant dense<0.000000e+00> : vector<16x512xf32>
    %2 = tpu.matmul %0, %1, %cst {dimension_numbers = #tpu.dot_dimension_numbers<[1], [0], [0], [1], [0, 0, 1, 1], [], []>} : vector<16x144xbf16>, vector<144x512xbf16>, vector<16x512xf32> -> vector<16x512xf32>
    %c0_3 = arith.constant 0 : index
    %c0_4 = arith.constant 0 : index
    %3 = vector.load %arg2[%c0_3, %c0_4] : memref<16x1xf32, #tpu.memory_space<vmem>>, vector<16x1xf32>
    %4 = vector.broadcast %3 : vector<16x1xf32> to vector<16x512xf32>
    %5 = arith.addf %2, %4 : vector<16x512xf32>
    %c0_5 = arith.constant 0 : index
    %c0_6 = arith.constant 0 : index
    %6 = vector.load %arg4[%c0_5, %c0_6] : memref<16x512xbf16, #tpu.memory_space<vmem>>, vector<16x512xbf16>
    %7 = arith.extf %6 : vector<16x512xbf16> to vector<16x512xf32>
    %8 = arith.addf %5, %7 : vector<16x512xf32>
    %cst_7 = arith.constant 0.25103718 : f32
    %9 = vector.broadcast %cst_7 : f32 to vector<16x512xf32>
    %10 = arith.mulf %8, %9 : vector<16x512xf32>
    %cst_8 = arith.constant 1.48548007 : f32
    %11 = vector.broadcast %cst_8 : f32 to vector<16x512xf32>
    %12 = arith.addf %11, %10 : vector<16x512xf32>
    %13 = arith.mulf %8, %12 : vector<16x512xf32>
    %cst_9 = arith.constant 3.05202651 : f32
    %14 = vector.broadcast %cst_9 : f32 to vector<16x512xf32>
    %15 = arith.addf %14, %13 : vector<16x512xf32>
    %16 = arith.mulf %8, %15 : vector<16x512xf32>
    %cst_10 = arith.constant 2.3233521 : f32
    %17 = vector.broadcast %cst_10 : f32 to vector<16x512xf32>
    %18 = arith.addf %17, %16 : vector<16x512xf32>
    %19 = arith.mulf %8, %18 : vector<16x512xf32>
    %cst_11 = arith.constant 0.618377387 : f32
    %20 = vector.broadcast %cst_11 : f32 to vector<16x512xf32>
    %21 = arith.addf %20, %19 : vector<16x512xf32>
    %22 = arith.mulf %8, %21 : vector<16x512xf32>
    %cst_12 = arith.constant 0.0297924597 : f32
    %23 = vector.broadcast %cst_12 : f32 to vector<16x512xf32>
    %24 = arith.addf %23, %22 : vector<16x512xf32>
    %25 = math.absf %8 : vector<16x512xf32>
    %cst_13 = arith.constant 0.332675338 : f32
    %26 = vector.broadcast %cst_13 : f32 to vector<16x512xf32>
    %27 = arith.mulf %25, %26 : vector<16x512xf32>
    %cst_14 = arith.constant 0.389761925 : f32
    %28 = vector.broadcast %cst_14 : f32 to vector<16x512xf32>
    %29 = arith.addf %28, %27 : vector<16x512xf32>
    %30 = arith.mulf %25, %29 : vector<16x512xf32>
    %cst_15 = arith.constant 2.38160753 : f32
    %31 = vector.broadcast %cst_15 : f32 to vector<16x512xf32>
    %32 = arith.addf %31, %30 : vector<16x512xf32>
    %33 = arith.mulf %25, %32 : vector<16x512xf32>
    %cst_16 = arith.constant 1.14132464 : f32
    %34 = vector.broadcast %cst_16 : f32 to vector<16x512xf32>
    %35 = arith.addf %34, %33 : vector<16x512xf32>
    %36 = arith.mulf %25, %35 : vector<16x512xf32>
    %cst_17 = arith.constant 1.000000e+00 : f32
    %37 = vector.broadcast %cst_17 : f32 to vector<16x512xf32>
    %38 = arith.addf %37, %36 : vector<16x512xf32>
    %39 = tpu.reciprocal %38 {approx = true} : vector<16x512xf32> -> vector<16x512xf32>
    %40 = arith.mulf %24, %39 : vector<16x512xf32>
    %41 = arith.truncf %40 : vector<16x512xf32> to vector<16x512xbf16>
    %c0_18 = arith.constant 0 : index
    %c0_19 = arith.constant 0 : index
    %42 = vector.load %arg5[%c0_18, %c0_19] : memref<16x512xbf16, #tpu.memory_space<vmem>>, vector<16x512xbf16>
    tpu.vector_store %arg5[%c0_18, %c0_19], %41 {strides = array<i32>} : memref<16x512xbf16, #tpu.memory_space<vmem>>, vector<16x512xbf16>,
    return
  }
  func.func @transform_0(%arg0: i32) -> (i32, i32) {
    %c0_i32 = arith.constant 0 : i32
    %c0_i32_0 = arith.constant 0 : i32
    %c0_i32_1 = arith.constant 0 : i32
    return %c0_i32, %c0_i32_0 : i32, i32
  }
  func.func @transform_1(%arg0: i32) -> (i32, i32) {
    %c0_i32 = arith.constant 0 : i32
    %c0_i32_0 = arith.constant 0 : i32
    %c0_i32_1 = arith.constant 0 : i32
    return %c0_i32, %c0_i32_0 : i32, i32
  }
  func.func @transform_2(%arg0: i32) -> (i32, i32) {
    %c0_i32 = arith.constant 0 : i32
    %c0_i32_0 = arith.constant 0 : i32
    return %c0_i32, %arg0 : i32, i32
  }
  func.func @transform_3(%arg0: i32) -> (i32, i32) {
    %c0_i32 = arith.constant 0 : i32
    %c0_i32_0 = arith.constant 0 : i32
    return %c0_i32, %arg0 : i32, i32
  }
  func.func @transform_4(%arg0: i32) -> (i32, i32) {
    %c0_i32 = arith.constant 0 : i32
    %c0_i32_0 = arith.constant 0 : i32
    return %c0_i32, %arg0 : i32, i32
  }
}

module attributes {stable_mosaic.version = 11 : i64} {
  func.func @_conv_ds_kernel(%arg0: i32, %arg1: memref<64x144xbf16, #tpu.memory_space<vmem>>, %arg2: memref<64x1xf32, #tpu.memory_space<vmem>>, %arg3: memref<144x128xbf16, #tpu.memory_space<vmem>>, %arg4: memref<32x128xbf16, #tpu.memory_space<vmem>>, %arg5: memref<32x128xbf16, #tpu.memory_space<vmem>>) attributes {dimension_semantics = [#tpu.dimension_semantics<parallel>], iteration_bounds = array<i64: 1>, scalar_prefetch = 0 : i64, scratch_operands = 0 : i64, tpu.core_type = #tpu.core_type<tc>, window_params = [{pipeline_mode = #tpu.pipeline_mode<synchronous>, transform_indices = @transform_0, window_bounds = array<i64: 64, 144>}, {pipeline_mode = #tpu.pipeline_mode<synchronous>, transform_indices = @transform_1, window_bounds = array<i64: 64, 1>}, {transform_indices = @transform_2, window_bounds = array<i64: 144, 128>}, {transform_indices = @transform_3, window_bounds = array<i64: 32, 128>}, {transform_indices = @transform_4, window_bounds = array<i64: 32, 128>}]} {
    %c0 = arith.constant 0 : index
    %c0_0 = arith.constant 0 : index
    %0 = vector.load %arg1[%c0, %c0_0] : memref<64x144xbf16, #tpu.memory_space<vmem>>, vector<64x144xbf16>
    %c0_1 = arith.constant 0 : index
    %c0_2 = arith.constant 0 : index
    %1 = vector.load %arg3[%c0_1, %c0_2] : memref<144x128xbf16, #tpu.memory_space<vmem>>, vector<144x128xbf16>
    %cst = arith.constant dense<0.000000e+00> : vector<64x128xf32>
    %2 = tpu.matmul %0, %1, %cst {dimension_numbers = #tpu.dot_dimension_numbers<[1], [0], [0], [1], [0, 0, 1, 1], [], []>} : vector<64x144xbf16>, vector<144x128xbf16>, vector<64x128xf32> -> vector<64x128xf32>
    %c0_3 = arith.constant 0 : index
    %c0_4 = arith.constant 0 : index
    %3 = vector.load %arg2[%c0_3, %c0_4] : memref<64x1xf32, #tpu.memory_space<vmem>>, vector<64x1xf32>
    %4 = vector.broadcast %3 : vector<64x1xf32> to vector<64x128xf32>
    %5 = arith.addf %2, %4 : vector<64x128xf32>
    %6 = vector.extract_strided_slice %5 {offsets = [0, 0], sizes = [32, 128], strides = [1, 1]} : vector<64x128xf32> to vector<32x128xf32>
    %cst_5 = arith.constant 0.25103718 : f32
    %7 = vector.broadcast %cst_5 : f32 to vector<32x128xf32>
    %8 = arith.mulf %6, %7 : vector<32x128xf32>
    %cst_6 = arith.constant 1.48548007 : f32
    %9 = vector.broadcast %cst_6 : f32 to vector<32x128xf32>
    %10 = arith.addf %9, %8 : vector<32x128xf32>
    %11 = arith.mulf %6, %10 : vector<32x128xf32>
    %cst_7 = arith.constant 3.05202651 : f32
    %12 = vector.broadcast %cst_7 : f32 to vector<32x128xf32>
    %13 = arith.addf %12, %11 : vector<32x128xf32>
    %14 = arith.mulf %6, %13 : vector<32x128xf32>
    %cst_8 = arith.constant 2.3233521 : f32
    %15 = vector.broadcast %cst_8 : f32 to vector<32x128xf32>
    %16 = arith.addf %15, %14 : vector<32x128xf32>
    %17 = arith.mulf %6, %16 : vector<32x128xf32>
    %cst_9 = arith.constant 0.618377387 : f32
    %18 = vector.broadcast %cst_9 : f32 to vector<32x128xf32>
    %19 = arith.addf %18, %17 : vector<32x128xf32>
    %20 = arith.mulf %6, %19 : vector<32x128xf32>
    %cst_10 = arith.constant 0.0297924597 : f32
    %21 = vector.broadcast %cst_10 : f32 to vector<32x128xf32>
    %22 = arith.addf %21, %20 : vector<32x128xf32>
    %23 = math.absf %6 : vector<32x128xf32>
    %cst_11 = arith.constant 0.332675338 : f32
    %24 = vector.broadcast %cst_11 : f32 to vector<32x128xf32>
    %25 = arith.mulf %23, %24 : vector<32x128xf32>
    %cst_12 = arith.constant 0.389761925 : f32
    %26 = vector.broadcast %cst_12 : f32 to vector<32x128xf32>
    %27 = arith.addf %26, %25 : vector<32x128xf32>
    %28 = arith.mulf %23, %27 : vector<32x128xf32>
    %cst_13 = arith.constant 2.38160753 : f32
    %29 = vector.broadcast %cst_13 : f32 to vector<32x128xf32>
    %30 = arith.addf %29, %28 : vector<32x128xf32>
    %31 = arith.mulf %23, %30 : vector<32x128xf32>
    %cst_14 = arith.constant 1.14132464 : f32
    %32 = vector.broadcast %cst_14 : f32 to vector<32x128xf32>
    %33 = arith.addf %32, %31 : vector<32x128xf32>
    %34 = arith.mulf %23, %33 : vector<32x128xf32>
    %cst_15 = arith.constant 1.000000e+00 : f32
    %35 = vector.broadcast %cst_15 : f32 to vector<32x128xf32>
    %36 = arith.addf %35, %34 : vector<32x128xf32>
    %37 = tpu.reciprocal %36 {approx = true} : vector<32x128xf32> -> vector<32x128xf32>
    %38 = arith.mulf %22, %37 : vector<32x128xf32>
    %39 = arith.truncf %38 : vector<32x128xf32> to vector<32x128xbf16>
    %c0_16 = arith.constant 0 : index
    %c0_17 = arith.constant 0 : index
    %40 = vector.load %arg4[%c0_16, %c0_17] : memref<32x128xbf16, #tpu.memory_space<vmem>>, vector<32x128xbf16>
    tpu.vector_store %arg4[%c0_16, %c0_17], %39 {strides = array<i32>} : memref<32x128xbf16, #tpu.memory_space<vmem>>, vector<32x128xbf16>,
    %41 = vector.extract_strided_slice %5 {offsets = [32, 0], sizes = [32, 128], strides = [1, 1]} : vector<64x128xf32> to vector<32x128xf32>
    %42 = arith.truncf %41 : vector<32x128xf32> to vector<32x128xbf16>
    %c0_18 = arith.constant 0 : index
    %c0_19 = arith.constant 0 : index
    %43 = vector.load %arg5[%c0_18, %c0_19] : memref<32x128xbf16, #tpu.memory_space<vmem>>, vector<32x128xbf16>
    tpu.vector_store %arg5[%c0_18, %c0_19], %42 {strides = array<i32>} : memref<32x128xbf16, #tpu.memory_space<vmem>>, vector<32x128xbf16>,
    return
  }
  func.func @transform_0(%arg0: i32) -> (i32, i32) {
    %c0_i32 = arith.constant 0 : i32
    %c0_i32_0 = arith.constant 0 : i32
    %c0_i32_1 = arith.constant 0 : i32
    return %c0_i32, %c0_i32_0 : i32, i32
  }
  func.func @transform_1(%arg0: i32) -> (i32, i32) {
    %c0_i32 = arith.constant 0 : i32
    %c0_i32_0 = arith.constant 0 : i32
    %c0_i32_1 = arith.constant 0 : i32
    return %c0_i32, %c0_i32_0 : i32, i32
  }
  func.func @transform_2(%arg0: i32) -> (i32, i32) {
    %c0_i32 = arith.constant 0 : i32
    %c0_i32_0 = arith.constant 0 : i32
    return %c0_i32, %arg0 : i32, i32
  }
  func.func @transform_3(%arg0: i32) -> (i32, i32) {
    %c0_i32 = arith.constant 0 : i32
    %c0_i32_0 = arith.constant 0 : i32
    return %c0_i32, %arg0 : i32, i32
  }
  func.func @transform_4(%arg0: i32) -> (i32, i32) {
    %c0_i32 = arith.constant 0 : i32
    %c0_i32_0 = arith.constant 0 : i32
    return %c0_i32, %arg0 : i32, i32
  }
}

module attributes {stable_mosaic.version = 11 : i64} {
  func.func @_conv_res_kernel(%arg0: i32, %arg1: memref<32x288xbf16, #tpu.memory_space<vmem>>, %arg2: memref<32x1xf32, #tpu.memory_space<vmem>>, %arg3: memref<288x128xbf16, #tpu.memory_space<vmem>>, %arg4: memref<32x128xbf16, #tpu.memory_space<vmem>>, %arg5: memref<32x128xbf16, #tpu.memory_space<vmem>>) attributes {dimension_semantics = [#tpu.dimension_semantics<parallel>], iteration_bounds = array<i64: 1>, scalar_prefetch = 0 : i64, scratch_operands = 0 : i64, tpu.core_type = #tpu.core_type<tc>, window_params = [{pipeline_mode = #tpu.pipeline_mode<synchronous>, transform_indices = @transform_0, window_bounds = array<i64: 32, 288>}, {pipeline_mode = #tpu.pipeline_mode<synchronous>, transform_indices = @transform_1, window_bounds = array<i64: 32, 1>}, {transform_indices = @transform_2, window_bounds = array<i64: 288, 128>}, {transform_indices = @transform_3, window_bounds = array<i64: 32, 128>}, {transform_indices = @transform_4, window_bounds = array<i64: 32, 128>}]} {
    %c0 = arith.constant 0 : index
    %c0_0 = arith.constant 0 : index
    %0 = vector.load %arg1[%c0, %c0_0] : memref<32x288xbf16, #tpu.memory_space<vmem>>, vector<32x288xbf16>
    %c0_1 = arith.constant 0 : index
    %c0_2 = arith.constant 0 : index
    %1 = vector.load %arg3[%c0_1, %c0_2] : memref<288x128xbf16, #tpu.memory_space<vmem>>, vector<288x128xbf16>
    %cst = arith.constant dense<0.000000e+00> : vector<32x128xf32>
    %2 = tpu.matmul %0, %1, %cst {dimension_numbers = #tpu.dot_dimension_numbers<[1], [0], [0], [1], [0, 0, 1, 1], [], []>} : vector<32x288xbf16>, vector<288x128xbf16>, vector<32x128xf32> -> vector<32x128xf32>
    %c0_3 = arith.constant 0 : index
    %c0_4 = arith.constant 0 : index
    %3 = vector.load %arg2[%c0_3, %c0_4] : memref<32x1xf32, #tpu.memory_space<vmem>>, vector<32x1xf32>
    %4 = vector.broadcast %3 : vector<32x1xf32> to vector<32x128xf32>
    %5 = arith.addf %2, %4 : vector<32x128xf32>
    %c0_5 = arith.constant 0 : index
    %c0_6 = arith.constant 0 : index
    %6 = vector.load %arg4[%c0_5, %c0_6] : memref<32x128xbf16, #tpu.memory_space<vmem>>, vector<32x128xbf16>
    %7 = arith.extf %6 : vector<32x128xbf16> to vector<32x128xf32>
    %8 = arith.addf %5, %7 : vector<32x128xf32>
    %cst_7 = arith.constant 0.25103718 : f32
    %9 = vector.broadcast %cst_7 : f32 to vector<32x128xf32>
    %10 = arith.mulf %8, %9 : vector<32x128xf32>
    %cst_8 = arith.constant 1.48548007 : f32
    %11 = vector.broadcast %cst_8 : f32 to vector<32x128xf32>
    %12 = arith.addf %11, %10 : vector<32x128xf32>
    %13 = arith.mulf %8, %12 : vector<32x128xf32>
    %cst_9 = arith.constant 3.05202651 : f32
    %14 = vector.broadcast %cst_9 : f32 to vector<32x128xf32>
    %15 = arith.addf %14, %13 : vector<32x128xf32>
    %16 = arith.mulf %8, %15 : vector<32x128xf32>
    %cst_10 = arith.constant 2.3233521 : f32
    %17 = vector.broadcast %cst_10 : f32 to vector<32x128xf32>
    %18 = arith.addf %17, %16 : vector<32x128xf32>
    %19 = arith.mulf %8, %18 : vector<32x128xf32>
    %cst_11 = arith.constant 0.618377387 : f32
    %20 = vector.broadcast %cst_11 : f32 to vector<32x128xf32>
    %21 = arith.addf %20, %19 : vector<32x128xf32>
    %22 = arith.mulf %8, %21 : vector<32x128xf32>
    %cst_12 = arith.constant 0.0297924597 : f32
    %23 = vector.broadcast %cst_12 : f32 to vector<32x128xf32>
    %24 = arith.addf %23, %22 : vector<32x128xf32>
    %25 = math.absf %8 : vector<32x128xf32>
    %cst_13 = arith.constant 0.332675338 : f32
    %26 = vector.broadcast %cst_13 : f32 to vector<32x128xf32>
    %27 = arith.mulf %25, %26 : vector<32x128xf32>
    %cst_14 = arith.constant 0.389761925 : f32
    %28 = vector.broadcast %cst_14 : f32 to vector<32x128xf32>
    %29 = arith.addf %28, %27 : vector<32x128xf32>
    %30 = arith.mulf %25, %29 : vector<32x128xf32>
    %cst_15 = arith.constant 2.38160753 : f32
    %31 = vector.broadcast %cst_15 : f32 to vector<32x128xf32>
    %32 = arith.addf %31, %30 : vector<32x128xf32>
    %33 = arith.mulf %25, %32 : vector<32x128xf32>
    %cst_16 = arith.constant 1.14132464 : f32
    %34 = vector.broadcast %cst_16 : f32 to vector<32x128xf32>
    %35 = arith.addf %34, %33 : vector<32x128xf32>
    %36 = arith.mulf %25, %35 : vector<32x128xf32>
    %cst_17 = arith.constant 1.000000e+00 : f32
    %37 = vector.broadcast %cst_17 : f32 to vector<32x128xf32>
    %38 = arith.addf %37, %36 : vector<32x128xf32>
    %39 = tpu.reciprocal %38 {approx = true} : vector<32x128xf32> -> vector<32x128xf32>
    %40 = arith.mulf %24, %39 : vector<32x128xf32>
    %41 = arith.truncf %40 : vector<32x128xf32> to vector<32x128xbf16>
    %c0_18 = arith.constant 0 : index
    %c0_19 = arith.constant 0 : index
    %42 = vector.load %arg5[%c0_18, %c0_19] : memref<32x128xbf16, #tpu.memory_space<vmem>>, vector<32x128xbf16>
    tpu.vector_store %arg5[%c0_18, %c0_19], %41 {strides = array<i32>} : memref<32x128xbf16, #tpu.memory_space<vmem>>, vector<32x128xbf16>,
    return
  }
  func.func @transform_0(%arg0: i32) -> (i32, i32) {
    %c0_i32 = arith.constant 0 : i32
    %c0_i32_0 = arith.constant 0 : i32
    %c0_i32_1 = arith.constant 0 : i32
    return %c0_i32, %c0_i32_0 : i32, i32
  }
  func.func @transform_1(%arg0: i32) -> (i32, i32) {
    %c0_i32 = arith.constant 0 : i32
    %c0_i32_0 = arith.constant 0 : i32
    %c0_i32_1 = arith.constant 0 : i32
    return %c0_i32, %c0_i32_0 : i32, i32
  }
  func.func @transform_2(%arg0: i32) -> (i32, i32) {
    %c0_i32 = arith.constant 0 : i32
    %c0_i32_0 = arith.constant 0 : i32
    return %c0_i32, %arg0 : i32, i32
  }
  func.func @transform_3(%arg0: i32) -> (i32, i32) {
    %c0_i32 = arith.constant 0 : i32
    %c0_i32_0 = arith.constant 0 : i32
    return %c0_i32, %arg0 : i32, i32
  }
  func.func @transform_4(%arg0: i32) -> (i32, i32) {
    %c0_i32 = arith.constant 0 : i32
    %c0_i32_0 = arith.constant 0 : i32
    return %c0_i32, %arg0 : i32, i32
  }
}

module attributes {stable_mosaic.version = 11 : i64} {
  func.func @_conv_ds_kernel(%arg0: i32, %arg1: memref<128x288xbf16, #tpu.memory_space<vmem>>, %arg2: memref<128x1xf32, #tpu.memory_space<vmem>>, %arg3: memref<288x128xbf16, #tpu.memory_space<vmem>>, %arg4: memref<64x128xbf16, #tpu.memory_space<vmem>>, %arg5: memref<64x128xbf16, #tpu.memory_space<vmem>>) attributes {dimension_semantics = [#tpu.dimension_semantics<parallel>], iteration_bounds = array<i64: 1>, scalar_prefetch = 0 : i64, scratch_operands = 0 : i64, tpu.core_type = #tpu.core_type<tc>, window_params = [{pipeline_mode = #tpu.pipeline_mode<synchronous>, transform_indices = @transform_0, window_bounds = array<i64: 128, 288>}, {pipeline_mode = #tpu.pipeline_mode<synchronous>, transform_indices = @transform_1, window_bounds = array<i64: 128, 1>}, {transform_indices = @transform_2, window_bounds = array<i64: 288, 128>}, {transform_indices = @transform_3, window_bounds = array<i64: 64, 128>}, {transform_indices = @transform_4, window_bounds = array<i64: 64, 128>}]} {
    %c0 = arith.constant 0 : index
    %c0_0 = arith.constant 0 : index
    %0 = vector.load %arg1[%c0, %c0_0] : memref<128x288xbf16, #tpu.memory_space<vmem>>, vector<128x288xbf16>
    %c0_1 = arith.constant 0 : index
    %c0_2 = arith.constant 0 : index
    %1 = vector.load %arg3[%c0_1, %c0_2] : memref<288x128xbf16, #tpu.memory_space<vmem>>, vector<288x128xbf16>
    %cst = arith.constant dense<0.000000e+00> : vector<128x128xf32>
    %2 = tpu.matmul %0, %1, %cst {dimension_numbers = #tpu.dot_dimension_numbers<[1], [0], [0], [1], [0, 0, 1, 1], [], []>} : vector<128x288xbf16>, vector<288x128xbf16>, vector<128x128xf32> -> vector<128x128xf32>
    %c0_3 = arith.constant 0 : index
    %c0_4 = arith.constant 0 : index
    %3 = vector.load %arg2[%c0_3, %c0_4] : memref<128x1xf32, #tpu.memory_space<vmem>>, vector<128x1xf32>
    %4 = vector.broadcast %3 : vector<128x1xf32> to vector<128x128xf32>
    %5 = arith.addf %2, %4 : vector<128x128xf32>
    %6 = vector.extract_strided_slice %5 {offsets = [0, 0], sizes = [64, 128], strides = [1, 1]} : vector<128x128xf32> to vector<64x128xf32>
    %cst_5 = arith.constant 0.25103718 : f32
    %7 = vector.broadcast %cst_5 : f32 to vector<64x128xf32>
    %8 = arith.mulf %6, %7 : vector<64x128xf32>
    %cst_6 = arith.constant 1.48548007 : f32
    %9 = vector.broadcast %cst_6 : f32 to vector<64x128xf32>
    %10 = arith.addf %9, %8 : vector<64x128xf32>
    %11 = arith.mulf %6, %10 : vector<64x128xf32>
    %cst_7 = arith.constant 3.05202651 : f32
    %12 = vector.broadcast %cst_7 : f32 to vector<64x128xf32>
    %13 = arith.addf %12, %11 : vector<64x128xf32>
    %14 = arith.mulf %6, %13 : vector<64x128xf32>
    %cst_8 = arith.constant 2.3233521 : f32
    %15 = vector.broadcast %cst_8 : f32 to vector<64x128xf32>
    %16 = arith.addf %15, %14 : vector<64x128xf32>
    %17 = arith.mulf %6, %16 : vector<64x128xf32>
    %cst_9 = arith.constant 0.618377387 : f32
    %18 = vector.broadcast %cst_9 : f32 to vector<64x128xf32>
    %19 = arith.addf %18, %17 : vector<64x128xf32>
    %20 = arith.mulf %6, %19 : vector<64x128xf32>
    %cst_10 = arith.constant 0.0297924597 : f32
    %21 = vector.broadcast %cst_10 : f32 to vector<64x128xf32>
    %22 = arith.addf %21, %20 : vector<64x128xf32>
    %23 = math.absf %6 : vector<64x128xf32>
    %cst_11 = arith.constant 0.332675338 : f32
    %24 = vector.broadcast %cst_11 : f32 to vector<64x128xf32>
    %25 = arith.mulf %23, %24 : vector<64x128xf32>
    %cst_12 = arith.constant 0.389761925 : f32
    %26 = vector.broadcast %cst_12 : f32 to vector<64x128xf32>
    %27 = arith.addf %26, %25 : vector<64x128xf32>
    %28 = arith.mulf %23, %27 : vector<64x128xf32>
    %cst_13 = arith.constant 2.38160753 : f32
    %29 = vector.broadcast %cst_13 : f32 to vector<64x128xf32>
    %30 = arith.addf %29, %28 : vector<64x128xf32>
    %31 = arith.mulf %23, %30 : vector<64x128xf32>
    %cst_14 = arith.constant 1.14132464 : f32
    %32 = vector.broadcast %cst_14 : f32 to vector<64x128xf32>
    %33 = arith.addf %32, %31 : vector<64x128xf32>
    %34 = arith.mulf %23, %33 : vector<64x128xf32>
    %cst_15 = arith.constant 1.000000e+00 : f32
    %35 = vector.broadcast %cst_15 : f32 to vector<64x128xf32>
    %36 = arith.addf %35, %34 : vector<64x128xf32>
    %37 = tpu.reciprocal %36 {approx = true} : vector<64x128xf32> -> vector<64x128xf32>
    %38 = arith.mulf %22, %37 : vector<64x128xf32>
    %39 = arith.truncf %38 : vector<64x128xf32> to vector<64x128xbf16>
    %c0_16 = arith.constant 0 : index
    %c0_17 = arith.constant 0 : index
    %40 = vector.load %arg4[%c0_16, %c0_17] : memref<64x128xbf16, #tpu.memory_space<vmem>>, vector<64x128xbf16>
    tpu.vector_store %arg4[%c0_16, %c0_17], %39 {strides = array<i32>} : memref<64x128xbf16, #tpu.memory_space<vmem>>, vector<64x128xbf16>,
    %41 = vector.extract_strided_slice %5 {offsets = [64, 0], sizes = [64, 128], strides = [1, 1]} : vector<128x128xf32> to vector<64x128xf32>
    %42 = arith.truncf %41 : vector<64x128xf32> to vector<64x128xbf16>
    %c0_18 = arith.constant 0 : index
    %c0_19 = arith.constant 0 : index
    %43 = vector.load %arg5[%c0_18, %c0_19] : memref<64x128xbf16, #tpu.memory_space<vmem>>, vector<64x128xbf16>
    tpu.vector_store %arg5[%c0_18, %c0_19], %42 {strides = array<i32>} : memref<64x128xbf16, #tpu.memory_space<vmem>>, vector<64x128xbf16>,
    return
  }
  func.func @transform_0(%arg0: i32) -> (i32, i32) {
    %c0_i32 = arith.constant 0 : i32
    %c0_i32_0 = arith.constant 0 : i32
    %c0_i32_1 = arith.constant 0 : i32
    return %c0_i32, %c0_i32_0 : i32, i32
  }
  func.func @transform_1(%arg0: i32) -> (i32, i32) {
    %c0_i32 = arith.constant 0 : i32
    %c0_i32_0 = arith.constant 0 : i32
    %c0_i32_1 = arith.constant 0 : i32
    return %c0_i32, %c0_i32_0 : i32, i32
  }
  func.func @transform_2(%arg0: i32) -> (i32, i32) {
    %c0_i32 = arith.constant 0 : i32
    %c0_i32_0 = arith.constant 0 : i32
    return %c0_i32, %arg0 : i32, i32
  }
  func.func @transform_3(%arg0: i32) -> (i32, i32) {
    %c0_i32 = arith.constant 0 : i32
    %c0_i32_0 = arith.constant 0 : i32
    return %c0_i32, %arg0 : i32, i32
  }
  func.func @transform_4(%arg0: i32) -> (i32, i32) {
    %c0_i32 = arith.constant 0 : i32
    %c0_i32_0 = arith.constant 0 : i32
    return %c0_i32, %arg0 : i32, i32
  }
}

module attributes {stable_mosaic.version = 11 : i64} {
  func.func @_conv_res_kernel(%arg0: i32, %arg1: memref<64x576xbf16, #tpu.memory_space<vmem>>, %arg2: memref<64x1xf32, #tpu.memory_space<vmem>>, %arg3: memref<576x128xbf16, #tpu.memory_space<vmem>>, %arg4: memref<64x128xbf16, #tpu.memory_space<vmem>>, %arg5: memref<64x128xbf16, #tpu.memory_space<vmem>>) attributes {dimension_semantics = [#tpu.dimension_semantics<parallel>], iteration_bounds = array<i64: 1>, scalar_prefetch = 0 : i64, scratch_operands = 0 : i64, tpu.core_type = #tpu.core_type<tc>, window_params = [{pipeline_mode = #tpu.pipeline_mode<synchronous>, transform_indices = @transform_0, window_bounds = array<i64: 64, 576>}, {pipeline_mode = #tpu.pipeline_mode<synchronous>, transform_indices = @transform_1, window_bounds = array<i64: 64, 1>}, {transform_indices = @transform_2, window_bounds = array<i64: 576, 128>}, {transform_indices = @transform_3, window_bounds = array<i64: 64, 128>}, {transform_indices = @transform_4, window_bounds = array<i64: 64, 128>}]} {
    %c0 = arith.constant 0 : index
    %c0_0 = arith.constant 0 : index
    %0 = vector.load %arg1[%c0, %c0_0] : memref<64x576xbf16, #tpu.memory_space<vmem>>, vector<64x576xbf16>
    %c0_1 = arith.constant 0 : index
    %c0_2 = arith.constant 0 : index
    %1 = vector.load %arg3[%c0_1, %c0_2] : memref<576x128xbf16, #tpu.memory_space<vmem>>, vector<576x128xbf16>
    %cst = arith.constant dense<0.000000e+00> : vector<64x128xf32>
    %2 = tpu.matmul %0, %1, %cst {dimension_numbers = #tpu.dot_dimension_numbers<[1], [0], [0], [1], [0, 0, 1, 1], [], []>} : vector<64x576xbf16>, vector<576x128xbf16>, vector<64x128xf32> -> vector<64x128xf32>
    %c0_3 = arith.constant 0 : index
    %c0_4 = arith.constant 0 : index
    %3 = vector.load %arg2[%c0_3, %c0_4] : memref<64x1xf32, #tpu.memory_space<vmem>>, vector<64x1xf32>
    %4 = vector.broadcast %3 : vector<64x1xf32> to vector<64x128xf32>
    %5 = arith.addf %2, %4 : vector<64x128xf32>
    %c0_5 = arith.constant 0 : index
    %c0_6 = arith.constant 0 : index
    %6 = vector.load %arg4[%c0_5, %c0_6] : memref<64x128xbf16, #tpu.memory_space<vmem>>, vector<64x128xbf16>
    %7 = arith.extf %6 : vector<64x128xbf16> to vector<64x128xf32>
    %8 = arith.addf %5, %7 : vector<64x128xf32>
    %cst_7 = arith.constant 0.25103718 : f32
    %9 = vector.broadcast %cst_7 : f32 to vector<64x128xf32>
    %10 = arith.mulf %8, %9 : vector<64x128xf32>
    %cst_8 = arith.constant 1.48548007 : f32
    %11 = vector.broadcast %cst_8 : f32 to vector<64x128xf32>
    %12 = arith.addf %11, %10 : vector<64x128xf32>
    %13 = arith.mulf %8, %12 : vector<64x128xf32>
    %cst_9 = arith.constant 3.05202651 : f32
    %14 = vector.broadcast %cst_9 : f32 to vector<64x128xf32>
    %15 = arith.addf %14, %13 : vector<64x128xf32>
    %16 = arith.mulf %8, %15 : vector<64x128xf32>
    %cst_10 = arith.constant 2.3233521 : f32
    %17 = vector.broadcast %cst_10 : f32 to vector<64x128xf32>
    %18 = arith.addf %17, %16 : vector<64x128xf32>
    %19 = arith.mulf %8, %18 : vector<64x128xf32>
    %cst_11 = arith.constant 0.618377387 : f32
    %20 = vector.broadcast %cst_11 : f32 to vector<64x128xf32>
    %21 = arith.addf %20, %19 : vector<64x128xf32>
    %22 = arith.mulf %8, %21 : vector<64x128xf32>
    %cst_12 = arith.constant 0.0297924597 : f32
    %23 = vector.broadcast %cst_12 : f32 to vector<64x128xf32>
    %24 = arith.addf %23, %22 : vector<64x128xf32>
    %25 = math.absf %8 : vector<64x128xf32>
    %cst_13 = arith.constant 0.332675338 : f32
    %26 = vector.broadcast %cst_13 : f32 to vector<64x128xf32>
    %27 = arith.mulf %25, %26 : vector<64x128xf32>
    %cst_14 = arith.constant 0.389761925 : f32
    %28 = vector.broadcast %cst_14 : f32 to vector<64x128xf32>
    %29 = arith.addf %28, %27 : vector<64x128xf32>
    %30 = arith.mulf %25, %29 : vector<64x128xf32>
    %cst_15 = arith.constant 2.38160753 : f32
    %31 = vector.broadcast %cst_15 : f32 to vector<64x128xf32>
    %32 = arith.addf %31, %30 : vector<64x128xf32>
    %33 = arith.mulf %25, %32 : vector<64x128xf32>
    %cst_16 = arith.constant 1.14132464 : f32
    %34 = vector.broadcast %cst_16 : f32 to vector<64x128xf32>
    %35 = arith.addf %34, %33 : vector<64x128xf32>
    %36 = arith.mulf %25, %35 : vector<64x128xf32>
    %cst_17 = arith.constant 1.000000e+00 : f32
    %37 = vector.broadcast %cst_17 : f32 to vector<64x128xf32>
    %38 = arith.addf %37, %36 : vector<64x128xf32>
    %39 = tpu.reciprocal %38 {approx = true} : vector<64x128xf32> -> vector<64x128xf32>
    %40 = arith.mulf %24, %39 : vector<64x128xf32>
    %41 = arith.truncf %40 : vector<64x128xf32> to vector<64x128xbf16>
    %c0_18 = arith.constant 0 : index
    %c0_19 = arith.constant 0 : index
    %42 = vector.load %arg5[%c0_18, %c0_19] : memref<64x128xbf16, #tpu.memory_space<vmem>>, vector<64x128xbf16>
    tpu.vector_store %arg5[%c0_18, %c0_19], %41 {strides = array<i32>} : memref<64x128xbf16, #tpu.memory_space<vmem>>, vector<64x128xbf16>,
    return
  }
  func.func @transform_0(%arg0: i32) -> (i32, i32) {
    %c0_i32 = arith.constant 0 : i32
    %c0_i32_0 = arith.constant 0 : i32
    %c0_i32_1 = arith.constant 0 : i32
    return %c0_i32, %c0_i32_0 : i32, i32
  }
  func.func @transform_1(%arg0: i32) -> (i32, i32) {
    %c0_i32 = arith.constant 0 : i32
    %c0_i32_0 = arith.constant 0 : i32
    %c0_i32_1 = arith.constant 0 : i32
    return %c0_i32, %c0_i32_0 : i32, i32
  }
  func.func @transform_2(%arg0: i32) -> (i32, i32) {
    %c0_i32 = arith.constant 0 : i32
    %c0_i32_0 = arith.constant 0 : i32
    return %c0_i32, %arg0 : i32, i32
  }
  func.func @transform_3(%arg0: i32) -> (i32, i32) {
    %c0_i32 = arith.constant 0 : i32
    %c0_i32_0 = arith.constant 0 : i32
    return %c0_i32, %arg0 : i32, i32
  }
  func.func @transform_4(%arg0: i32) -> (i32, i32) {
    %c0_i32 = arith.constant 0 : i32
    %c0_i32_0 = arith.constant 0 : i32
    return %c0_i32, %arg0 : i32, i32
  }
}

</mosaic_0001>

<bundles_post_ra>
// kernel: _lambda_.7
= control target key start
LH: loop header
LB: loop body
LE: loop exit
PB: predicated region body
PF: predicated region fallthrough
CT: control target
= control target key end

     0   :  { %vm82_vm0 = vcmask 1044480   ;;  %vm83_vm1 = vcmask 1045504   ;;  %v435_v1 = vmov 0   ;;  %v436_v2 = vmov 65535   ;;  %s578_s2 = inlined_call_operand.vmem [shape: bf16[27,512], index: 2, kind: input, shape index: {}]   ;;  %s579_s1 = inlined_call_operand.vmem [shape: f32[16,1], index: 1, kind: input, shape index: {}]   ;;  %s580_s0 = inlined_call_operand.vmem [shape: bf16[16,27], index: 0, kind: input, shape index: {}]   ;;  %s581_s3 = inlined_call_operand.vmem [shape: bf16[16,512], index: 3, kind: output, shape index: {}]  }
   0x1   :  { %v406_v0 = vld [vmem:[%s578_s2 + $0x24] ss:$16 sps:$4 sm:$0x3f]   ;;  %130 = vmatprep.mubr.bf16.mxu0 %v435_v1  ;;  %173 = vmatprep.mubr.bf16.mxu1 %v435_v1  ;;  %v84_v3 = vsel %vm82_vm0, 4294967295, %v436_v2  ;;  %v414_v11 = vld [vmem:[%s578_s2 + $0xc] ss:$16 sps:$4 sm:$0xff]  }
   0x2   :  { %405 = vset.pattern.permute.xlu0 %v435_v1  ;;  %v85_v4 = vsel %vm83_vm1, %v84_v3, 0  ;;  %v408_v5 = vld [vmem:[%s578_s2 + $0x2c] ss:$16 sps:$4 sm:$0x3f]   ;;  %v412_v10 = vld [vmem:[%s578_s2 + $0x4] ss:$16 sps:$4 sm:$0xff]  }
   0x3   :  { %v90_v6 = vand.u32 %v406_v0, %v85_v4  ;;  %v410_v7 = vld [vmem:[%s578_s2 + $0x20] ss:$16 sps:$4 sm:$0x3f]   ;;  %v411_v8 = vld [vmem:[%s578_s2 + $0x28] ss:$16 sps:$4 sm:$0x3f]   ;;  %v96_v9 = vand.u32 %v408_v5, %v85_v4 }
   0x4   :  { %v87_v12 = vand.u32 %v410_v7, %v85_v4  ;;  %v93_v13 = vand.u32 %v411_v8, %v85_v4  ;;  %v25_v14 = vld [vmem:[%s579_s1] sm:$0xff]  ;;  %v417_v16 = vld [vmem:[%s578_s2 + $0x8] ss:$16 sps:$4 sm:$0xff]   ;;  %vm78_vm2 = vcmask 220160  }
   0x5   :  { %110 = vmatprep.subr.bf16.mxu0 %v90_v6  ;;  %153 = vmatprep.subr.bf16.mxu1 %v96_v9  ;;  %v416_v15 = vld [vmem:[%s578_s2] ss:$16 sps:$4 sm:$0xff]   ;;  %v26_v18 = vld [vmem:[%s579_s1 + $0x8] sm:$0xff] }
   0x6   :  { %111 = vmatpush1.bf16.msra.mxu0 %v87_v12  ;;  %154 = vmatpush1.bf16.msra.mxu1 %v93_v13  ;;  %v418_v17 = vld [vmem:[%s580_s0] sm:$0xff]  }
   0x7   :  { %112 = vmatprep.subr.bf16.mxu0 %v412_v10  ;;  %155 = vmatprep.subr.bf16.mxu1 %v414_v11 }
   0x8   :  { %29 = vperm.xlu0 %405, %v25_v14  }
   0xa   :  { %113 = vmatpush1.bf16.msra.mxu0 %v416_v15  ;;  %156 = vmatpush1.bf16.msra.mxu1 %v417_v16 }
   0xc   :  { %34 = vperm.xlu0 %405, %v26_v18  }
   0xd   :  { %393 = vmatmul.mubr.msk.bf16.vlgmr.msra.gmra.mxu0 %vm78_vm2, %v418_v17  ;;  %394 = vmatmul.mubr.msk.bf16.vlgmr.msra.gmra.mxu1 %vm78_vm2, %v418_v17 }
  0x83   :  { %v30_v19 = vpop.permute.xlu0 %29 }
  0x87   :  { %v35_v12 = vpop.permute.xlu0 %34 }
  0xcd   :  { %v132_v20 = vpop.f32.mrf.mxu0  ;;  %v175_v21 = vpop.f32.mrf.mxu1 }
  0xce   :  { %v490_v22 = vadd.f32 %v132_v20, %v30_v19  ;;  %v492_v23 = vadd.f32 %v175_v21, %v30_v19 }
  0xcf   :  { %v134_v24 = vpop.f32.mrf.mxu0  ;;  %v177_v25 = vpop.f32.mrf.mxu1 }
  0xd0   :  { %v184_v26 = vmul.f32 0.25103718, %v490_v22  ;;  %v264_v27 = vand.u32 2147483647, %v490_v22  ;;  %v186_v28 = vmul.f32 0.25103718, %v492_v23  ;;  %v497_v29 = vadd.f32 %v134_v24, %v30_v19 }
  0xd1   :  { %v266_v30 = vand.u32 2147483647, %v492_v23  ;;  %v500_v31 = vadd.f32 %v177_v25, %v30_v19  ;;  %v136_v6 = vpop.f32.mrf.mxu0  ;;  %v179_v10 = vpop.f32.mrf.mxu1 }
  0xd2   :  { %v192_v32 = vadd.f32 1.4854801, %v184_v26  ;;  %v272_v33 = vmul.f32 0.33267534, %v264_v27  ;;  %v194_v34 = vadd.f32 1.4854801, %v186_v28  ;;  %v514_v17 = vadd.f32 %v136_v6, %v35_v12 }
  0xd3   :  { %v274_v35 = vmul.f32 0.33267534, %v266_v30  ;;  %v185_v36 = vmul.f32 0.25103718, %v497_v29  ;;  %v265_v37 = vand.u32 2147483647, %v497_v29  ;;  %v516_v21 = vadd.f32 %v179_v10, %v35_v12  ;;  %v138_v24 = vpop.f32.mrf.mxu0 }
  0xd4   :  { %v200_v38 = vmul.f32 %v192_v32, %v490_v22  ;;  %v280_v39 = vadd.f32 0.38976192, %v272_v33  ;;  %v187_v40 = vmul.f32 0.25103718, %v500_v31  ;;  %v202_v46 = vmul.f32 %v194_v34, %v492_v23 }
  0xd5   :  { %v282_v41 = vadd.f32 0.38976192, %v274_v35  ;;  %v193_v42 = vadd.f32 1.4854801, %v185_v36  ;;  %v273_v43 = vmul.f32 0.33267534, %v265_v37  ;;  %v521_v35 = vadd.f32 %v138_v24, %v35_v12  ;;  %v181_v36 = vpop.f32.mrf.mxu1 }
  0xd6   :  { %v208_v44 = vadd.f32 3.0520265, %v200_v38  ;;  %v288_v45 = vmul.f32 %v280_v39, %v264_v27  ;;  %v195_v47 = vadd.f32 1.4854801, %v187_v40  ;;  %v267_v51 = vand.u32 2147483647, %v500_v31 }
  0xd7   :  { %v290_v48 = vmul.f32 %v282_v41, %v266_v30  ;;  %v201_v49 = vmul.f32 %v193_v42, %v497_v29  ;;  %v281_v50 = vadd.f32 0.38976192, %v273_v43  ;;  %v210_v60 = vadd.f32 3.0520265, %v202_v46 }
  0xd8   :  { %v296_v52 = vadd.f32 2.3816075, %v288_v45  ;;  %v203_v53 = vmul.f32 %v195_v47, %v500_v31  ;;  %v275_v57 = vmul.f32 0.33267534, %v267_v51  ;;  %v216_v58 = vmul.f32 %v208_v44, %v490_v22 }
  0xd9   :  { %v298_v54 = vadd.f32 2.3816075, %v290_v48  ;;  %v209_v55 = vadd.f32 3.0520265, %v201_v49  ;;  %v289_v56 = vmul.f32 %v281_v50, %v265_v37  ;;  %v218_v9 = vmul.f32 %v210_v60, %v492_v23 }
  0xda   :  { %v304_v59 = vmul.f32 %v296_v52, %v264_v27  ;;  %v283_v63 = vadd.f32 0.38976192, %v275_v57  ;;  %v211_v1 = vadd.f32 3.0520265, %v203_v53  ;;  %v224_v7 = vadd.f32 2.323352, %v216_v58 }
  0xdb   :  { %v306_v61 = vmul.f32 %v298_v54, %v266_v30  ;;  %v297_v62 = vadd.f32 2.3816075, %v289_v56  ;;  %v217_v3 = vmul.f32 %v209_v55, %v497_v29  ;;  %v226_v26 = vadd.f32 2.323352, %v218_v9 }
  0xdc   :  { %v312_v0 = vadd.f32 1.1413246, %v304_v59  ;;  %v291_v5 = vmul.f32 %v283_v63, %v267_v51  ;;  %v219_v16 = vmul.f32 %v211_v1, %v500_v31  ;;  %v232_v25 = vmul.f32 %v224_v7, %v490_v22 }
  0xdd   :  { %v314_v2 = vadd.f32 1.1413246, %v306_v61  ;;  %v305_v4 = vmul.f32 %v297_v62, %v265_v37  ;;  %v225_v18 = vadd.f32 2.323352, %v217_v3  ;;  %v188_v33 = vmul.f32 0.25103718, %v514_v17 }
  0xde   :  { %v320_v8 = vmul.f32 %v312_v0, %v264_v27  ;;  %v299_v14 = vadd.f32 2.3816075, %v291_v5  ;;  %v227_v32 = vadd.f32 2.323352, %v219_v16  ;;  %v268_v34 = vand.u32 2147483647, %v514_v17 }
  0xdf   :  { %v322_v11 = vmul.f32 %v314_v2, %v266_v30  ;;  %v313_v13 = vadd.f32 1.1413246, %v305_v4  ;;  %v525_v39 = vand.u32 2147483647, %v516_v21  ;;  %v240_v40 = vadd.f32 0.6183774, %v232_v25 }
  0xe0   :  { %v328_v15 = vadd.f32 1.0, %v320_v8  ;;  %v307_v20 = vmul.f32 %v299_v14, %v267_v51  ;;  %v234_v41 = vmul.f32 %v226_v26, %v492_v23  ;;  %v196_v42 = vadd.f32 1.4854801, %v188_v33 }
  0xe1   :  { %v321_v19 = vmul.f32 %v313_v13, %v265_v37  ;;  %v330_v27 = vadd.f32 1.0, %v322_v11  ;;  %v233_v37 = vmul.f32 %v225_v18, %v497_v29  ;;  %v276_v43 = vmul.f32 0.33267534, %v268_v34 }
  0xe2   :  { %419 = vrcp.f32 %v328_v15  ;;  %v315_v30 = vadd.f32 1.1413246, %v307_v20  ;;  %v278_v45 = vmul.f32 0.33267534, %v525_v39  ;;  %v529_v46 = vadd.f32 %v181_v36, %v35_v12 }
  0xe3   :  { %v329_v28 = vadd.f32 1.0, %v321_v19  ;;  %v284_v47 = vadd.f32 0.38976192, %v276_v43  ;;  %v189_v48 = vmul.f32 0.25103718, %v521_v35  ;;  %v204_v53 = vmul.f32 %v196_v42, %v514_v17 }
  0xe4   :  { %v323_v38 = vmul.f32 %v315_v30, %v267_v51  ;;  %v269_v49 = vand.u32 2147483647, %v521_v35  ;;  %v241_v50 = vadd.f32 0.6183774, %v233_v37  ;;  %v235_v51 = vmul.f32 %v227_v32, %v500_v31 }
  0xe5   :  { %421 = vrcp.f32 %v329_v28  ;;  %v286_v52 = vadd.f32 0.38976192, %v278_v45  ;;  %v292_v54 = vmul.f32 %v284_v47, %v268_v34  ;;  %v197_v55 = vadd.f32 1.4854801, %v189_v48 }
  0xe6   :  { %423 = vrcp.f32 %v330_v27  ;;  %v331_v44 = vadd.f32 1.0, %v323_v38  ;;  %v277_v56 = vmul.f32 0.33267534, %v269_v49  ;;  %v242_v57 = vadd.f32 0.6183774, %v234_v41 }
  0xe7   :  { %v190_v58 = vmul.f32 0.25103718, %v516_v21  ;;  %v294_v59 = vmul.f32 %v286_v52, %v525_v39  ;;  %v191_v60 = vmul.f32 0.25103718, %v529_v46  ;;  %v300_v61 = vadd.f32 2.3816075, %v292_v54 }
  0xe8   :  { %425 = vrcp.f32 %v331_v44  ;;  %v205_v62 = vmul.f32 %v197_v55, %v521_v35  ;;  %v285_v63 = vadd.f32 0.38976192, %v277_v56  ;;  %v540_v0 = vand.u32 2147483647, %v529_v46 }
  0xe9   :  { %v248_v1 = vmul.f32 %v240_v40, %v490_v22  ;;  %v249_v2 = vmul.f32 %v241_v50, %v497_v29  ;;  %v243_v3 = vadd.f32 0.6183774, %v235_v51  ;;  %v212_v4 = vadd.f32 3.0520265, %v204_v53 }
  0xea   :  { %v308_v5 = vmul.f32 %v300_v61, %v268_v34  ;;  %v302_v6 = vadd.f32 2.3816075, %v294_v59  ;;  %v293_v7 = vmul.f32 %v285_v63, %v269_v49  ;;  %v198_v8 = vadd.f32 1.4854801, %v190_v58 }
  0xeb   :  { %v213_v9 = vadd.f32 3.0520265, %v205_v62  ;;  %v250_v11 = vmul.f32 %v242_v57, %v492_v23  ;;  %v199_v13 = vadd.f32 1.4854801, %v191_v60  ;;  %v279_v14 = vmul.f32 0.33267534, %v540_v0 }
  0xec   :  { %v316_v12 = vadd.f32 1.1413246, %v308_v5  ;;  %v256_v15 = vadd.f32 0.02979246, %v248_v1  ;;  %v257_v16 = vadd.f32 0.02979246, %v249_v2  ;;  %v251_v22 = vmul.f32 %v243_v3, %v500_v31 }
  0xed   :  { %v301_v18 = vadd.f32 2.3816075, %v293_v7  ;;  %v220_v19 = vmul.f32 %v212_v4, %v514_v17  ;;  %v310_v24 = vmul.f32 %v302_v6, %v525_v39  ;;  %v221_v27 = vmul.f32 %v213_v9, %v521_v35 }
  0xee   :  { %v324_v20 = vmul.f32 %v316_v12, %v268_v34  ;;  %v258_v30 = vadd.f32 0.02979246, %v250_v11  ;;  %v206_v32 = vmul.f32 %v198_v8, %v516_v21  ;;  %v207_v33 = vmul.f32 %v199_v13, %v529_v46 }
  0xef   :  { %v420_v10 = vpop.eup %419  ;;  %v309_v23 = vmul.f32 %v301_v18, %v269_v49  ;;  %v287_v36 = vadd.f32 0.38976192, %v279_v14  ;;  %v259_v37 = vadd.f32 0.02979246, %v251_v22  ;;  %v228_v34 = vadd.f32 2.323352, %v220_v19 }
  0xf0   :  { %v344_v25 = vmul.f32 %v420_v10, %v256_v15  ;;  %v332_v38 = vadd.f32 1.0, %v324_v20  ;;  %v318_v42 = vadd.f32 1.1413246, %v310_v24  ;;  %v229_v45 = vadd.f32 2.323352, %v221_v27 }
  0xf1   :  { %v317_v40 = vadd.f32 1.1413246, %v309_v23  ;;  %v214_v48 = vadd.f32 3.0520265, %v206_v32  ;;  %v215_v50 = vadd.f32 3.0520265, %v207_v33  ;;  %v295_v51 = vmul.f32 %v287_v36, %v540_v0 }
  0xf2   :  { %v422_v29 = vpop.eup %421  ;;  %427 = vrcp.f32 %v332_v38  ;;  %v326_v54 = vmul.f32 %v318_v42, %v525_v39  ;;  %v236_v56 = vmul.f32 %v228_v34, %v514_v17  ;;  %v237_v57 = vmul.f32 %v229_v45, %v521_v35 }
  0xf3   :  { %v345_v26 = vmul.f32 %v422_v29, %v257_v16  ;;  %v424_v28 = vpop.eup %423  ;;  %v325_v47 = vmul.f32 %v317_v40, %v269_v49  ;;  %v303_v55 = vadd.f32 2.3816075, %v295_v51  ;;  %v222_v49 = vmul.f32 %v214_v48, %v516_v21 }
  0xf4   :  { %v346_v43 = vmul.f32 %v424_v28, %v258_v30  ;;  %v223_v58 = vmul.f32 %v215_v50, %v529_v46  ;;  %v334_v60 = vadd.f32 1.0, %v326_v54  ;;  %v244_v62 = vadd.f32 0.6183774, %v236_v56 }
  0xf5   :  { %v399_v31 = vpack.c.bf16 %v345_v26, %v344_v25  ;;  %v426_v41 = vpop.eup %425  ;;  %v333_v53 = vadd.f32 1.0, %v325_v47  ;;  %v311_v59 = vmul.f32 %v303_v55, %v540_v0  ;;  %v245_v39 = vadd.f32 0.6183774, %v237_v57 }
  0xf6   :  { %v347_v44 = vmul.f32 %v426_v41, %v259_v37  ;;  %v230_v63 = vadd.f32 2.323352, %v222_v49  ;;  %v231_v1 = vadd.f32 2.323352, %v223_v58  ;;  %v252_v4 = vmul.f32 %v244_v62, %v514_v17 }
  0xf7   :  { %376 = vst [vmem:[%s581_s3] sm:$0xff] %v399_v31  ;;  %429 = vrcp.f32 %v333_v53  ;;  %v319_v61 = vadd.f32 1.1413246, %v311_v59  ;;  %v253_v5 = vmul.f32 %v245_v39, %v521_v35 }
  0xf8   :  { %v400_v52 = vpack.c.bf16 %v347_v44, %v346_v43  ;;  %431 = vrcp.f32 %v334_v60  ;;  %v238_v6 = vmul.f32 %v230_v63, %v516_v21  ;;  %v239_v7 = vmul.f32 %v231_v1, %v529_v46 }
  0xf9   :  { %v327_v2 = vmul.f32 %v319_v61, %v540_v0  ;;  %v260_v9 = vadd.f32 0.02979246, %v252_v4  ;;  %v261_v10 = vadd.f32 0.02979246, %v253_v5 }
  0xfa   :  { %377 = vst [vmem:[%s581_s3 + $0x8] sm:$0xff] %v400_v52  ;;  %v246_v12 = vadd.f32 0.6183774, %v238_v6  ;;  %v247_v13 = vadd.f32 0.6183774, %v239_v7 }
  0xfb   :  { %v335_v3 = vadd.f32 1.0, %v327_v2 }
  0xfc   :  { %v254_v16 = vmul.f32 %v246_v12, %v516_v21  ;;  %v255_v17 = vmul.f32 %v247_v13, %v529_v46 }
  0xfd   :  { %433 = vrcp.f32 %v335_v3 }
  0xfe   :  { %v262_v22 = vadd.f32 0.02979246, %v254_v16  ;;  %v263_v18 = vadd.f32 0.02979246, %v255_v17 }
  0xff   :  { %v428_v8 = vpop.eup %427 }
 0x100   :  { %v348_v14 = vmul.f32 %v428_v8, %v260_v9 }
 0x104   :  { %v430_v11 = vpop.eup %429 }
 0x105   :  { %v349_v15 = vmul.f32 %v430_v11, %v261_v10  ;;  %v432_v35 = vpop.eup %431 }
 0x106   :  { %v350_v19 = vmul.f32 %v432_v35, %v262_v22 }
 0x107   :  { %v401_v0 = vpack.c.bf16 %v349_v15, %v348_v14 }
 0x109   :  { %378 = vst [vmem:[%s581_s3 + $0x10] sm:$0xff] %v401_v0 }
 0x10a   :  { %v434_v29 = vpop.eup %433 }
 0x10b   :  { %v351_v20 = vmul.f32 %v434_v29, %v263_v18 }
 0x10d   :  { %v402_v24 = vpack.c.bf16 %v351_v20, %v350_v19 }
 0x10f   :  { %379 = vst [vmem:[%s581_s3 + $0x18] sm:$0xff] %v402_v24 }

// kernel: _lambda_.8
= control target key start
LH: loop header
LB: loop body
LE: loop exit
PB: predicated region body
PF: predicated region fallthrough
CT: control target
= control target key end

     0   :  { %v667_v1 = vmov 0   ;;  %vm254_vm0 = vcmask 130048   ;;  %s896_s2 = inlined_call_operand.vmem [shape: bf16[144,512], index: 2, kind: input, shape index: {}]   ;;  %s897_s0 = inlined_call_operand.vmem [shape: bf16[16,144], index: 0, kind: input, shape index: {}]   ;;  %s898_s1 = inlined_call_operand.vmem [shape: f32[16,1], index: 1, kind: input, shape index: {}]   ;;  %s899_s3 = inlined_call_operand.vmem [shape: bf16[16,512], index: 3, kind: output, shape index: {}]  }
   0x1   :  { %v594_v0 = vld [vmem:[%s896_s2 + $0xe4] ss:$16 sps:$4 sm:$0xff]   ;;  %593 = vset.pattern.permute.xlu0 %v667_v1  ;;  %v596_v2 = vld [vmem:[%s896_s2 + $0xec] ss:$16 sps:$4 sm:$0xff]   ;;  %v598_v3 = vld [vmem:[%s896_s2 + $0xe0] ss:$16 sps:$4 sm:$0xff]  }
   0x2   :  { %258 = vmatprep.subr.bf16.mxu0 %v594_v0  ;;  %v599_v4 = vld [vmem:[%s896_s2 + $0xe8] ss:$16 sps:$4 sm:$0xff]   ;;  %301 = vmatprep.subr.bf16.mxu1 %v596_v2  ;;  %v600_v5 = vld [vmem:[%s896_s2 + $0xc4] ss:$16 sps:$4 sm:$0xff]   ;;  %v602_v6 = vld [vmem:[%s896_s2 + $0xcc] ss:$16 sps:$4 sm:$0xff]  }
   0x3   :  { %259 = vmatpush1.bf16.msra.mxu0 %v598_v3  ;;  %302 = vmatpush1.bf16.msra.mxu1 %v599_v4  ;;  %v604_v7 = vld [vmem:[%s896_s2 + $0xc0] ss:$16 sps:$4 sm:$0xff]   ;;  %v605_v8 = vld [vmem:[%s896_s2 + $0xc8] ss:$16 sps:$4 sm:$0xff]   ;;  %v606_v9 = vld [vmem:[%s896_s2 + $0xa4] ss:$16 sps:$4 sm:$0xff]  }
   0x4   :  { %260 = vmatprep.subr.bf16.mxu0 %v600_v5  ;;  %303 = vmatprep.subr.bf16.mxu1 %v602_v6  ;;  %v608_v10 = vld [vmem:[%s896_s2 + $0xac] ss:$16 sps:$4 sm:$0xff]   ;;  %v610_v11 = vld [vmem:[%s896_s2 + $0xa0] ss:$16 sps:$4 sm:$0xff]   ;;  %v611_v12 = vld [vmem:[%s896_s2 + $0xa8] ss:$16 sps:$4 sm:$0xff]  }
   0x5   :  { %v612_v13 = vld [vmem:[%s896_s2 + $0x84] ss:$16 sps:$4 sm:$0xff]   ;;  %v614_v14 = vld [vmem:[%s896_s2 + $0x8c] ss:$16 sps:$4 sm:$0xff]   ;;  %v616_v15 = vld [vmem:[%s896_s2 + $0x80] ss:$16 sps:$4 sm:$0xff]  }
   0x6   :  { %v617_v16 = vld [vmem:[%s896_s2 + $0x88] ss:$16 sps:$4 sm:$0xff]   ;;  %v618_v17 = vld [vmem:[%s896_s2 + $0x64] ss:$16 sps:$4 sm:$0xff]   ;;  %v620_v18 = vld [vmem:[%s896_s2 + $0x6c] ss:$16 sps:$4 sm:$0xff]  }
   0x7   :  { %261 = vmatpush1.bf16.msra.mxu0 %v604_v7  ;;  %304 = vmatpush1.bf16.msra.mxu1 %v605_v8  ;;  %v622_v19 = vld [vmem:[%s896_s2 + $0x60] ss:$16 sps:$4 sm:$0xff]   ;;  %v623_v20 = vld [vmem:[%s896_s2 + $0x68] ss:$16 sps:$4 sm:$0xff]   ;;  %v624_v21 = vld [vmem:[%s896_s2 + $0x44] ss:$16 sps:$4 sm:$0xff]  }
   0x8   :  { %262 = vmatprep.subr.bf16.mxu0 %v606_v9  ;;  %305 = vmatprep.subr.bf16.mxu1 %v608_v10  ;;  %v626_v22 = vld [vmem:[%s896_s2 + $0x4c] ss:$16 sps:$4 sm:$0xff]   ;;  %v628_v23 = vld [vmem:[%s896_s2 + $0x40] ss:$16 sps:$4 sm:$0xff]   ;;  %v629_v24 = vld [vmem:[%s896_s2 + $0x48] ss:$16 sps:$4 sm:$0xff]  }
   0x9   :  { %v630_v25 = vld [vmem:[%s896_s2 + $0x24] ss:$16 sps:$4 sm:$0xff]   ;;  %v632_v26 = vld [vmem:[%s896_s2 + $0x2c] ss:$16 sps:$4 sm:$0xff]   ;;  %v634_v27 = vld [vmem:[%s896_s2 + $0x20] ss:$16 sps:$4 sm:$0xff]  }
   0xa   :  { %v635_v28 = vld [vmem:[%s896_s2 + $0x28] ss:$16 sps:$4 sm:$0xff]   ;;  %v636_v29 = vld [vmem:[%s896_s2 + $0x4] ss:$16 sps:$4 sm:$0xff]   ;;  %v638_v30 = vld [vmem:[%s896_s2 + $0xc] ss:$16 sps:$4 sm:$0xff]  }
   0xb   :  { %263 = vmatpush1.bf16.msra.mxu0 %v610_v11  ;;  %306 = vmatpush1.bf16.msra.mxu1 %v611_v12  ;;  %v650_v31 = vld [vmem:[%s897_s0 + $0x4] ss:$8 sps:$4 sm:$0xff]   ;;  %v640_v34 = vld [vmem:[%s896_s2] ss:$16 sps:$4 sm:$0xff]   ;;  %v641_v35 = vld [vmem:[%s896_s2 + $0x8] ss:$16 sps:$4 sm:$0xff]  }
   0xc   :  { %264 = vmatprep.subr.bf16.mxu0 %v612_v13  ;;  %307 = vmatprep.subr.bf16.mxu1 %v614_v14  ;;  %v53_v32 = vld [vmem:[%s898_s1] sm:$0xff]  ;;  %v54_v33 = vld [vmem:[%s898_s1 + $0x8] sm:$0xff] }
   0xd   :  { %57 = vperm.xlu0 %593, %v53_v32   ;;  %582 = vmatprep.mubr.msk.bf16.mxu0 %vm254_vm0, %v650_v31  ;;  %v642_v36 = vld [vmem:[%s896_s2 + $0x104] ss:$16 sps:$4 sm:$0xff]   ;;  %v644_v37 = vld [vmem:[%s896_s2 + $0x10c] ss:$16 sps:$4 sm:$0xff]   ;;  %v646_v38 = vld [vmem:[%s896_s2 + $0x100] ss:$16 sps:$4 sm:$0xff]  }
   0xe   :  { %583 = vmatprep.mubr.msk.bf16.mxu1 %vm254_vm0, %v650_v31  ;;  %v647_v39 = vld [vmem:[%s896_s2 + $0x108] ss:$16 sps:$4 sm:$0xff]  }
   0xf   :  { %265 = vmatpush1.bf16.msra.mxu0 %v616_v15  ;;  %308 = vmatpush1.bf16.msra.mxu1 %v617_v16  ;;  %v648_v40 = vld [vmem:[%s897_s0] ss:$8 sps:$4 sm:$0xff]  }
  0x10   :  { %266 = vmatprep.subr.bf16.mxu0 %v618_v17  ;;  %309 = vmatprep.subr.bf16.mxu1 %v620_v18 }
  0x11   :  { %62 = vperm.xlu0 %593, %v54_v33  }
  0x13   :  { %267 = vmatpush1.bf16.msra.mxu0 %v622_v19  ;;  %310 = vmatpush1.bf16.msra.mxu1 %v623_v20 }
  0x14   :  { %268 = vmatprep.subr.bf16.mxu0 %v624_v21  ;;  %311 = vmatprep.subr.bf16.mxu1 %v626_v22 }
  0x17   :  { %269 = vmatpush1.bf16.msra.mxu0 %v628_v23  ;;  %312 = vmatpush1.bf16.msra.mxu1 %v629_v24 }
  0x18   :  { %270 = vmatprep.subr.bf16.mxu0 %v630_v25  ;;  %313 = vmatprep.subr.bf16.mxu1 %v632_v26 }
  0x1b   :  { %271 = vmatpush1.bf16.msra.mxu0 %v634_v27  ;;  %314 = vmatpush1.bf16.msra.mxu1 %v635_v28 }
  0x1c   :  { %272 = vmatprep.subr.bf16.mxu0 %v636_v29  ;;  %315 = vmatprep.subr.bf16.mxu1 %v638_v30 }
  0x1f   :  { %273 = vmatpush1.bf16.msra.mxu0 %v640_v34  ;;  %316 = vmatpush1.bf16.msra.mxu1 %v641_v35 }
  0x20   :  { %288 = vmatprep.subr.bf16.mxu0 %v642_v36  ;;  %331 = vmatprep.subr.bf16.mxu1 %v644_v37 }
  0x23   :  { %289 = vmatpush2.bf16.msra.mxu0 %v646_v38  ;;  %332 = vmatpush2.bf16.msra.mxu1 %v647_v39 }
  0x26   :  { %291 = vmatmul.mubr.bf16.vlgmr.msra.gmra.mxu0 %v648_v40  ;;  %334 = vmatmul.mubr.bf16.vlgmr.msra.gmra.mxu1 %v648_v40 }
  0x88   :  { %v58_v41 = vpop.permute.xlu0 %57 }
  0x8c   :  { %v63_v34 = vpop.permute.xlu0 %62 }
  0xe6   :  { %v292_v42 = vpop.f32.mrf.mxu0  ;;  %v335_v43 = vpop.f32.mrf.mxu1 }
  0xe7   :  { %v808_v44 = vadd.f32 %v292_v42, %v58_v41  ;;  %v810_v45 = vadd.f32 %v335_v43, %v58_v41 }
  0xe8   :  { %v294_v46 = vpop.f32.mrf.mxu0  ;;  %v337_v47 = vpop.f32.mrf.mxu1 }
  0xe9   :  { %v344_v48 = vmul.f32 0.25103718, %v808_v44  ;;  %v424_v49 = vand.u32 2147483647, %v808_v44  ;;  %v346_v50 = vmul.f32 0.25103718, %v810_v45  ;;  %v815_v51 = vadd.f32 %v294_v46, %v58_v41 }
  0xea   :  { %v426_v52 = vand.u32 2147483647, %v810_v45  ;;  %v818_v53 = vadd.f32 %v337_v47, %v58_v41  ;;  %v296_v28 = vpop.f32.mrf.mxu0  ;;  %v339_v32 = vpop.f32.mrf.mxu1 }
  0xeb   :  { %v352_v54 = vadd.f32 1.4854801, %v344_v48  ;;  %v432_v55 = vmul.f32 0.33267534, %v424_v49  ;;  %v354_v56 = vadd.f32 1.4854801, %v346_v50  ;;  %v832_v39 = vadd.f32 %v296_v28, %v63_v34 }
  0xec   :  { %v434_v57 = vmul.f32 0.33267534, %v426_v52  ;;  %v345_v58 = vmul.f32 0.25103718, %v815_v51  ;;  %v425_v59 = vand.u32 2147483647, %v815_v51  ;;  %v834_v43 = vadd.f32 %v339_v32, %v63_v34  ;;  %v298_v46 = vpop.f32.mrf.mxu0 }
  0xed   :  { %v360_v60 = vmul.f32 %v352_v54, %v808_v44  ;;  %v440_v61 = vadd.f32 0.38976192, %v432_v55  ;;  %v347_v62 = vmul.f32 0.25103718, %v818_v53  ;;  %v362_v4 = vmul.f32 %v354_v56, %v810_v45 }
  0xee   :  { %v442_v63 = vadd.f32 0.38976192, %v434_v57  ;;  %v353_v0 = vadd.f32 1.4854801, %v345_v58  ;;  %v433_v1 = vmul.f32 0.33267534, %v425_v59  ;;  %v839_v57 = vadd.f32 %v298_v46, %v63_v34  ;;  %v341_v58 = vpop.f32.mrf.mxu1 }
  0xef   :  { %v368_v2 = vadd.f32 3.0520265, %v360_v60  ;;  %v448_v3 = vmul.f32 %v440_v61, %v424_v49  ;;  %v355_v5 = vadd.f32 1.4854801, %v347_v62  ;;  %v427_v9 = vand.u32 2147483647, %v818_v53 }
  0xf0   :  { %v450_v6 = vmul.f32 %v442_v63, %v426_v52  ;;  %v361_v7 = vmul.f32 %v353_v0, %v815_v51  ;;  %v441_v8 = vadd.f32 0.38976192, %v433_v1  ;;  %v370_v18 = vadd.f32 3.0520265, %v362_v4 }
  0xf1   :  { %v456_v10 = vadd.f32 2.3816075, %v448_v3  ;;  %v363_v11 = vmul.f32 %v355_v5, %v818_v53  ;;  %v435_v15 = vmul.f32 0.33267534, %v427_v9  ;;  %v376_v16 = vmul.f32 %v368_v2, %v808_v44 }
  0xf2   :  { %v458_v12 = vadd.f32 2.3816075, %v450_v6  ;;  %v369_v13 = vadd.f32 3.0520265, %v361_v7  ;;  %v449_v14 = vmul.f32 %v441_v8, %v425_v59  ;;  %v378_v31 = vmul.f32 %v370_v18, %v810_v45 }
  0xf3   :  { %v464_v17 = vmul.f32 %v456_v10, %v424_v49  ;;  %v443_v21 = vadd.f32 0.38976192, %v435_v15  ;;  %v371_v23 = vadd.f32 3.0520265, %v363_v11  ;;  %v384_v29 = vadd.f32 2.323352, %v376_v16 }
  0xf4   :  { %v466_v19 = vmul.f32 %v458_v12, %v426_v52  ;;  %v457_v20 = vadd.f32 2.3816075, %v449_v14  ;;  %v377_v25 = vmul.f32 %v369_v13, %v815_v51  ;;  %v386_v48 = vadd.f32 2.323352, %v378_v31 }
  0xf5   :  { %v472_v22 = vadd.f32 1.1413246, %v464_v17  ;;  %v451_v27 = vmul.f32 %v443_v21, %v427_v9  ;;  %v379_v38 = vmul.f32 %v371_v23, %v818_v53  ;;  %v392_v47 = vmul.f32 %v384_v29, %v808_v44 }
  0xf6   :  { %v474_v24 = vadd.f32 1.1413246, %v466_v19  ;;  %v465_v26 = vmul.f32 %v457_v20, %v425_v59  ;;  %v385_v40 = vadd.f32 2.323352, %v377_v25  ;;  %v348_v55 = vmul.f32 0.25103718, %v832_v39 }
  0xf7   :  { %v480_v30 = vmul.f32 %v472_v22, %v424_v49  ;;  %v459_v36 = vadd.f32 2.3816075, %v451_v27  ;;  %v387_v54 = vadd.f32 2.323352, %v379_v38  ;;  %v428_v56 = vand.u32 2147483647, %v832_v39 }
  0xf8   :  { %v482_v33 = vmul.f32 %v474_v24, %v426_v52  ;;  %v473_v35 = vadd.f32 1.1413246, %v465_v26  ;;  %v843_v61 = vand.u32 2147483647, %v834_v43  ;;  %v400_v62 = vadd.f32 0.6183774, %v392_v47 }
  0xf9   :  { %v488_v37 = vadd.f32 1.0, %v480_v30  ;;  %v467_v42 = vmul.f32 %v459_v36, %v427_v9  ;;  %v394_v63 = vmul.f32 %v386_v48, %v810_v45  ;;  %v356_v0 = vadd.f32 1.4854801, %v348_v55 }
  0xfa   :  { %v481_v41 = vmul.f32 %v473_v35, %v425_v59  ;;  %v490_v49 = vadd.f32 1.0, %v482_v33  ;;  %v393_v59 = vmul.f32 %v385_v40, %v815_v51  ;;  %v436_v1 = vmul.f32 0.33267534, %v428_v56 }
  0xfb   :  { %651 = vrcp.f32 %v488_v37  ;;  %v475_v52 = vadd.f32 1.1413246, %v467_v42  ;;  %v438_v3 = vmul.f32 0.33267534, %v843_v61  ;;  %v847_v4 = vadd.f32 %v341_v58, %v63_v34 }
  0xfc   :  { %v489_v50 = vadd.f32 1.0, %v481_v41  ;;  %v444_v5 = vadd.f32 0.38976192, %v436_v1  ;;  %v349_v6 = vmul.f32 0.25103718, %v839_v57  ;;  %v364_v11 = vmul.f32 %v356_v0, %v832_v39 }
  0xfd   :  { %v483_v60 = vmul.f32 %v475_v52, %v427_v9  ;;  %v429_v7 = vand.u32 2147483647, %v839_v57  ;;  %v401_v8 = vadd.f32 0.6183774, %v393_v59  ;;  %v395_v9 = vmul.f32 %v387_v54, %v818_v53 }
  0xfe   :  { %653 = vrcp.f32 %v489_v50  ;;  %v446_v10 = vadd.f32 0.38976192, %v438_v3  ;;  %v452_v12 = vmul.f32 %v444_v5, %v428_v56  ;;  %v357_v13 = vadd.f32 1.4854801, %v349_v6 }
  0xff   :  { %655 = vrcp.f32 %v490_v49  ;;  %v491_v2 = vadd.f32 1.0, %v483_v60  ;;  %v437_v14 = vmul.f32 0.33267534, %v429_v7  ;;  %v402_v15 = vadd.f32 0.6183774, %v394_v63 }
 0x100   :  { %v350_v16 = vmul.f32 0.25103718, %v834_v43  ;;  %v454_v17 = vmul.f32 %v446_v10, %v843_v61  ;;  %v351_v18 = vmul.f32 0.25103718, %v847_v4  ;;  %v460_v19 = vadd.f32 2.3816075, %v452_v12 }
 0x101   :  { %657 = vrcp.f32 %v491_v2  ;;  %v365_v20 = vmul.f32 %v357_v13, %v839_v57  ;;  %v445_v21 = vadd.f32 0.38976192, %v437_v14  ;;  %v858_v22 = vand.u32 2147483647, %v847_v4 }
 0x102   :  { %v408_v23 = vmul.f32 %v400_v62, %v808_v44  ;;  %v409_v24 = vmul.f32 %v401_v8, %v815_v51  ;;  %v403_v25 = vadd.f32 0.6183774, %v395_v9  ;;  %v372_v26 = vadd.f32 3.0520265, %v364_v11 }
 0x103   :  { %v468_v27 = vmul.f32 %v460_v19, %v428_v56  ;;  %v462_v28 = vadd.f32 2.3816075, %v454_v17  ;;  %v453_v29 = vmul.f32 %v445_v21, %v429_v7  ;;  %v358_v30 = vadd.f32 1.4854801, %v350_v16 }
 0x104   :  { %v373_v31 = vadd.f32 3.0520265, %v365_v20  ;;  %v410_v33 = vmul.f32 %v402_v15, %v810_v45  ;;  %v359_v35 = vadd.f32 1.4854801, %v351_v18  ;;  %v439_v36 = vmul.f32 0.33267534, %v858_v22 }
 0x105   :  { %v476_v34 = vadd.f32 1.1413246, %v468_v27  ;;  %v416_v37 = vadd.f32 0.02979246, %v408_v23  ;;  %v417_v38 = vadd.f32 0.02979246, %v409_v24  ;;  %v411_v44 = vmul.f32 %v403_v25, %v818_v53 }
 0x106   :  { %v461_v40 = vadd.f32 2.3816075, %v453_v29  ;;  %v380_v41 = vmul.f32 %v372_v26, %v832_v39  ;;  %v470_v46 = vmul.f32 %v462_v28, %v843_v61  ;;  %v381_v49 = vmul.f32 %v373_v31, %v839_v57 }
 0x107   :  { %v484_v42 = vmul.f32 %v476_v34, %v428_v56  ;;  %v418_v52 = vadd.f32 0.02979246, %v410_v33  ;;  %v366_v54 = vmul.f32 %v358_v30, %v834_v43  ;;  %v367_v55 = vmul.f32 %v359_v35, %v847_v4 }
 0x108   :  { %v652_v32 = vpop.eup %651  ;;  %v469_v45 = vmul.f32 %v461_v40, %v429_v7  ;;  %v447_v58 = vadd.f32 0.38976192, %v439_v36  ;;  %v419_v59 = vadd.f32 0.02979246, %v411_v44  ;;  %v388_v56 = vadd.f32 2.323352, %v380_v41 }
 0x109   :  { %v504_v47 = vmul.f32 %v652_v32, %v416_v37  ;;  %v492_v60 = vadd.f32 1.0, %v484_v42  ;;  %v478_v0 = vadd.f32 1.1413246, %v470_v46  ;;  %v389_v3 = vadd.f32 2.323352, %v381_v49 }
 0x10a   :  { %v477_v62 = vadd.f32 1.1413246, %v469_v45  ;;  %v374_v6 = vadd.f32 3.0520265, %v366_v54  ;;  %v375_v8 = vadd.f32 3.0520265, %v367_v55  ;;  %v455_v9 = vmul.f32 %v447_v58, %v858_v22 }
 0x10b   :  { %v654_v51 = vpop.eup %653  ;;  %659 = vrcp.f32 %v492_v60  ;;  %v486_v12 = vmul.f32 %v478_v0, %v843_v61  ;;  %v396_v14 = vmul.f32 %v388_v56, %v832_v39  ;;  %v397_v15 = vmul.f32 %v389_v3, %v839_v57 }
 0x10c   :  { %v505_v48 = vmul.f32 %v654_v51, %v417_v38  ;;  %v656_v50 = vpop.eup %655  ;;  %v485_v5 = vmul.f32 %v477_v62, %v429_v7  ;;  %v463_v13 = vadd.f32 2.3816075, %v455_v9  ;;  %v382_v7 = vmul.f32 %v374_v6, %v834_v43 }
 0x10d   :  { %v506_v1 = vmul.f32 %v656_v50, %v418_v52  ;;  %v383_v16 = vmul.f32 %v375_v8, %v847_v4  ;;  %v494_v18 = vadd.f32 1.0, %v486_v12  ;;  %v404_v20 = vadd.f32 0.6183774, %v396_v14 }
 0x10e   :  { %v588_v53 = vpack.c.bf16 %v505_v48, %v504_v47  ;;  %v658_v63 = vpop.eup %657  ;;  %v493_v11 = vadd.f32 1.0, %v485_v5  ;;  %v471_v17 = vmul.f32 %v463_v13, %v858_v22  ;;  %v405_v61 = vadd.f32 0.6183774, %v397_v15 }
 0x10f   :  { %v507_v2 = vmul.f32 %v658_v63, %v419_v59  ;;  %v390_v21 = vadd.f32 2.323352, %v382_v7  ;;  %v391_v23 = vadd.f32 2.323352, %v383_v16  ;;  %v412_v26 = vmul.f32 %v404_v20, %v832_v39 }
 0x110   :  { %536 = vst [vmem:[%s899_s3] sm:$0xff] %v588_v53  ;;  %661 = vrcp.f32 %v493_v11  ;;  %v479_v19 = vadd.f32 1.1413246, %v471_v17  ;;  %v413_v27 = vmul.f32 %v405_v61, %v839_v57 }
 0x111   :  { %v589_v10 = vpack.c.bf16 %v507_v2, %v506_v1  ;;  %663 = vrcp.f32 %v494_v18  ;;  %v398_v28 = vmul.f32 %v390_v21, %v834_v43  ;;  %v399_v29 = vmul.f32 %v391_v23, %v847_v4 }
 0x112   :  { %v487_v24 = vmul.f32 %v479_v19, %v858_v22  ;;  %v420_v31 = vadd.f32 0.02979246, %v412_v26  ;;  %v421_v32 = vadd.f32 0.02979246, %v413_v27 }
 0x113   :  { %537 = vst [vmem:[%s899_s3 + $0x8] sm:$0xff] %v589_v10  ;;  %v406_v34 = vadd.f32 0.6183774, %v398_v28  ;;  %v407_v35 = vadd.f32 0.6183774, %v399_v29 }
 0x114   :  { %v495_v25 = vadd.f32 1.0, %v487_v24 }
 0x115   :  { %v414_v38 = vmul.f32 %v406_v34, %v834_v43  ;;  %v415_v39 = vmul.f32 %v407_v35, %v847_v4 }
 0x116   :  { %665 = vrcp.f32 %v495_v25 }
 0x117   :  { %v422_v44 = vadd.f32 0.02979246, %v414_v38  ;;  %v423_v40 = vadd.f32 0.02979246, %v415_v39 }
 0x118   :  { %v660_v30 = vpop.eup %659 }
 0x119   :  { %v508_v36 = vmul.f32 %v660_v30, %v420_v31 }
 0x11d   :  { %v662_v33 = vpop.eup %661 }
 0x11e   :  { %v509_v37 = vmul.f32 %v662_v33, %v421_v32  ;;  %v664_v57 = vpop.eup %663 }
 0x11f   :  { %v510_v41 = vmul.f32 %v664_v57, %v422_v44 }
 0x120   :  { %v590_v22 = vpack.c.bf16 %v509_v37, %v508_v36 }
 0x122   :  { %538 = vst [vmem:[%s899_s3 + $0x10] sm:$0xff] %v590_v22 }
 0x123   :  { %v666_v51 = vpop.eup %665 }
 0x124   :  { %v511_v42 = vmul.f32 %v666_v51, %v423_v40 }
 0x126   :  { %v591_v46 = vpack.c.bf16 %v511_v42, %v510_v41 }
 0x128   :  { %539 = vst [vmem:[%s899_s3 + $0x18] sm:$0xff] %v591_v46 }

// kernel: _lambda_.9
= control target key start
LH: loop header
LB: loop body
LE: loop exit
PB: predicated region body
PF: predicated region fallthrough
CT: control target
= control target key end

     0   :  { %v690_v1 = vmov 0   ;;  %vm257_vm0 = vcmask 130048   ;;  %s944_s2 = inlined_call_operand.vmem [shape: bf16[144,512], index: 2, kind: input, shape index: {}]   ;;  %s945_s0 = inlined_call_operand.vmem [shape: bf16[16,144], index: 0, kind: input, shape index: {}]   ;;  %s946_s1 = inlined_call_operand.vmem [shape: f32[16,1], index: 1, kind: input, shape index: {}]   ;;  %s947_s3 = inlined_call_operand.vmem [shape: bf16[16,512], index: 3, kind: input, shape index: {}]   ;;  %s948_s4 = inlined_call_operand.vmem [shape: bf16[16,512], index: 4, kind: output, shape index: {}]  }
   0x1   :  { %v617_v0 = vld [vmem:[%s944_s2 + $0xe4] ss:$16 sps:$4 sm:$0xff]   ;;  %616 = vset.pattern.permute.xlu0 %v690_v1  ;;  %v619_v2 = vld [vmem:[%s944_s2 + $0xec] ss:$16 sps:$4 sm:$0xff]   ;;  %v621_v3 = vld [vmem:[%s944_s2 + $0xe0] ss:$16 sps:$4 sm:$0xff]  }
   0x2   :  { %261 = vmatprep.subr.bf16.mxu0 %v617_v0  ;;  %v622_v4 = vld [vmem:[%s944_s2 + $0xe8] ss:$16 sps:$4 sm:$0xff]   ;;  %304 = vmatprep.subr.bf16.mxu1 %v619_v2  ;;  %v623_v5 = vld [vmem:[%s944_s2 + $0xc4] ss:$16 sps:$4 sm:$0xff]   ;;  %v625_v6 = vld [vmem:[%s944_s2 + $0xcc] ss:$16 sps:$4 sm:$0xff]  }
   0x3   :  { %262 = vmatpush1.bf16.msra.mxu0 %v621_v3  ;;  %305 = vmatpush1.bf16.msra.mxu1 %v622_v4  ;;  %v627_v7 = vld [vmem:[%s944_s2 + $0xc0] ss:$16 sps:$4 sm:$0xff]   ;;  %v628_v8 = vld [vmem:[%s944_s2 + $0xc8] ss:$16 sps:$4 sm:$0xff]   ;;  %v629_v9 = vld [vmem:[%s944_s2 + $0xa4] ss:$16 sps:$4 sm:$0xff]  }
   0x4   :  { %263 = vmatprep.subr.bf16.mxu0 %v623_v5  ;;  %306 = vmatprep.subr.bf16.mxu1 %v625_v6  ;;  %v631_v10 = vld [vmem:[%s944_s2 + $0xac] ss:$16 sps:$4 sm:$0xff]   ;;  %v633_v11 = vld [vmem:[%s944_s2 + $0xa0] ss:$16 sps:$4 sm:$0xff]   ;;  %v634_v12 = vld [vmem:[%s944_s2 + $0xa8] ss:$16 sps:$4 sm:$0xff]  }
   0x5   :  { %v635_v13 = vld [vmem:[%s944_s2 + $0x84] ss:$16 sps:$4 sm:$0xff]   ;;  %v637_v14 = vld [vmem:[%s944_s2 + $0x8c] ss:$16 sps:$4 sm:$0xff]   ;;  %v639_v15 = vld [vmem:[%s944_s2 + $0x80] ss:$16 sps:$4 sm:$0xff]  }
   0x6   :  { %v640_v16 = vld [vmem:[%s944_s2 + $0x88] ss:$16 sps:$4 sm:$0xff]   ;;  %v641_v17 = vld [vmem:[%s944_s2 + $0x64] ss:$16 sps:$4 sm:$0xff]   ;;  %v643_v18 = vld [vmem:[%s944_s2 + $0x6c] ss:$16 sps:$4 sm:$0xff]  }
   0x7   :  { %264 = vmatpush1.bf16.msra.mxu0 %v627_v7  ;;  %307 = vmatpush1.bf16.msra.mxu1 %v628_v8  ;;  %v645_v19 = vld [vmem:[%s944_s2 + $0x60] ss:$16 sps:$4 sm:$0xff]   ;;  %v646_v20 = vld [vmem:[%s944_s2 + $0x68] ss:$16 sps:$4 sm:$0xff]   ;;  %v647_v21 = vld [vmem:[%s944_s2 + $0x44] ss:$16 sps:$4 sm:$0xff]  }
   0x8   :  { %265 = vmatprep.subr.bf16.mxu0 %v629_v9  ;;  %308 = vmatprep.subr.bf16.mxu1 %v631_v10  ;;  %v649_v22 = vld [vmem:[%s944_s2 + $0x4c] ss:$16 sps:$4 sm:$0xff]   ;;  %v651_v23 = vld [vmem:[%s944_s2 + $0x40] ss:$16 sps:$4 sm:$0xff]   ;;  %v652_v24 = vld [vmem:[%s944_s2 + $0x48] ss:$16 sps:$4 sm:$0xff]  }
   0x9   :  { %v653_v25 = vld [vmem:[%s944_s2 + $0x24] ss:$16 sps:$4 sm:$0xff]   ;;  %v655_v26 = vld [vmem:[%s944_s2 + $0x2c] ss:$16 sps:$4 sm:$0xff]   ;;  %v657_v27 = vld [vmem:[%s944_s2 + $0x20] ss:$16 sps:$4 sm:$0xff]  }
   0xa   :  { %v658_v28 = vld [vmem:[%s944_s2 + $0x28] ss:$16 sps:$4 sm:$0xff]   ;;  %v659_v29 = vld [vmem:[%s944_s2 + $0x4] ss:$16 sps:$4 sm:$0xff]   ;;  %v661_v30 = vld [vmem:[%s944_s2 + $0xc] ss:$16 sps:$4 sm:$0xff]  }
   0xb   :  { %266 = vmatpush1.bf16.msra.mxu0 %v633_v11  ;;  %309 = vmatpush1.bf16.msra.mxu1 %v634_v12  ;;  %v673_v31 = vld [vmem:[%s945_s0 + $0x4] ss:$8 sps:$4 sm:$0xff]   ;;  %v663_v34 = vld [vmem:[%s944_s2] ss:$16 sps:$4 sm:$0xff]   ;;  %v664_v35 = vld [vmem:[%s944_s2 + $0x8] ss:$16 sps:$4 sm:$0xff]  }
   0xc   :  { %267 = vmatprep.subr.bf16.mxu0 %v635_v13  ;;  %310 = vmatprep.subr.bf16.mxu1 %v637_v14  ;;  %v56_v32 = vld [vmem:[%s946_s1] sm:$0xff]  ;;  %v57_v33 = vld [vmem:[%s946_s1 + $0x8] sm:$0xff] }
   0xd   :  { %60 = vperm.xlu0 %616, %v56_v32   ;;  %605 = vmatprep.mubr.msk.bf16.mxu0 %vm257_vm0, %v673_v31  ;;  %v665_v36 = vld [vmem:[%s944_s2 + $0x104] ss:$16 sps:$4 sm:$0xff]   ;;  %v667_v37 = vld [vmem:[%s944_s2 + $0x10c] ss:$16 sps:$4 sm:$0xff]   ;;  %v669_v38 = vld [vmem:[%s944_s2 + $0x100] ss:$16 sps:$4 sm:$0xff]  }
   0xe   :  { %606 = vmatprep.mubr.msk.bf16.mxu1 %vm257_vm0, %v673_v31  ;;  %v670_v39 = vld [vmem:[%s944_s2 + $0x108] ss:$16 sps:$4 sm:$0xff]   ;;  %v347_v41 = vld [vmem:[%s947_s3] sm:$0xff] }
   0xf   :  { %268 = vmatpush1.bf16.msra.mxu0 %v639_v15  ;;  %311 = vmatpush1.bf16.msra.mxu1 %v640_v16  ;;  %v671_v40 = vld [vmem:[%s945_s0] ss:$8 sps:$4 sm:$0xff]   ;;  %v351_v44 = vunpack.c.l.bf16 %v347_v41  ;;  %v352_v50 = vunpack.c.h.bf16 %v347_v41 }
  0x10   :  { %269 = vmatprep.subr.bf16.mxu0 %v641_v17  ;;  %312 = vmatprep.subr.bf16.mxu1 %v643_v18  ;;  %v348_v42 = vld [vmem:[%s947_s3 + $0x8] sm:$0xff] }
  0x11   :  { %65 = vperm.xlu0 %616, %v57_v33   ;;  %v353_v45 = vunpack.c.l.bf16 %v348_v42  ;;  %v354_v53 = vunpack.c.h.bf16 %v348_v42 }
  0x13   :  { %270 = vmatpush1.bf16.msra.mxu0 %v645_v19  ;;  %313 = vmatpush1.bf16.msra.mxu1 %v646_v20  ;;  %v864_v20 = vld [vmem:[%s947_s3 + $0x10] sm:$0xff] }
  0x14   :  { %271 = vmatprep.subr.bf16.mxu0 %v647_v21  ;;  %314 = vmatprep.subr.bf16.mxu1 %v649_v22  ;;  %v869_v21 = vld [vmem:[%s947_s3 + $0x18] sm:$0xff] }
  0x17   :  { %272 = vmatpush1.bf16.msra.mxu0 %v651_v23  ;;  %315 = vmatpush1.bf16.msra.mxu1 %v652_v24 }
  0x18   :  { %273 = vmatprep.subr.bf16.mxu0 %v653_v25  ;;  %316 = vmatprep.subr.bf16.mxu1 %v655_v26 }
  0x1b   :  { %274 = vmatpush1.bf16.msra.mxu0 %v657_v27  ;;  %317 = vmatpush1.bf16.msra.mxu1 %v658_v28 }
  0x1c   :  { %275 = vmatprep.subr.bf16.mxu0 %v659_v29  ;;  %318 = vmatprep.subr.bf16.mxu1 %v661_v30 }
  0x1f   :  { %276 = vmatpush1.bf16.msra.mxu0 %v663_v34  ;;  %319 = vmatpush1.bf16.msra.mxu1 %v664_v35  ;;  %v355_v34 = vunpack.c.l.bf16 %v864_v20  ;;  %v357_v35 = vunpack.c.l.bf16 %v869_v21 }
  0x20   :  { %291 = vmatprep.subr.bf16.mxu0 %v665_v36  ;;  %334 = vmatprep.subr.bf16.mxu1 %v667_v37 }
  0x23   :  { %292 = vmatpush2.bf16.msra.mxu0 %v669_v38  ;;  %335 = vmatpush2.bf16.msra.mxu1 %v670_v39 }
  0x26   :  { %294 = vmatmul.mubr.bf16.vlgmr.msra.gmra.mxu0 %v671_v40  ;;  %337 = vmatmul.mubr.bf16.vlgmr.msra.gmra.mxu1 %v671_v40 }
  0x88   :  { %v61_v43 = vpop.permute.xlu0 %60 }
  0x8c   :  { %v66_v33 = vpop.permute.xlu0 %65 }
  0xe6   :  { %v295_v46 = vpop.f32.mrf.mxu0  ;;  %v338_v47 = vpop.f32.mrf.mxu1 }
  0xe7   :  { %v296_v48 = vadd.f32 %v295_v46, %v61_v43  ;;  %v339_v49 = vadd.f32 %v338_v47, %v61_v43 }
  0xe8   :  { %v297_v51 = vpop.f32.mrf.mxu0  ;;  %v340_v52 = vpop.f32.mrf.mxu1 }
  0xe9   :  { %v842_v54 = vadd.f32 %v351_v44, %v296_v48  ;;  %v844_v55 = vadd.f32 %v353_v45, %v339_v49  ;;  %v298_v56 = vadd.f32 %v297_v51, %v61_v43  ;;  %v341_v57 = vadd.f32 %v340_v52, %v61_v43 }
  0xea   :  { %v299_v25 = vpop.f32.mrf.mxu0  ;;  %v342_v30 = vpop.f32.mrf.mxu1 }
  0xeb   :  { %v367_v58 = vmul.f32 0.25103718, %v842_v54  ;;  %v447_v59 = vand.u32 2147483647, %v842_v54  ;;  %v369_v60 = vmul.f32 0.25103718, %v844_v55  ;;  %v849_v61 = vadd.f32 %v352_v50, %v298_v56 }
  0xec   :  { %v449_v62 = vand.u32 2147483647, %v844_v55  ;;  %v852_v63 = vadd.f32 %v354_v53, %v341_v57  ;;  %v300_v39 = vadd.f32 %v299_v25, %v66_v33  ;;  %v343_v43 = vadd.f32 %v342_v30, %v66_v33  ;;  %v301_v53 = vpop.f32.mrf.mxu0 }
  0xed   :  { %v375_v0 = vadd.f32 1.4854801, %v367_v58  ;;  %v455_v1 = vmul.f32 0.33267534, %v447_v59  ;;  %v377_v2 = vadd.f32 1.4854801, %v369_v60 }
  0xee   :  { %v457_v3 = vmul.f32 0.33267534, %v449_v62  ;;  %v368_v4 = vmul.f32 0.25103718, %v849_v61  ;;  %v448_v5 = vand.u32 2147483647, %v849_v61  ;;  %v878_v60 = vadd.f32 %v355_v34, %v300_v39 }
  0xef   :  { %v383_v6 = vmul.f32 %v375_v0, %v842_v54  ;;  %v463_v7 = vadd.f32 0.38976192, %v455_v1  ;;  %v385_v8 = vmul.f32 %v377_v2, %v844_v55  ;;  %v370_v9 = vmul.f32 0.25103718, %v852_v63 }
  0xf0   :  { %v465_v10 = vadd.f32 0.38976192, %v457_v3  ;;  %v376_v11 = vadd.f32 1.4854801, %v368_v4  ;;  %v456_v12 = vmul.f32 0.33267534, %v448_v5  ;;  %v880_v3 = vadd.f32 %v357_v35, %v343_v43 }
  0xf1   :  { %v391_v13 = vadd.f32 3.0520265, %v383_v6  ;;  %v471_v14 = vmul.f32 %v463_v7, %v447_v59  ;;  %v378_v15 = vadd.f32 1.4854801, %v370_v9  ;;  %v450_v19 = vand.u32 2147483647, %v852_v63 }
  0xf2   :  { %v473_v16 = vmul.f32 %v465_v10, %v449_v62  ;;  %v384_v17 = vmul.f32 %v376_v11, %v849_v61  ;;  %v464_v18 = vadd.f32 0.38976192, %v456_v12  ;;  %v393_v23 = vadd.f32 3.0520265, %v385_v8 }
  0xf3   :  { %v479_v22 = vadd.f32 2.3816075, %v471_v14  ;;  %v386_v24 = vmul.f32 %v378_v15, %v852_v63  ;;  %v458_v29 = vmul.f32 0.33267534, %v450_v19  ;;  %v399_v31 = vmul.f32 %v391_v13, %v842_v54  ;;  %v344_v13 = vpop.f32.mrf.mxu1 }
  0xf4   :  { %v481_v26 = vadd.f32 2.3816075, %v473_v16  ;;  %v392_v27 = vadd.f32 3.0520265, %v384_v17  ;;  %v472_v28 = vmul.f32 %v464_v18, %v448_v5  ;;  %v401_v41 = vmul.f32 %v393_v23, %v844_v55 }
  0xf5   :  { %v487_v32 = vmul.f32 %v479_v22, %v447_v59  ;;  %v466_v38 = vadd.f32 0.38976192, %v458_v29  ;;  %v394_v42 = vadd.f32 3.0520265, %v386_v24  ;;  %v407_v48 = vadd.f32 2.323352, %v399_v31 }
  0xf6   :  { %v489_v36 = vmul.f32 %v481_v26, %v449_v62  ;;  %v480_v37 = vadd.f32 2.3816075, %v472_v28  ;;  %v400_v45 = vmul.f32 %v392_v27, %v849_v61  ;;  %v409_v57 = vadd.f32 2.323352, %v401_v41 }
  0xf7   :  { %v495_v40 = vadd.f32 1.1413246, %v487_v32  ;;  %v474_v47 = vmul.f32 %v466_v38, %v450_v19  ;;  %v402_v58 = vmul.f32 %v394_v42, %v852_v63  ;;  %v415_v4 = vmul.f32 %v407_v48, %v842_v54 }
  0xf8   :  { %v497_v44 = vadd.f32 1.1413246, %v489_v36  ;;  %v488_v46 = vmul.f32 %v480_v37, %v448_v5  ;;  %v408_v0 = vadd.f32 2.323352, %v400_v45  ;;  %v302_v6 = vadd.f32 %v301_v53, %v66_v33 }
  0xf9   :  { %v503_v49 = vmul.f32 %v495_v40, %v447_v59  ;;  %v482_v52 = vadd.f32 2.3816075, %v474_v47  ;;  %v356_v59 = vunpack.c.h.bf16 %v864_v20  ;;  %v417_v10 = vmul.f32 %v409_v57, %v844_v55 }
  0xfa   :  { %v505_v50 = vmul.f32 %v497_v44, %v449_v62  ;;  %v496_v51 = vadd.f32 1.1413246, %v488_v46  ;;  %v358_v62 = vunpack.c.h.bf16 %v869_v21  ;;  %v410_v11 = vadd.f32 2.323352, %v402_v58 }
  0xfb   :  { %v511_v56 = vadd.f32 1.0, %v503_v49  ;;  %v490_v2 = vmul.f32 %v482_v52, %v450_v19  ;;  %v371_v12 = vmul.f32 0.25103718, %v878_v60  ;;  %v416_v14 = vmul.f32 %v408_v0, %v849_v61 }
  0xfc   :  { %v504_v1 = vmul.f32 %v496_v51, %v448_v5  ;;  %v513_v7 = vadd.f32 1.0, %v505_v50  ;;  %v451_v5 = vand.u32 2147483647, %v878_v60  ;;  %v890_v16 = vand.u32 2147483647, %v880_v3 }
  0xfd   :  { %674 = vrcp.f32 %v511_v56  ;;  %v498_v9 = vadd.f32 1.1413246, %v490_v2  ;;  %v423_v17 = vadd.f32 0.6183774, %v415_v4  ;;  %v379_v18 = vadd.f32 1.4854801, %v371_v12 }
  0xfe   :  { %v512_v8 = vadd.f32 1.0, %v504_v1  ;;  %v459_v20 = vmul.f32 0.33267534, %v451_v5  ;;  %v892_v21 = vadd.f32 %v356_v59, %v302_v6  ;;  %v461_v23 = vmul.f32 0.33267534, %v890_v16 }
  0xff   :  { %v506_v15 = vmul.f32 %v498_v9, %v450_v19  ;;  %v345_v24 = vadd.f32 %v344_v13, %v66_v33  ;;  %v418_v25 = vmul.f32 %v410_v11, %v852_v63  ;;  %v424_v28 = vadd.f32 0.6183774, %v416_v14 }
 0x100   :  { %676 = vrcp.f32 %v512_v8  ;;  %v467_v26 = vadd.f32 0.38976192, %v459_v20  ;;  %v372_v27 = vmul.f32 0.25103718, %v892_v21  ;;  %v452_v19 = vand.u32 2147483647, %v892_v21 }
 0x101   :  { %678 = vrcp.f32 %v513_v7  ;;  %v514_v22 = vadd.f32 1.0, %v506_v15  ;;  %v469_v29 = vadd.f32 0.38976192, %v461_v23  ;;  %v898_v30 = vadd.f32 %v358_v62, %v345_v24 }
 0x102   :  { %v387_v31 = vmul.f32 %v379_v18, %v878_v60  ;;  %v475_v32 = vmul.f32 %v467_v26, %v451_v5  ;;  %v380_v34 = vadd.f32 1.4854801, %v372_v27  ;;  %v460_v35 = vmul.f32 0.33267534, %v452_v19 }
 0x103   :  { %680 = vrcp.f32 %v514_v22  ;;  %v425_v36 = vadd.f32 0.6183774, %v417_v10  ;;  %v373_v33 = vmul.f32 0.25103718, %v880_v3  ;;  %v477_v37 = vmul.f32 %v469_v29, %v890_v16 }
 0x104   :  { %v374_v38 = vmul.f32 0.25103718, %v898_v30  ;;  %v483_v39 = vadd.f32 2.3816075, %v475_v32  ;;  %v388_v40 = vmul.f32 %v380_v34, %v892_v21  ;;  %v468_v41 = vadd.f32 0.38976192, %v460_v35 }
 0x105   :  { %v906_v42 = vand.u32 2147483647, %v898_v30  ;;  %v431_v43 = vmul.f32 %v423_v17, %v842_v54  ;;  %v432_v44 = vmul.f32 %v424_v28, %v849_v61  ;;  %v426_v45 = vadd.f32 0.6183774, %v418_v25 }
 0x106   :  { %v395_v46 = vadd.f32 3.0520265, %v387_v31  ;;  %v491_v47 = vmul.f32 %v483_v39, %v451_v5  ;;  %v485_v48 = vadd.f32 2.3816075, %v477_v37  ;;  %v476_v49 = vmul.f32 %v468_v41, %v452_v19 }
 0x107   :  { %v381_v50 = vadd.f32 1.4854801, %v373_v33  ;;  %v396_v51 = vadd.f32 3.0520265, %v388_v40  ;;  %v433_v53 = vmul.f32 %v425_v36, %v844_v55  ;;  %v382_v57 = vadd.f32 1.4854801, %v374_v38 }
 0x108   :  { %v499_v56 = vadd.f32 1.1413246, %v491_v47  ;;  %v462_v58 = vmul.f32 0.33267534, %v906_v42  ;;  %v439_v0 = vadd.f32 0.02979246, %v431_v43  ;;  %v434_v54 = vmul.f32 %v426_v45, %v852_v63 }
 0x109   :  { %v440_v1 = vadd.f32 0.02979246, %v432_v44  ;;  %v484_v2 = vadd.f32 2.3816075, %v476_v49  ;;  %v403_v4 = vmul.f32 %v395_v46, %v878_v60  ;;  %v493_v59 = vmul.f32 %v485_v48, %v890_v16 }
 0x10a   :  { %v675_v52 = vpop.eup %674  ;;  %v507_v6 = vmul.f32 %v499_v56, %v451_v5  ;;  %v404_v8 = vmul.f32 %v396_v51, %v892_v21  ;;  %v441_v10 = vadd.f32 0.02979246, %v433_v53  ;;  %v389_v11 = vmul.f32 %v381_v50, %v880_v3 }
 0x10b   :  { %v527_v62 = vmul.f32 %v675_v52, %v439_v0  ;;  %v492_v55 = vmul.f32 %v484_v2, %v452_v19  ;;  %v390_v12 = vmul.f32 %v382_v57, %v898_v30  ;;  %v470_v13 = vadd.f32 0.38976192, %v462_v58 }
 0x10c   :  { %v442_v14 = vadd.f32 0.02979246, %v434_v54  ;;  %v515_v15 = vadd.f32 1.0, %v507_v6  ;;  %v411_v5 = vadd.f32 2.323352, %v403_v4 }
 0x10d   :  { %v677_v61 = vpop.eup %676  ;;  %v500_v17 = vadd.f32 1.1413246, %v492_v55  ;;  %v501_v20 = vadd.f32 1.1413246, %v493_v59  ;;  %v412_v24 = vadd.f32 2.323352, %v404_v8  ;;  %v478_v28 = vmul.f32 %v470_v13, %v906_v42 }
 0x10e   :  { %v528_v7 = vmul.f32 %v677_v61, %v440_v1  ;;  %v679_v9 = vpop.eup %678  ;;  %v397_v26 = vadd.f32 3.0520265, %v389_v11  ;;  %v398_v27 = vadd.f32 3.0520265, %v390_v12  ;;  %682 = vrcp.f32 %v515_v15 }
 0x10f   :  { %v529_v22 = vmul.f32 %v679_v9, %v441_v10  ;;  %v508_v25 = vmul.f32 %v500_v17, %v452_v19  ;;  %v509_v32 = vmul.f32 %v501_v20, %v890_v16  ;;  %v486_v34 = vadd.f32 2.3816075, %v478_v28 }
 0x110   :  { %v611_v63 = vpack.c.bf16 %v528_v7, %v527_v62  ;;  %v681_v18 = vpop.eup %680  ;;  %v419_v35 = vmul.f32 %v411_v5, %v878_v60  ;;  %v420_v36 = vmul.f32 %v412_v24, %v892_v21  ;;  %v405_v19 = vmul.f32 %v397_v26, %v880_v3 }
 0x111   :  { %v530_v23 = vmul.f32 %v681_v18, %v442_v14  ;;  %v516_v31 = vadd.f32 1.0, %v508_v25  ;;  %v406_v33 = vmul.f32 %v398_v27, %v898_v30  ;;  %v494_v37 = vmul.f32 %v486_v34, %v906_v42 }
 0x112   :  { %559 = vst [vmem:[%s948_s4] sm:$0xff] %v611_v63  ;;  %v517_v38 = vadd.f32 1.0, %v509_v32  ;;  %v427_v40 = vadd.f32 0.6183774, %v419_v35  ;;  %v428_v16 = vadd.f32 0.6183774, %v420_v36 }
 0x113   :  { %v612_v29 = vpack.c.bf16 %v530_v23, %v529_v22  ;;  %684 = vrcp.f32 %v516_v31  ;;  %v502_v39 = vadd.f32 1.1413246, %v494_v37  ;;  %v413_v41 = vadd.f32 2.323352, %v405_v19 }
 0x114   :  { %v414_v43 = vadd.f32 2.323352, %v406_v33  ;;  %686 = vrcp.f32 %v517_v38  ;;  %v435_v46 = vmul.f32 %v427_v40, %v878_v60  ;;  %v436_v47 = vmul.f32 %v428_v16, %v892_v21 }
 0x115   :  { %560 = vst [vmem:[%s948_s4 + $0x8] sm:$0xff] %v612_v29  ;;  %v510_v44 = vmul.f32 %v502_v39, %v906_v42  ;;  %v421_v48 = vmul.f32 %v413_v41, %v880_v3 }
 0x116   :  { %v422_v49 = vmul.f32 %v414_v43, %v898_v30  ;;  %v443_v51 = vadd.f32 0.02979246, %v435_v46  ;;  %v444_v52 = vadd.f32 0.02979246, %v436_v47 }
 0x117   :  { %v518_v45 = vadd.f32 1.0, %v510_v44  ;;  %v429_v56 = vadd.f32 0.6183774, %v421_v48 }
 0x118   :  { %v430_v57 = vadd.f32 0.6183774, %v422_v49 }
 0x119   :  { %688 = vrcp.f32 %v518_v45  ;;  %v437_v1 = vmul.f32 %v429_v56, %v880_v3 }
 0x11a   :  { %v438_v60 = vmul.f32 %v430_v57, %v898_v30 }
 0x11b   :  { %v683_v50 = vpop.eup %682  ;;  %v445_v54 = vadd.f32 0.02979246, %v437_v1 }
 0x11c   :  { %v531_v58 = vmul.f32 %v683_v50, %v443_v51  ;;  %v446_v2 = vadd.f32 0.02979246, %v438_v60 }
 0x120   :  { %v685_v53 = vpop.eup %684 }
 0x121   :  { %v532_v0 = vmul.f32 %v685_v53, %v444_v52  ;;  %v687_v21 = vpop.eup %686 }
 0x122   :  { %v533_v4 = vmul.f32 %v687_v21, %v445_v54 }
 0x123   :  { %v613_v42 = vpack.c.bf16 %v532_v0, %v531_v58 }
 0x125   :  { %561 = vst [vmem:[%s948_s4 + $0x10] sm:$0xff] %v613_v42 }
 0x126   :  { %v689_v61 = vpop.eup %688 }
 0x127   :  { %v534_v6 = vmul.f32 %v689_v61, %v446_v2 }
 0x129   :  { %v614_v59 = vpack.c.bf16 %v534_v6, %v533_v4 }
 0x12b   :  { %562 = vst [vmem:[%s948_s4 + $0x18] sm:$0xff] %v614_v59 }

// kernel: _lambda_.10
= control target key start
LH: loop header
LB: loop body
LE: loop exit
PB: predicated region body
PF: predicated region fallthrough
CT: control target
= control target key end

     0   :  { %v500_v0 = vmov 0   ;;  %vm181_vm0 = vcmask 130048   ;;  %s669_s2 = inlined_call_operand.vmem [shape: bf16[144,128], index: 2, kind: input, shape index: {}]   ;;  %s670_s0 = inlined_call_operand.vmem [shape: bf16[64,144], index: 0, kind: input, shape index: {}]   ;;  %s671_s1 = inlined_call_operand.vmem [shape: f32[64,1], index: 1, kind: input, shape index: {}]   ;;  %s672_s4 = inlined_call_operand.vmem [shape: bf16[32,128], index: 4, kind: output, shape index: {1}]   ;;  %s673_s3 = inlined_call_operand.vmem [shape: bf16[32,128], index: 3, kind: output, shape index: {0}]  }
   0x1   :  { %194 = vmatprep.subr.bf16.mxu0 %v500_v0  ;;  %450 = vmatprep.subr.bf16.mxu1 %v500_v0  ;;  %v471_v1 = vld [vmem:[%s669_s2 + $0x38] sm:$0xff]   ;;  %v472_v2 = vld [vmem:[%s669_s2 + $0x30] sm:$0xff]   ;;  %v473_v3 = vld [vmem:[%s669_s2 + $0x28] sm:$0xff]  }
   0x2   :  { %470 = vset.pattern.permute.xlu1 %v500_v0  ;;  %469 = vset.pattern.permute.xlu0 %v500_v0  ;;  %v474_v4 = vld [vmem:[%s669_s2 + $0x20] sm:$0xff]   ;;  %v475_v7 = vld [vmem:[%s669_s2 + $0x18] sm:$0xff]   ;;  %v45_v8 = vld [vmem:[%s671_s1 + $0x10] sm:$0xff] }
   0x3   :  { %195 = vmatpush1.bf16.msra.mxu0 %v471_v1  ;;  %459 = vmatpush1.bf16.msra.mxu1 %v471_v1  ;;  %v482_v5 = vld [vmem:[%s670_s0 + $0x4] ss:$8 sps:$4 sm:$0xff]   ;;  %v46_v10 = vld [vmem:[%s671_s1 + $0x18] sm:$0xff]  ;;  %v476_v12 = vld [vmem:[%s669_s2 + $0x10] sm:$0xff]  }
   0x4   :  { %196 = vmatprep.subr.bf16.mxu0 %v500_v0  ;;  %451 = vmatprep.subr.bf16.mxu1 %v500_v0  ;;  %v485_v6 = vld [vmem:[%s670_s0 + $0x24] ss:$8 sps:$4 sm:$0xff]   ;;  %v50_v16 = vld [vmem:[%s671_s1 + $0x38] sm:$0xff]  ;;  %v49_v17 = vld [vmem:[%s671_s1 + $0x30] sm:$0xff] }
   0x5   :  { %408 = vmatprep.mubr.msk.bf16.mxu0 %vm181_vm0, %v482_v5  ;;  %410 = vmatprep.mubr.msk.bf16.mxu1 %vm181_vm0, %v485_v6  ;;  %v43_v9 = vld [vmem:[%s671_s1] sm:$0xff]  ;;  %v44_v11 = vld [vmem:[%s671_s1 + $0x8] sm:$0xff]  ;;  %v486_v22 = vld [vmem:[%s670_s0 + $0x14] ss:$8 sps:$4 sm:$0xff]  }
   0x6   :  { %63 = vperm.xlu1 %470, %v45_v8   ;;  %53 = vperm.xlu0 %469, %v43_v9   ;;  %v48_v13 = vld [vmem:[%s671_s1 + $0x28] sm:$0xff]  ;;  %v47_v14 = vld [vmem:[%s671_s1 + $0x20] sm:$0xff]  ;;  %v488_v23 = vld [vmem:[%s670_s0 + $0x34] ss:$8 sps:$4 sm:$0xff]  }
   0x7   :  { %197 = vmatpush1.bf16.msra.mxu0 %v472_v2  ;;  %460 = vmatpush1.bf16.msra.mxu1 %v472_v2  ;;  %v477_v15 = vld [vmem:[%s669_s2 + $0x8] sm:$0xff]   ;;  %v478_v18 = vld [vmem:[%s669_s2] sm:$0xff]   ;;  %v490_v24 = vld [vmem:[%s670_s0 + $0x10] ss:$8 sps:$4 sm:$0xff]  }
   0x8   :  { %198 = vmatprep.subr.bf16.mxu0 %v500_v0  ;;  %452 = vmatprep.subr.bf16.mxu1 %v500_v0  ;;  %v479_v19 = vld [vmem:[%s669_s2 + $0x40] sm:$0xff]   ;;  %v491_v25 = vld [vmem:[%s670_s0 + $0x30] ss:$8 sps:$4 sm:$0xff]  }
   0x9   :  { %v480_v20 = vld [vmem:[%s670_s0] ss:$8 sps:$4 sm:$0xff]  }
   0xa   :  { %68 = vperm.xlu1 %470, %v46_v10   ;;  %58 = vperm.xlu0 %469, %v44_v11   ;;  %v483_v21 = vld [vmem:[%s670_s0 + $0x20] ss:$8 sps:$4 sm:$0xff]  }
   0xb   :  { %199 = vmatpush1.bf16.msra.mxu0 %v473_v3  ;;  %461 = vmatpush1.bf16.msra.mxu1 %v473_v3 }
   0xc   :  { %200 = vmatprep.subr.bf16.mxu0 %v500_v0  ;;  %453 = vmatprep.subr.bf16.mxu1 %v500_v0 }
   0xe   :  { %78 = vperm.xlu1 %470, %v48_v13   ;;  %73 = vperm.xlu0 %469, %v47_v14  }
   0xf   :  { %201 = vmatpush1.bf16.msra.mxu0 %v474_v4  ;;  %462 = vmatpush1.bf16.msra.mxu1 %v474_v4 }
  0x10   :  { %202 = vmatprep.subr.bf16.mxu0 %v500_v0  ;;  %454 = vmatprep.subr.bf16.mxu1 %v500_v0 }
  0x12   :  { %88 = vperm.xlu1 %470, %v50_v16   ;;  %83 = vperm.xlu0 %469, %v49_v17  }
  0x13   :  { %203 = vmatpush1.bf16.msra.mxu0 %v475_v7  ;;  %463 = vmatpush1.bf16.msra.mxu1 %v475_v7 }
  0x14   :  { %204 = vmatprep.subr.bf16.mxu0 %v500_v0  ;;  %455 = vmatprep.subr.bf16.mxu1 %v500_v0 }
  0x17   :  { %205 = vmatpush1.bf16.msra.mxu0 %v476_v12  ;;  %464 = vmatpush1.bf16.msra.mxu1 %v476_v12 }
  0x18   :  { %206 = vmatprep.subr.bf16.mxu0 %v500_v0  ;;  %456 = vmatprep.subr.bf16.mxu1 %v500_v0 }
  0x1b   :  { %207 = vmatpush1.bf16.msra.mxu0 %v477_v15  ;;  %465 = vmatpush1.bf16.msra.mxu1 %v477_v15 }
  0x1c   :  { %208 = vmatprep.subr.bf16.mxu0 %v500_v0  ;;  %457 = vmatprep.subr.bf16.mxu1 %v500_v0 }
  0x1f   :  { %209 = vmatpush1.bf16.msra.mxu0 %v478_v18  ;;  %466 = vmatpush1.bf16.msra.mxu1 %v478_v18 }
  0x20   :  { %224 = vmatprep.subr.bf16.mxu0 %v500_v0  ;;  %458 = vmatprep.subr.bf16.mxu1 %v500_v0 }
  0x23   :  { %225 = vmatpush2.bf16.msra.mxu0 %v479_v19  ;;  %467 = vmatpush2.bf16.msra.mxu1 %v479_v19 }
  0x26   :  { %227 = vmatmul.mubr.bf16.vlgmr.msra.gmra.mxu0 %v480_v20  ;;  %243 = vmatmul.mubr.bf16.vlgmr.msra.gmra.mxu1 %v483_v21 }
  0x27   :  { %409 = vmatprep.mubr.msk.bf16.mxu0 %vm181_vm0, %v486_v22  ;;  %411 = vmatprep.mubr.msk.bf16.mxu1 %vm181_vm0, %v488_v23 }
  0x2e   :  { %235 = vmatmul.mubr.bf16.gmra.mxu0 %v490_v24  ;;  %251 = vmatmul.mubr.bf16.gmra.mxu1 %v491_v25 }
  0x81   :  { %v64_v26 = vpop.permute.xlu1 %63  ;;  %v54_v27 = vpop.permute.xlu0 %53 }
  0x85   :  { %v69_v28 = vpop.permute.xlu1 %68  ;;  %v59_v29 = vpop.permute.xlu0 %58 }
  0x89   :  { %v79_v37 = vpop.permute.xlu1 %78  ;;  %v74_v38 = vpop.permute.xlu0 %73 }
  0x8d   :  { %v89_v22 = vpop.permute.xlu1 %88  ;;  %v84_v23 = vpop.permute.xlu0 %83 }
  0xe6   :  { %v228_v30 = vpop.f32.mrf.mxu0  ;;  %v244_v31 = vpop.f32.mrf.mxu1 }
  0xe7   :  { %v625_v32 = vadd.f32 %v228_v30, %v54_v27  ;;  %v245_v39 = vadd.f32 %v244_v31, %v74_v38 }
  0xe8   :  { %v230_v33 = vpop.f32.mrf.mxu0  ;;  %v246_v34 = vpop.f32.mrf.mxu1 }
  0xe9   :  { %v259_v35 = vmul.f32 0.25103718, %v625_v32  ;;  %v299_v36 = vand.u32 2147483647, %v625_v32 }
  0xea   :  { %v231_v40 = vpop.f32.mrf.mxu0  ;;  %v247_v41 = vpop.f32.mrf.mxu1 }
  0xeb   :  { %v263_v42 = vadd.f32 1.4854801, %v259_v35  ;;  %v303_v43 = vmul.f32 0.33267534, %v299_v36  ;;  %v629_v44 = vadd.f32 %v231_v40, %v59_v29  ;;  %v248_v45 = vadd.f32 %v247_v41, %v79_v37 }
  0xec   :  { %v233_v46 = vpop.f32.mrf.mxu0  ;;  %v249_v47 = vpop.f32.mrf.mxu1 }
  0xed   :  { %v307_v48 = vadd.f32 0.38976192, %v303_v43  ;;  %v260_v49 = vmul.f32 0.25103718, %v629_v44  ;;  %v300_v50 = vand.u32 2147483647, %v629_v44  ;;  %v441_v51 = vpack.c.bf16 %v248_v45, %v245_v39 }
  0xee   :  { %v236_v52 = vpop.f32.mrf.mxu0  ;;  %v252_v53 = vpop.f32.mrf.mxu1  ;;  %v267_v54 = vmul.f32 %v263_v42, %v625_v32 }
  0xef   :  { %v311_v55 = vmul.f32 %v307_v48, %v299_v36  ;;  %v264_v56 = vadd.f32 1.4854801, %v260_v49  ;;  %v304_v57 = vmul.f32 0.33267534, %v300_v50  ;;  %442 = vst [vmem:[%s672_s4] sm:$0xff] %v441_v51   ;;  %v637_v58 = vadd.f32 %v236_v52, %v64_v26 }
  0xf0   :  { %v238_v59 = vpop.f32.mrf.mxu0  ;;  %v254_v60 = vpop.f32.mrf.mxu1  ;;  %v271_v4 = vadd.f32 3.0520265, %v267_v54  ;;  %v253_v38 = vadd.f32 %v252_v53, %v84_v23 }
  0xf1   :  { %v315_v61 = vadd.f32 2.3816075, %v311_v55  ;;  %v268_v62 = vmul.f32 %v264_v56, %v629_v44  ;;  %v308_v63 = vadd.f32 0.38976192, %v304_v57  ;;  %v261_v0 = vmul.f32 0.25103718, %v637_v58 }
  0xf2   :  { %v301_v1 = vand.u32 2147483647, %v637_v58  ;;  %v239_v2 = vpop.f32.mrf.mxu0  ;;  %v255_v3 = vpop.f32.mrf.mxu1  ;;  %v275_v18 = vmul.f32 %v271_v4, %v625_v32 }
  0xf3   :  { %v319_v5 = vmul.f32 %v315_v61, %v299_v36  ;;  %v272_v6 = vadd.f32 3.0520265, %v268_v62  ;;  %v312_v7 = vmul.f32 %v308_v63, %v300_v50  ;;  %v265_v8 = vadd.f32 1.4854801, %v261_v0 }
  0xf4   :  { %v305_v9 = vmul.f32 0.33267534, %v301_v1  ;;  %v642_v10 = vadd.f32 %v239_v2, %v69_v28  ;;  %v241_v11 = vpop.f32.mrf.mxu0  ;;  %v257_v12 = vpop.f32.mrf.mxu1  ;;  %v256_v30 = vadd.f32 %v255_v3, %v89_v22  ;;  %v279_v35 = vadd.f32 2.323352, %v275_v18 }
  0xf5   :  { %v323_v13 = vadd.f32 1.1413246, %v319_v5  ;;  %v316_v14 = vadd.f32 2.3816075, %v312_v7  ;;  %v276_v20 = vmul.f32 %v272_v6, %v629_v44  ;;  %v269_v24 = vmul.f32 %v265_v8, %v637_v58 }
  0xf6   :  { %v309_v15 = vadd.f32 0.38976192, %v305_v9  ;;  %v262_v16 = vmul.f32 0.25103718, %v642_v10  ;;  %v302_v17 = vand.u32 2147483647, %v642_v10  ;;  %v446_v45 = vpack.c.bf16 %v256_v30, %v253_v38 }
  0xf7   :  { %v327_v19 = vmul.f32 %v323_v13, %v299_v36  ;;  %v320_v21 = vmul.f32 %v316_v14, %v300_v50  ;;  %v280_v37 = vadd.f32 2.323352, %v276_v20  ;;  %v273_v39 = vadd.f32 3.0520265, %v269_v24 }
  0xf8   :  { %v313_v25 = vmul.f32 %v309_v15, %v301_v1  ;;  %v266_v26 = vadd.f32 1.4854801, %v262_v16  ;;  %v306_v27 = vmul.f32 0.33267534, %v302_v17  ;;  %v283_v48 = vmul.f32 %v279_v35, %v625_v32  ;;  %449 = vst [vmem:[%s672_s4 + $0x8] sm:$0xff] %v446_v45  }
  0xf9   :  { %v331_v28 = vadd.f32 1.0, %v327_v19  ;;  %v324_v29 = vadd.f32 1.1413246, %v320_v21  ;;  %v284_v49 = vmul.f32 %v280_v37, %v629_v44 }
  0xfa   :  { %v317_v31 = vadd.f32 2.3816075, %v313_v25  ;;  %v270_v33 = vmul.f32 %v266_v26, %v642_v10  ;;  %v310_v34 = vadd.f32 0.38976192, %v306_v27  ;;  %v287_v56 = vadd.f32 0.6183774, %v283_v48 }
  0xfb   :  { %v328_v36 = vmul.f32 %v324_v29, %v300_v50  ;;  %492 = vrcp.f32 %v331_v28  ;;  %v277_v50 = vmul.f32 %v273_v39, %v637_v58  ;;  %v288_v57 = vadd.f32 0.6183774, %v284_v49 }
  0xfc   :  { %v321_v40 = vmul.f32 %v317_v31, %v301_v1  ;;  %v274_v41 = vadd.f32 3.0520265, %v270_v33  ;;  %v314_v42 = vmul.f32 %v310_v34, %v302_v17  ;;  %v291_v63 = vmul.f32 %v287_v56, %v625_v32 }
  0xfd   :  { %v332_v43 = vadd.f32 1.0, %v328_v36  ;;  %v281_v59 = vadd.f32 2.323352, %v277_v50  ;;  %v292_v0 = vmul.f32 %v288_v57, %v629_v44 }
  0xfe   :  { %v325_v46 = vadd.f32 1.1413246, %v321_v40  ;;  %v318_v47 = vadd.f32 2.3816075, %v314_v42  ;;  %v278_v52 = vmul.f32 %v274_v41, %v642_v10  ;;  %v295_v4 = vadd.f32 0.02979246, %v291_v63 }
  0xff   :  { %494 = vrcp.f32 %v332_v43  ;;  %v285_v2 = vmul.f32 %v281_v59, %v637_v58  ;;  %v296_v5 = vadd.f32 0.02979246, %v292_v0 }
 0x100   :  { %v329_v51 = vmul.f32 %v325_v46, %v301_v1  ;;  %v322_v53 = vmul.f32 %v318_v47, %v302_v17  ;;  %v282_v60 = vadd.f32 2.323352, %v278_v52 }
 0x101   :  { %v289_v7 = vadd.f32 0.6183774, %v285_v2 }
 0x102   :  { %v333_v54 = vadd.f32 1.0, %v329_v51  ;;  %v326_v55 = vadd.f32 1.1413246, %v322_v53  ;;  %v286_v1 = vmul.f32 %v282_v60, %v642_v10 }
 0x103   :  { %v293_v13 = vmul.f32 %v289_v7, %v637_v58 }
 0x104   :  { %v330_v61 = vmul.f32 %v326_v55, %v302_v17  ;;  %496 = vrcp.f32 %v333_v54  ;;  %v290_v8 = vadd.f32 0.6183774, %v286_v1 }
 0x105   :  { %v297_v14 = vadd.f32 0.02979246, %v293_v13 }
 0x106   :  { %v334_v62 = vadd.f32 1.0, %v330_v61  ;;  %v294_v32 = vmul.f32 %v290_v8, %v642_v10 }
 0x108   :  { %498 = vrcp.f32 %v334_v62  ;;  %v493_v3 = vpop.eup %492  ;;  %v298_v15 = vadd.f32 0.02979246, %v294_v32 }
 0x109   :  { %v339_v9 = vmul.f32 %v493_v3, %v295_v4 }
 0x10c   :  { %v495_v6 = vpop.eup %494 }
 0x10d   :  { %v340_v11 = vmul.f32 %v495_v6, %v296_v5 }
 0x10f   :  { %v431_v12 = vpack.c.bf16 %v340_v11, %v339_v9 }
 0x111   :  { %432 = vst [vmem:[%s673_s3] sm:$0xff] %v431_v12   ;;  %v497_v44 = vpop.eup %496 }
 0x112   :  { %v341_v17 = vmul.f32 %v497_v44, %v297_v14 }
 0x115   :  { %v499_v16 = vpop.eup %498 }
 0x116   :  { %v342_v18 = vmul.f32 %v499_v16, %v298_v15 }
 0x118   :  { %v436_v19 = vpack.c.bf16 %v342_v18, %v341_v17 }
 0x11a   :  { %448 = vst [vmem:[%s673_s3 + $0x8] sm:$0xff] %v436_v19  }

// kernel: _lambda_.11
= control target key start
LH: loop header
LB: loop body
LE: loop exit
PB: predicated region body
PF: predicated region fallthrough
CT: control target
= control target key end

     0   :  { %v580_v1 = vmov 0   ;;  %vm224_vm0 = vcmask 261120   ;;  %s728_s2 = inlined_call_operand.vmem [shape: bf16[288,128], index: 2, kind: input, shape index: {}]   ;;  %s729_s0 = inlined_call_operand.vmem [shape: bf16[32,288], index: 0, kind: input, shape index: {}]   ;;  %s730_s1 = inlined_call_operand.vmem [shape: f32[32,1], index: 1, kind: input, shape index: {}]   ;;  %s731_s3 = inlined_call_operand.vmem [shape: bf16[32,128], index: 3, kind: input, shape index: {}]   ;;  %s732_s4 = inlined_call_operand.vmem [shape: bf16[32,128], index: 4, kind: output, shape index: {}]  }
   0x1   :  { %v546_v0 = vld [vmem:[%s728_s2 + $0x78] sm:$0xff]   ;;  %544 = vset.pattern.permute.xlu0 %v580_v1  ;;  %545 = vset.pattern.permute.xlu1 %v580_v1  ;;  %v548_v3 = vld [vmem:[%s728_s2 + $0x70] sm:$0xff]   ;;  %v550_v5 = vld [vmem:[%s728_s2 + $0x68] sm:$0xff]  }
   0x2   :  { %v547_v2 = vld [vmem:[%s728_s2 + $0x38] sm:$0xff]   ;;  %503 = vmatprep.subr.bf16.mxu0 %v546_v0  ;;  %v549_v4 = vld [vmem:[%s728_s2 + $0x30] sm:$0xff]   ;;  %v551_v6 = vld [vmem:[%s728_s2 + $0x28] sm:$0xff]  }
   0x3   :  { %504 = vmatpush3.bf16.msra.mxu0 %v547_v2  ;;  %v552_v7 = vld [vmem:[%s728_s2 + $0x60] sm:$0xff]   ;;  %v554_v9 = vld [vmem:[%s728_s2 + $0x58] sm:$0xff]   ;;  %v561_v11 = vld [vmem:[%s728_s2 + $0x88] sm:$0xff]  }
   0x4   :  { %505 = vmatprep.subr.bf16.mxu0 %v548_v3  ;;  %v553_v8 = vld [vmem:[%s728_s2 + $0x20] sm:$0xff]   ;;  %v555_v10 = vld [vmem:[%s728_s2 + $0x18] sm:$0xff]   ;;  %v556_v12 = vld [vmem:[%s728_s2 + $0x50] sm:$0xff]   ;;  %535 = vmatprep.subr.bf16.mxu1 %v561_v11 }
   0x5   :  { %v557_v13 = vld [vmem:[%s728_s2 + $0x10] sm:$0xff]   ;;  %v558_v14 = vld [vmem:[%s728_s2 + $0x48] sm:$0xff]   ;;  %536 = vmatpush3.bf16.msra.mxu1 %v561_v11  ;;  %v566_v16 = vld [vmem:[%s728_s2 + $0x80] sm:$0xff]  }
   0x6   :  { %v565_v15 = vld [vmem:[%s729_s0 + $0x4] ss:$12 sps:$4 sm:$0xff]   ;;  %v567_v17 = vld [vmem:[%s729_s0 + $0x8] ss:$12 sps:$4 sm:$0xff]   ;;  %537 = vmatprep.subr.bf16.mxu1 %v566_v16  ;;  %v568_v18 = vld [vmem:[%s729_s0 + $0x20] ss:$12 sps:$4 sm:$0xff]  }
   0x7   :  { %506 = vmatpush3.bf16.msra.mxu0 %v549_v4  ;;  %263 = vmatprep.mubr.bf16.mxu0 %v565_v15  ;;  %v62_v19 = vld [vmem:[%s730_s1] sm:$0xff]  ;;  %v559_v20 = vld [vmem:[%s728_s2 + $0x8] sm:$0xff]   ;;  %v64_v21 = vld [vmem:[%s730_s1 + $0x10] sm:$0xff] }
   0x8   :  { %507 = vmatprep.subr.bf16.mxu0 %v550_v5  ;;  %539 = vmatprep.mubr.msk.bf16.mxu1 %vm224_vm0, %v567_v17  ;;  %v560_v22 = vld [vmem:[%s728_s2 + $0x40] sm:$0xff]   ;;  %v63_v23 = vld [vmem:[%s730_s1 + $0x8] sm:$0xff]  ;;  %v65_v24 = vld [vmem:[%s730_s1 + $0x18] sm:$0xff] }
   0x9   :  { %538 = vmatpush3.bf16.msra.mxu1 %v566_v16  ;;  %68 = vperm.xlu0 %544, %v62_v19   ;;  %v562_v25 = vld [vmem:[%s728_s2] sm:$0xff]   ;;  %v569_v27 = vld [vmem:[%s729_s0 + $0x1c] ss:$12 sps:$4 sm:$0xff]  }
   0xa   :  { %78 = vperm.xlu1 %545, %v64_v21   ;;  %v563_v26 = vld [vmem:[%s729_s0] ss:$12 sps:$4 sm:$0xff]   ;;  %v571_v28 = vld [vmem:[%s729_s0 + $0x18] ss:$12 sps:$4 sm:$0xff]  }
   0xb   :  { %508 = vmatpush3.bf16.msra.mxu0 %v551_v6  ;;  %v484_v34 = vld [vmem:[%s731_s3] sm:$0xff]   ;;  %v501_v46 = vld [vmem:[%s731_s3 + $0x8] sm:$0xff]  }
   0xc   :  { %509 = vmatprep.subr.bf16.mxu0 %v552_v7  ;;  %540 = vmatmul.mubr.msk.bf16.vlgmr.msra.gmra.mxu1 %vm224_vm0, %v568_v18  ;;  %v485_v39 = vunpack.c.l.bf16 %v484_v34  ;;  %v486_v49 = vunpack.c.h.bf16 %v484_v34  ;;  %v489_v56 = vunpack.c.l.bf16 %v501_v46  ;;  %v490_v11 = vunpack.c.h.bf16 %v501_v46 }
   0xd   :  { %73 = vperm.xlu0 %544, %v63_v23  }
   0xe   :  { %83 = vperm.xlu1 %545, %v65_v24  }
   0xf   :  { %510 = vmatpush3.bf16.msra.mxu0 %v553_v8 }
  0x10   :  { %511 = vmatprep.subr.bf16.mxu0 %v554_v9 }
  0x13   :  { %512 = vmatpush3.bf16.msra.mxu0 %v555_v10 }
  0x14   :  { %513 = vmatprep.subr.bf16.mxu0 %v556_v12 }
  0x17   :  { %514 = vmatpush3.bf16.msra.mxu0 %v557_v13 }
  0x18   :  { %515 = vmatprep.subr.bf16.mxu0 %v558_v14 }
  0x1b   :  { %516 = vmatpush3.bf16.msra.mxu0 %v559_v20 }
  0x1c   :  { %517 = vmatprep.subr.bf16.mxu0 %v560_v22 }
  0x1f   :  { %518 = vmatpush3.bf16.msra.mxu0 %v562_v25 }
  0x22   :  { %264 = vmatmul.mubr.bf16.vlgmr.msra.gmra.mxu0 %v563_v26 }
  0x23   :  { %271 = vmatprep.mubr.bf16.mxu0 %v569_v27 }
  0x2a   :  { %272 = vmatmul.mubr.bf16.gmra.mxu0 %v571_v28 }
  0x84   :  { %v69_v30 = vpop.permute.xlu0 %68 }
  0x85   :  { %v79_v53 = vpop.permute.xlu1 %78 }
  0x88   :  { %v74_v41 = vpop.permute.xlu0 %73 }
  0x89   :  { %v84_v8 = vpop.permute.xlu1 %83 }
  0xcc   :  { %v541_v29 = vpop.f32.mrf.mxu1 }
  0xce   :  { %v314_v32 = vpop.f32.mrf.mxu1 }
  0xd0   :  { %v542_v37 = vpop.f32.mrf.mxu1 }
  0xd2   :  { %v317_v45 = vpop.f32.mrf.mxu1 }
  0xe2   :  { %v519_v31 = vpop.f32.mrf.mxu0 }
  0xe4   :  { %v520_v33 = vpop.f32.mrf.mxu0 }
  0xe5   :  { %v521_v35 = vadd.f32 %v520_v33, %v519_v31 }
  0xe6   :  { %v522_v36 = vpop.f32.mrf.mxu0 }
  0xe7   :  { %v266_v38 = vadd.f32 %v521_v35, %v69_v30 }
  0xe8   :  { %v523_v40 = vpop.f32.mrf.mxu0 }
  0xe9   :  { %v524_v42 = vadd.f32 %v523_v40, %v522_v36  ;;  %v315_v43 = vadd.f32 %v314_v32, %v266_v38 }
  0xea   :  { %v525_v44 = vpop.f32.mrf.mxu0 }
  0xeb   :  { %v698_v47 = vadd.f32 %v485_v39, %v315_v43  ;;  %v269_v48 = vadd.f32 %v524_v42, %v74_v41 }
  0xec   :  { %v526_v50 = vpop.f32.mrf.mxu0 }
  0xed   :  { %v341_v51 = vmul.f32 0.25103718, %v698_v47  ;;  %v381_v52 = vand.u32 2147483647, %v698_v47  ;;  %v527_v54 = vadd.f32 %v526_v50, %v525_v44  ;;  %v318_v55 = vadd.f32 %v317_v45, %v269_v48 }
  0xee   :  { %v528_v57 = vpop.f32.mrf.mxu0 }
  0xef   :  { %v345_v58 = vadd.f32 1.4854801, %v341_v51  ;;  %v385_v59 = vmul.f32 0.33267534, %v381_v52  ;;  %v274_v60 = vadd.f32 %v527_v54, %v79_v53  ;;  %v702_v61 = vadd.f32 %v486_v49, %v318_v55 }
  0xf0   :  { %v529_v62 = vpop.f32.mrf.mxu0 }
  0xf1   :  { %v389_v63 = vadd.f32 0.38976192, %v385_v59  ;;  %v323_v0 = vadd.f32 %v541_v29, %v274_v60  ;;  %v342_v1 = vmul.f32 0.25103718, %v702_v61  ;;  %v382_v2 = vand.u32 2147483647, %v702_v61 }
  0xf2   :  { %v530_v3 = vadd.f32 %v529_v62, %v528_v57  ;;  %v349_v4 = vmul.f32 %v345_v58, %v698_v47 }
  0xf3   :  { %v393_v5 = vmul.f32 %v389_v63, %v381_v52  ;;  %v707_v6 = vadd.f32 %v489_v56, %v323_v0  ;;  %v346_v7 = vadd.f32 1.4854801, %v342_v1  ;;  %v386_v9 = vmul.f32 0.33267534, %v382_v2 }
  0xf4   :  { %v277_v10 = vadd.f32 %v530_v3, %v84_v8  ;;  %v353_v18 = vadd.f32 3.0520265, %v349_v4 }
  0xf5   :  { %v397_v12 = vadd.f32 2.3816075, %v393_v5  ;;  %v343_v13 = vmul.f32 0.25103718, %v707_v6  ;;  %v383_v14 = vand.u32 2147483647, %v707_v6  ;;  %v350_v15 = vmul.f32 %v346_v7, %v702_v61 }
  0xf6   :  { %v390_v16 = vadd.f32 0.38976192, %v386_v9  ;;  %v326_v17 = vadd.f32 %v542_v37, %v277_v10  ;;  %v357_v30 = vmul.f32 %v353_v18, %v698_v47 }
  0xf7   :  { %v401_v19 = vmul.f32 %v397_v12, %v381_v52  ;;  %v347_v20 = vadd.f32 1.4854801, %v343_v13  ;;  %v387_v21 = vmul.f32 0.33267534, %v383_v14  ;;  %v354_v22 = vadd.f32 3.0520265, %v350_v15 }
  0xf8   :  { %v394_v23 = vmul.f32 %v390_v16, %v382_v2  ;;  %v340_v24 = vadd.f32 %v490_v11, %v326_v17  ;;  %v361_v43 = vadd.f32 2.323352, %v357_v30 }
  0xf9   :  { %v405_v25 = vadd.f32 1.1413246, %v401_v19  ;;  %v391_v26 = vadd.f32 0.38976192, %v387_v21  ;;  %v351_v32 = vmul.f32 %v347_v20, %v707_v6  ;;  %v358_v34 = vmul.f32 %v354_v22, %v702_v61 }
  0xfa   :  { %v398_v27 = vadd.f32 2.3816075, %v394_v23  ;;  %v344_v28 = vmul.f32 0.25103718, %v340_v24  ;;  %v384_v29 = vand.u32 2147483647, %v340_v24  ;;  %v365_v54 = vmul.f32 %v361_v43, %v698_v47 }
  0xfb   :  { %v409_v31 = vmul.f32 %v405_v25, %v381_v52  ;;  %v395_v33 = vmul.f32 %v391_v26, %v383_v14  ;;  %v355_v44 = vadd.f32 3.0520265, %v351_v32  ;;  %v362_v46 = vadd.f32 2.323352, %v358_v34 }
  0xfc   :  { %v402_v35 = vmul.f32 %v398_v27, %v382_v2  ;;  %v348_v36 = vadd.f32 1.4854801, %v344_v28  ;;  %v388_v37 = vmul.f32 0.33267534, %v384_v29  ;;  %v369_v63 = vadd.f32 0.6183774, %v365_v54 }
  0xfd   :  { %v399_v38 = vadd.f32 2.3816075, %v395_v33  ;;  %v413_v39 = vadd.f32 1.0, %v409_v31  ;;  %v359_v55 = vmul.f32 %v355_v44, %v707_v6  ;;  %v366_v57 = vmul.f32 %v362_v46, %v702_v61 }
  0xfe   :  { %v406_v40 = vadd.f32 1.1413246, %v402_v35  ;;  %v352_v41 = vmul.f32 %v348_v36, %v340_v24  ;;  %v392_v42 = vadd.f32 0.38976192, %v388_v37  ;;  %v373_v5 = vmul.f32 %v369_v63, %v698_v47 }
  0xff   :  { %v403_v45 = vmul.f32 %v399_v38, %v383_v14  ;;  %572 = vrcp.f32 %v413_v39  ;;  %v363_v0 = vadd.f32 2.323352, %v359_v55  ;;  %v370_v1 = vadd.f32 0.6183774, %v366_v57 }
 0x100   :  { %v410_v48 = vmul.f32 %v406_v40, %v382_v2  ;;  %v356_v49 = vadd.f32 3.0520265, %v352_v41  ;;  %v396_v50 = vmul.f32 %v392_v42, %v384_v29  ;;  %v377_v11 = vadd.f32 0.02979246, %v373_v5 }
 0x101   :  { %v407_v51 = vadd.f32 1.1413246, %v403_v45  ;;  %v367_v7 = vmul.f32 %v363_v0, %v707_v6  ;;  %v374_v8 = vmul.f32 %v370_v1, %v702_v61 }
 0x102   :  { %v414_v52 = vadd.f32 1.0, %v410_v48  ;;  %v400_v53 = vadd.f32 2.3816075, %v396_v50  ;;  %v360_v58 = vmul.f32 %v356_v49, %v340_v24 }
 0x103   :  { %v411_v56 = vmul.f32 %v407_v51, %v383_v14  ;;  %v371_v12 = vadd.f32 0.6183774, %v367_v7  ;;  %v378_v13 = vadd.f32 0.02979246, %v374_v8 }
 0x104   :  { %574 = vrcp.f32 %v414_v52  ;;  %v404_v59 = vmul.f32 %v400_v53, %v384_v29  ;;  %v364_v2 = vadd.f32 2.323352, %v360_v58 }
 0x105   :  { %v415_v60 = vadd.f32 1.0, %v411_v56  ;;  %v375_v18 = vmul.f32 %v371_v12, %v707_v6 }
 0x106   :  { %v408_v62 = vadd.f32 1.1413246, %v404_v59  ;;  %v368_v9 = vmul.f32 %v364_v2, %v340_v24 }
 0x107   :  { %576 = vrcp.f32 %v415_v60  ;;  %v379_v61 = vadd.f32 0.02979246, %v375_v18 }
 0x108   :  { %v412_v3 = vmul.f32 %v408_v62, %v384_v29  ;;  %v372_v14 = vadd.f32 0.6183774, %v368_v9 }
 0x10a   :  { %v416_v4 = vadd.f32 1.0, %v412_v3  ;;  %v376_v20 = vmul.f32 %v372_v14, %v340_v24 }
 0x10c   :  { %578 = vrcp.f32 %v416_v4  ;;  %v573_v10 = vpop.eup %572  ;;  %v380_v21 = vadd.f32 0.02979246, %v376_v20 }
 0x10d   :  { %v421_v16 = vmul.f32 %v573_v10, %v377_v11 }
 0x111   :  { %v575_v15 = vpop.eup %574 }
 0x112   :  { %v422_v17 = vmul.f32 %v575_v15, %v378_v13 }
 0x114   :  { %v494_v19 = vpack.c.bf16 %v422_v17, %v421_v16  ;;  %v577_v47 = vpop.eup %576 }
 0x115   :  { %v423_v23 = vmul.f32 %v577_v47, %v379_v61 }
 0x116   :  { %495 = vst [vmem:[%s732_s4] sm:$0xff] %v494_v19  }
 0x119   :  { %v579_v22 = vpop.eup %578 }
 0x11a   :  { %v424_v25 = vmul.f32 %v579_v22, %v380_v21 }
 0x11c   :  { %v499_v26 = vpack.c.bf16 %v424_v25, %v423_v23 }
 0x11e   :  { %502 = vst [vmem:[%s732_s4 + $0x8] sm:$0xff] %v499_v26  }

// kernel: _lambda_.12
= control target key start
LH: loop header
LB: loop body
LE: loop exit
PB: predicated region body
PF: predicated region fallthrough
CT: control target
= control target key end

     0   :  { %v1191_v1 = vmov 0   ;;  %vm409_vm0 = vcmask 261120   ;;  %s1619_s2 = inlined_call_operand.vmem [shape: bf16[288,128], index: 2, kind: input, shape index: {}]   ;;  %s1620_s0 = inlined_call_operand.vmem [shape: bf16[128,288], index: 0, kind: input, shape index: {}]   ;;  %s1621_s1 = inlined_call_operand.vmem [shape: f32[128,1], index: 1, kind: input, shape index: {}]   ;;  %s1622_s3 = inlined_call_operand.vmem [shape: bf16[64,128], index: 3, kind: output, shape index: {0}]   ;;  %s1623_s4 = inlined_call_operand.vmem [shape: bf16[64,128], index: 4, kind: output, shape index: {1}]  }
   0x1   :  { %v1125_v0 = vld [vmem:[%s1619_s2 + $0x78] sm:$0xff]   ;;  %1123 = vset.pattern.permute.xlu0 %v1191_v1  ;;  %1124 = vset.pattern.permute.xlu1 %v1191_v1  ;;  %v1127_v3 = vld [vmem:[%s1619_s2 + $0x70] sm:$0xff]   ;;  %v1129_v5 = vld [vmem:[%s1619_s2 + $0x68] sm:$0xff]  }
   0x2   :  { %v1126_v2 = vld [vmem:[%s1619_s2 + $0x38] sm:$0xff]   ;;  %1012 = vmatprep.subr.bf16.mxu0 %v1125_v0  ;;  %1106 = vmatprep.subr.bf16.mxu1 %v1125_v0  ;;  %v1128_v4 = vld [vmem:[%s1619_s2 + $0x30] sm:$0xff]   ;;  %v1130_v6 = vld [vmem:[%s1619_s2 + $0x28] sm:$0xff]  }
   0x3   :  { %1013 = vmatpush3.bf16.msra.mxu0 %v1126_v2  ;;  %1114 = vmatpush3.bf16.msra.mxu1 %v1126_v2  ;;  %v1131_v7 = vld [vmem:[%s1619_s2 + $0x60] sm:$0xff]   ;;  %v1133_v9 = vld [vmem:[%s1619_s2 + $0x58] sm:$0xff]   ;;  %v1135_v11 = vld [vmem:[%s1619_s2 + $0x50] sm:$0xff]  }
   0x4   :  { %1014 = vmatprep.subr.bf16.mxu0 %v1127_v3  ;;  %1107 = vmatprep.subr.bf16.mxu1 %v1127_v3  ;;  %v1132_v8 = vld [vmem:[%s1619_s2 + $0x20] sm:$0xff]   ;;  %v1134_v10 = vld [vmem:[%s1619_s2 + $0x18] sm:$0xff]   ;;  %v1136_v14 = vld [vmem:[%s1619_s2 + $0x10] sm:$0xff]  }
   0x5   :  { %v1143_v12 = vld [vmem:[%s1620_s0 + $0x4] ss:$12 sps:$4 sm:$0xff]   ;;  %v1146_v13 = vld [vmem:[%s1620_s0 + $0x94] ss:$12 sps:$4 sm:$0xff]   ;;  %v1137_v15 = vld [vmem:[%s1619_s2 + $0x48] sm:$0xff]  }
   0x6   :  { %466 = vmatprep.mubr.bf16.mxu0 %v1143_v12  ;;  %514 = vmatprep.mubr.bf16.mxu1 %v1146_v13  ;;  %v1138_v16 = vld [vmem:[%s1619_s2 + $0x8] sm:$0xff]   ;;  %v1139_v17 = vld [vmem:[%s1619_s2 + $0x40] sm:$0xff]   ;;  %v1144_v21 = vld [vmem:[%s1620_s0 + $0x90] ss:$12 sps:$4 sm:$0xff]  }
   0x7   :  { %1015 = vmatpush3.bf16.msra.mxu0 %v1128_v4  ;;  %1115 = vmatpush3.bf16.msra.mxu1 %v1128_v4  ;;  %v1140_v18 = vld [vmem:[%s1619_s2] sm:$0xff]   ;;  %v1147_v20 = vld [vmem:[%s1619_s2 + $0x88] sm:$0xff]   ;;  %v87_v26 = vld [vmem:[%s1621_s1 + $0x10] sm:$0xff] }
   0x8   :  { %1016 = vmatprep.subr.bf16.mxu0 %v1129_v5  ;;  %1108 = vmatprep.subr.bf16.mxu1 %v1129_v5  ;;  %v1141_v19 = vld [vmem:[%s1620_s0] ss:$12 sps:$4 sm:$0xff]   ;;  %v1148_v22 = vld [vmem:[%s1620_s0 + $0x1c] ss:$12 sps:$4 sm:$0xff]   ;;  %v1152_v27 = vld [vmem:[%s1620_s0 + $0x18] ss:$12 sps:$4 sm:$0xff]  }
   0x9   :  { %v1150_v23 = vld [vmem:[%s1620_s0 + $0xac] ss:$12 sps:$4 sm:$0xff]   ;;  %v1154_v24 = vld [vmem:[%s1619_s2 + $0x80] sm:$0xff]   ;;  %v1153_v28 = vld [vmem:[%s1620_s0 + $0xa8] ss:$12 sps:$4 sm:$0xff]   ;;  %113 = vperm.xlu1 %1124, %v87_v26  }
   0xa   :  { %v85_v25 = vld [vmem:[%s1621_s1] sm:$0xff]  ;;  %v86_v29 = vld [vmem:[%s1621_s1 + $0x8] sm:$0xff]  ;;  %v88_v32 = vld [vmem:[%s1621_s1 + $0x18] sm:$0xff] }
   0xb   :  { %1017 = vmatpush3.bf16.msra.mxu0 %v1130_v6  ;;  %1116 = vmatpush3.bf16.msra.mxu1 %v1130_v6  ;;  %v1155_v30 = vld [vmem:[%s1620_s0 + $0x34] ss:$12 sps:$4 sm:$0xff]   ;;  %v90_v34 = vld [vmem:[%s1621_s1 + $0x28] sm:$0xff]  ;;  %v1158_v35 = vld [vmem:[%s1620_s0 + $0x30] ss:$12 sps:$4 sm:$0xff]  }
   0xc   :  { %1018 = vmatprep.subr.bf16.mxu0 %v1131_v7  ;;  %1109 = vmatprep.subr.bf16.mxu1 %v1131_v7  ;;  %v1157_v31 = vld [vmem:[%s1620_s0 + $0x8] ss:$12 sps:$4 sm:$0xff]   ;;  %v89_v33 = vld [vmem:[%s1621_s1 + $0x20] sm:$0xff]  ;;  %v1160_v38 = vld [vmem:[%s1620_s0 + $0x4c] ss:$12 sps:$4 sm:$0xff]  }
   0xd   :  { %103 = vperm.xlu0 %1123, %v85_v25   ;;  %118 = vperm.xlu1 %1124, %v88_v32   ;;  %v1159_v36 = vld [vmem:[%s1620_s0 + $0x20] ss:$12 sps:$4 sm:$0xff]   ;;  %v91_v37 = vld [vmem:[%s1621_s1 + $0x30] sm:$0xff]  ;;  %v1162_v39 = vld [vmem:[%s1620_s0 + $0x38] ss:$12 sps:$4 sm:$0xff]  }
   0xe   :  { %v92_v40 = vld [vmem:[%s1621_s1 + $0x38] sm:$0xff]  ;;  %v93_v41 = vld [vmem:[%s1621_s1 + $0x40] sm:$0xff]  ;;  %v94_v42 = vld [vmem:[%s1621_s1 + $0x48] sm:$0xff] }
   0xf   :  { %1019 = vmatpush3.bf16.msra.mxu0 %v1132_v8  ;;  %1117 = vmatpush3.bf16.msra.mxu1 %v1132_v8  ;;  %v1163_v43 = vld [vmem:[%s1620_s0 + $0x48] ss:$12 sps:$4 sm:$0xff]   ;;  %v1164_v44 = vld [vmem:[%s1620_s0 + $0x50] ss:$12 sps:$4 sm:$0xff]   ;;  %v97_v49 = vld [vmem:[%s1621_s1 + $0x60] sm:$0xff] }
  0x10   :  { %1020 = vmatprep.subr.bf16.mxu0 %v1133_v9  ;;  %1110 = vmatprep.subr.bf16.mxu1 %v1133_v9  ;;  %v95_v45 = vld [vmem:[%s1621_s1 + $0x50] sm:$0xff]  ;;  %v96_v48 = vld [vmem:[%s1621_s1 + $0x58] sm:$0xff]  ;;  %v98_v50 = vld [vmem:[%s1621_s1 + $0x68] sm:$0xff] }
  0x11   :  { %108 = vperm.xlu0 %1123, %v86_v29   ;;  %128 = vperm.xlu1 %1124, %v90_v34   ;;  %v1165_v46 = vld [vmem:[%s1620_s0 + $0x64] ss:$12 sps:$4 sm:$0xff]   ;;  %v1167_v47 = vld [vmem:[%s1620_s0 + $0x68] ss:$12 sps:$4 sm:$0xff]   ;;  %v1168_v51 = vld [vmem:[%s1620_s0 + $0x60] ss:$12 sps:$4 sm:$0xff]  }
  0x12   :  { %v1169_v52 = vld [vmem:[%s1620_s0 + $0x80] ss:$12 sps:$4 sm:$0xff]   ;;  %v99_v53 = vld [vmem:[%s1621_s1 + $0x70] sm:$0xff]  ;;  %v1170_v54 = vld [vmem:[%s1620_s0 + $0x7c] ss:$12 sps:$4 sm:$0xff]  }
  0x13   :  { %1021 = vmatpush3.bf16.msra.mxu0 %v1134_v10  ;;  %1118 = vmatpush3.bf16.msra.mxu1 %v1134_v10  ;;  %v1172_v55 = vld [vmem:[%s1620_s0 + $0x98] ss:$12 sps:$4 sm:$0xff]   ;;  %v1174_v58 = vld [vmem:[%s1620_s0 + $0xb0] ss:$12 sps:$4 sm:$0xff]  }
  0x14   :  { %1022 = vmatprep.subr.bf16.mxu0 %v1135_v11  ;;  %1111 = vmatprep.subr.bf16.mxu1 %v1135_v11  ;;  %v100_v56 = vld [vmem:[%s1621_s1 + $0x78] sm:$0xff] }
  0x15   :  { %123 = vperm.xlu0 %1123, %v89_v33   ;;  %138 = vperm.xlu1 %1124, %v92_v40   ;;  %v1173_v57 = vld [vmem:[%s1620_s0 + $0x78] ss:$12 sps:$4 sm:$0xff]  }
  0x17   :  { %1023 = vmatpush3.bf16.msra.mxu0 %v1136_v14  ;;  %1119 = vmatpush3.bf16.msra.mxu1 %v1136_v14 }
  0x18   :  { %1024 = vmatprep.subr.bf16.mxu0 %v1137_v15  ;;  %1112 = vmatprep.subr.bf16.mxu1 %v1137_v15 }
  0x19   :  { %133 = vperm.xlu0 %1123, %v91_v37   ;;  %148 = vperm.xlu1 %1124, %v94_v42  }
  0x1b   :  { %1025 = vmatpush3.bf16.msra.mxu0 %v1138_v16  ;;  %1120 = vmatpush3.bf16.msra.mxu1 %v1138_v16 }
  0x1c   :  { %1026 = vmatprep.subr.bf16.mxu0 %v1139_v17  ;;  %1113 = vmatprep.subr.bf16.mxu1 %v1139_v17 }
  0x1d   :  { %143 = vperm.xlu0 %1123, %v93_v41   ;;  %158 = vperm.xlu1 %1124, %v96_v48  }
  0x1f   :  { %1027 = vmatpush3.bf16.msra.mxu0 %v1140_v18  ;;  %1121 = vmatpush3.bf16.msra.mxu1 %v1140_v18 }
  0x20   :  { %1086 = vmatprep.subr.bf16.mxu1 %v1147_v20 }
  0x21   :  { %153 = vperm.xlu0 %1123, %v95_v45   ;;  %168 = vperm.xlu1 %1124, %v98_v50  }
  0x22   :  { %467 = vmatmul.mubr.bf16.vlgmr.msra.gmra.mxu0 %v1141_v19  ;;  %515 = vmatmul.mubr.bf16.vlgmr.msra.gmra.mxu1 %v1144_v21 }
  0x23   :  { %1087 = vmatpush3.bf16.msra.mxu1 %v1147_v20  ;;  %474 = vmatprep.mubr.bf16.mxu0 %v1148_v22 }
  0x24   :  { %522 = vmatprep.mubr.bf16.mxu1 %v1150_v23  ;;  %1088 = vmatprep.subr.bf16.mxu1 %v1154_v24 }
  0x25   :  { %163 = vperm.xlu0 %1123, %v97_v49   ;;  %178 = vperm.xlu1 %1124, %v100_v56  }
  0x27   :  { %1089 = vmatpush3.bf16.msra.mxu1 %v1154_v24 }
  0x29   :  { %173 = vperm.xlu0 %1123, %v99_v53  }
  0x2a   :  { %475 = vmatmul.mubr.bf16.gmra.mxu0 %v1152_v27  ;;  %523 = vmatmul.mubr.bf16.gmra.mxu1 %v1153_v28 }
  0x2b   :  { %482 = vmatprep.mubr.bf16.mxu0 %v1155_v30  ;;  %1090 = vmatprep.mubr.msk.bf16.mxu1 %vm409_vm0, %v1157_v31 }
  0x32   :  { %483 = vmatmul.mubr.bf16.gmra.mxu0 %v1158_v35  ;;  %1091 = vmatmul.mubr.msk.bf16.vlgmr.msra.gmra.mxu1 %vm409_vm0, %v1159_v36 }
  0x33   :  { %490 = vmatprep.mubr.bf16.mxu0 %v1160_v38  ;;  %1094 = vmatprep.mubr.msk.bf16.mxu1 %vm409_vm0, %v1162_v39 }
  0x3a   :  { %491 = vmatmul.mubr.bf16.gmra.mxu0 %v1163_v43  ;;  %1095 = vmatmul.mubr.msk.bf16.gmra.mxu1 %vm409_vm0, %v1164_v44 }
  0x3b   :  { %498 = vmatprep.mubr.bf16.mxu0 %v1165_v46  ;;  %1098 = vmatprep.mubr.msk.bf16.mxu1 %vm409_vm0, %v1167_v47 }
  0x42   :  { %499 = vmatmul.mubr.bf16.gmra.mxu0 %v1168_v51  ;;  %1099 = vmatmul.mubr.msk.bf16.gmra.mxu1 %vm409_vm0, %v1169_v52 }
  0x43   :  { %506 = vmatprep.mubr.bf16.mxu0 %v1170_v54  ;;  %1102 = vmatprep.mubr.msk.bf16.mxu1 %vm409_vm0, %v1172_v55 }
  0x4a   :  { %507 = vmatmul.mubr.bf16.gmra.mxu0 %v1173_v57  ;;  %1103 = vmatmul.mubr.msk.bf16.gmra.mxu1 %vm409_vm0, %v1174_v58 }
  0x84   :  { %v114_v60 = vpop.permute.xlu1 %113 }
  0x88   :  { %v104_v59 = vpop.permute.xlu0 %103  ;;  %v119_v4 = vpop.permute.xlu1 %118 }
  0x8c   :  { %v109_v1 = vpop.permute.xlu0 %108  ;;  %v1413_v12 = vpop.permute.xlu1 %128 }
  0x90   :  { %v1409_v9 = vpop.permute.xlu0 %123  ;;  %v1423_v24 = vpop.permute.xlu1 %138 }
  0x94   :  { %v1419_v19 = vpop.permute.xlu0 %133  ;;  %v1443_v45 = vpop.permute.xlu1 %148 }
  0x98   :  { %v1435_v36 = vpop.permute.xlu0 %143 }
  0xe2   :  { %v1028_v61 = vpop.f32.mrf.mxu0  ;;  %v1399_v62 = vpop.f32.mrf.mxu1 }
  0xe4   :  { %v1029_v63 = vpop.f32.mrf.mxu0  ;;  %v1401_v0 = vpop.f32.mrf.mxu1 }
  0xe5   :  { %v1030_v16 = vadd.f32 %v1029_v63, %v1028_v61 }
  0xe6   :  { %v1031_v2 = vpop.f32.mrf.mxu0  ;;  %v1403_v3 = vpop.f32.mrf.mxu1 }
  0xe7   :  { %v469_v26 = vadd.f32 %v1030_v16, %v104_v59 }
  0xe8   :  { %v1032_v5 = vpop.f32.mrf.mxu0  ;;  %v1405_v6 = vpop.f32.mrf.mxu1 }
  0xe9   :  { %v1033_v27 = vadd.f32 %v1032_v5, %v1031_v2 }
  0xea   :  { %v1034_v7 = vpop.f32.mrf.mxu0  ;;  %v1407_v8 = vpop.f32.mrf.mxu1 }
  0xeb   :  { %v472_v43 = vadd.f32 %v1033_v27, %v109_v1  ;;  %v1455_v1 = vpop.permute.xlu0 %153 }
  0xec   :  { %v1035_v10 = vpop.f32.mrf.mxu0  ;;  %v1411_v11 = vpop.f32.mrf.mxu1 }
  0xed   :  { %v1036_v13 = vadd.f32 %v1035_v10, %v1034_v7 }
  0xee   :  { %v1037_v14 = vpop.f32.mrf.mxu0  ;;  %v1415_v15 = vpop.f32.mrf.mxu1 }
  0xef   :  { %v477_v21 = vadd.f32 %v1036_v13, %v114_v60 }
  0xf0   :  { %v1038_v17 = vpop.f32.mrf.mxu0  ;;  %v1417_v18 = vpop.f32.mrf.mxu1 }
  0xf1   :  { %v1039_v20 = vadd.f32 %v1038_v17, %v1037_v14 }
  0xf2   :  { %v1421_v22 = vpop.f32.mrf.mxu0  ;;  %v1092_v23 = vpop.f32.mrf.mxu1 }
  0xf3   :  { %v1425_v25 = vadd.f32 %v1092_v23, %v477_v21  ;;  %v480_v33 = vadd.f32 %v1039_v20, %v119_v4  ;;  %v1462_v20 = vpop.permute.xlu1 %158 }
  0xf4   :  { %v1427_v28 = vpop.f32.mrf.mxu0  ;;  %v565_v29 = vpop.f32.mrf.mxu1 }
  0xf5   :  { %v630_v30 = vmul.f32 0.25103718, %v1425_v25  ;;  %v710_v31 = vand.u32 2147483647, %v1425_v25  ;;  %v1431_v32 = vadd.f32 %v565_v29, %v469_v26 }
  0xf6   :  { %v1433_v34 = vpop.f32.mrf.mxu0  ;;  %v1093_v35 = vpop.f32.mrf.mxu1 }
  0xf7   :  { %v638_v37 = vadd.f32 1.4854801, %v630_v30  ;;  %v718_v38 = vmul.f32 0.33267534, %v710_v31  ;;  %v628_v39 = vmul.f32 0.25103718, %v1431_v32  ;;  %v1438_v40 = vadd.f32 %v1093_v35, %v480_v33 }
  0xf8   :  { %v708_v41 = vand.u32 2147483647, %v1431_v32  ;;  %v1441_v42 = vpop.f32.mrf.mxu0  ;;  %v568_v44 = vpop.f32.mrf.mxu1 }
  0xf9   :  { %v646_v46 = vmul.f32 %v638_v37, %v1425_v25  ;;  %v726_v47 = vadd.f32 0.38976192, %v718_v38  ;;  %v636_v48 = vadd.f32 1.4854801, %v628_v39  ;;  %v631_v49 = vmul.f32 0.25103718, %v1438_v40 }
  0xfa   :  { %v716_v50 = vmul.f32 0.33267534, %v708_v41  ;;  %v711_v51 = vand.u32 2147483647, %v1438_v40  ;;  %v1448_v52 = vadd.f32 %v568_v44, %v472_v43  ;;  %v1450_v53 = vpop.f32.mrf.mxu0  ;;  %v1452_v54 = vpop.f32.mrf.mxu1  ;;  %v1066_v39 = vadd.f32 %v1401_v0, %v1399_v62 }
  0xfb   :  { %v654_v55 = vadd.f32 3.0520265, %v646_v46  ;;  %v734_v56 = vmul.f32 %v726_v47, %v710_v31  ;;  %v639_v57 = vadd.f32 1.4854801, %v631_v49  ;;  %v644_v4 = vmul.f32 %v636_v48, %v1431_v32 }
  0xfc   :  { %v724_v58 = vadd.f32 0.38976192, %v716_v50  ;;  %v719_v59 = vmul.f32 0.33267534, %v711_v51  ;;  %v629_v60 = vmul.f32 0.25103718, %v1448_v52  ;;  %v1047_v61 = vpop.f32.mrf.mxu0  ;;  %v581_v63 = vpop.f32.mrf.mxu1  ;;  %v1069_v49 = vadd.f32 %v1405_v6, %v1403_v3 }
  0xfd   :  { %v742_v2 = vadd.f32 2.3816075, %v734_v56  ;;  %v647_v5 = vmul.f32 %v639_v57, %v1438_v40  ;;  %v709_v14 = vand.u32 2147483647, %v1448_v52  ;;  %v662_v21 = vmul.f32 %v654_v55, %v1425_v25  ;;  %v164_v57 = vpop.permute.xlu0 %163 }
  0xfe   :  { %v732_v7 = vmul.f32 %v724_v58, %v708_v41  ;;  %v727_v10 = vadd.f32 0.38976192, %v719_v59  ;;  %v637_v13 = vadd.f32 1.4854801, %v629_v60  ;;  %v1049_v16 = vpop.f32.mrf.mxu0  ;;  %v1460_v17 = vpop.f32.mrf.mxu1  ;;  %v652_v37 = vadd.f32 3.0520265, %v644_v4 }
  0xff   :  { %v750_v23 = vmul.f32 %v742_v2, %v710_v31  ;;  %v655_v26 = vadd.f32 3.0520265, %v647_v5  ;;  %v717_v33 = vmul.f32 0.33267534, %v709_v14  ;;  %v670_v50 = vadd.f32 2.323352, %v662_v21  ;;  %v169_v4 = vpop.permute.xlu1 %168 }
 0x100   :  { %v740_v27 = vadd.f32 2.3816075, %v732_v7  ;;  %v735_v29 = vmul.f32 %v727_v10, %v711_v51  ;;  %v645_v30 = vmul.f32 %v637_v13, %v1448_v52  ;;  %v1050_v47 = vpop.f32.mrf.mxu0  ;;  %v584_v48 = vpop.f32.mrf.mxu1  ;;  %v1042_v56 = vadd.f32 %v1427_v28, %v1421_v22 }
 0x101   :  { %v758_v35 = vadd.f32 1.1413246, %v750_v23  ;;  %v663_v38 = vmul.f32 %v655_v26, %v1438_v40  ;;  %v725_v46 = vadd.f32 0.38976192, %v717_v33  ;;  %v660_v62 = vmul.f32 %v652_v37, %v1431_v32 }
 0x102   :  { %v748_v43 = vmul.f32 %v740_v27, %v708_v41  ;;  %v743_v44 = vadd.f32 2.3816075, %v735_v29  ;;  %v653_v60 = vadd.f32 3.0520265, %v645_v30  ;;  %v1474_v23 = vpop.f32.mrf.mxu0  ;;  %v1476_v3 = vpop.f32.mrf.mxu1  ;;  %v1478_v6 = vadd.f32 %v1066_v39, %v164_v57 }
 0x103   :  { %v766_v55 = vmul.f32 %v758_v35, %v710_v31  ;;  %v733_v2 = vmul.f32 %v725_v46, %v709_v14  ;;  %v671_v0 = vadd.f32 2.323352, %v663_v38  ;;  %v678_v22 = vmul.f32 %v670_v50, %v1425_v25 }
 0x104   :  { %v756_v58 = vadd.f32 1.1413246, %v748_v43  ;;  %v751_v59 = vmul.f32 %v743_v44, %v711_v51  ;;  %v1045_v28 = vadd.f32 %v1441_v42, %v1433_v34  ;;  %v485_v31 = vadd.f32 %v1042_v56, %v1409_v9  ;;  %v1491_v34 = vpop.f32.mrf.mxu0  ;;  %v1493_v9 = vpop.f32.mrf.mxu1 }
 0x105   :  { %v774_v5 = vadd.f32 1.0, %v766_v55  ;;  %v741_v13 = vadd.f32 2.3816075, %v733_v2  ;;  %v1484_v21 = vadd.f32 %v1069_v49, %v169_v4  ;;  %v668_v29 = vadd.f32 2.323352, %v660_v62 }
 0x106   :  { %v764_v7 = vmul.f32 %v756_v58, %v708_v41  ;;  %v759_v10 = vadd.f32 1.1413246, %v751_v59  ;;  %v661_v41 = vmul.f32 %v653_v60, %v1448_v52  ;;  %v679_v30 = vmul.f32 %v671_v0, %v1438_v40  ;;  %v1508_v58 = vpop.f32.mrf.mxu0 }
 0x107   :  { %v749_v27 = vmul.f32 %v741_v13, %v709_v14  ;;  %v1048_v33 = vadd.f32 %v1047_v61, %v1450_v53  ;;  %v1489_v35 = vadd.f32 %v581_v63, %v485_v31  ;;  %1175 = vrcp.f32 %v774_v5 }
 0x108   :  { %v767_v26 = vmul.f32 %v759_v10, %v711_v51  ;;  %v772_v37 = vadd.f32 1.0, %v764_v7  ;;  %v686_v42 = vadd.f32 0.6183774, %v678_v22  ;;  %v488_v44 = vadd.f32 %v1045_v28, %v1413_v12  ;;  %v1510_v12 = vpop.f32.mrf.mxu1  ;;  %v1533_v7 = vpop.f32.mrf.mxu0 }
 0x109   :  { %v757_v39 = vadd.f32 1.1413246, %v749_v27  ;;  %v493_v51 = vadd.f32 %v1048_v33, %v1419_v19  ;;  %v1497_v43 = vand.u32 2147483647, %v1489_v35  ;;  %v669_v53 = vadd.f32 2.323352, %v661_v41 }
 0x10a   :  { %v775_v38 = vadd.f32 1.0, %v767_v26  ;;  %v1051_v63 = vadd.f32 %v1050_v47, %v1049_v16  ;;  %v676_v46 = vmul.f32 %v668_v29, %v1431_v32  ;;  %v1505_v55 = vadd.f32 %v584_v48, %v488_v44  ;;  %v1535_v10 = vpop.f32.mrf.mxu1 }
 0x10b   :  { %v765_v61 = vmul.f32 %v757_v39, %v709_v14  ;;  %v1502_v49 = vadd.f32 %v1452_v54, %v493_v51  ;;  %v720_v50 = vmul.f32 0.33267534, %v1497_v43  ;;  %v687_v19 = vadd.f32 0.6183774, %v679_v30  ;;  %v1548_v51 = vpop.f32.mrf.mxu0 }
 0x10c   :  { %1177 = vrcp.f32 %v775_v38  ;;  %v496_v57 = vadd.f32 %v1051_v63, %v1423_v24  ;;  %v1514_v14 = vadd.f32 %v1411_v11, %v1407_v8  ;;  %v677_v48 = vmul.f32 %v669_v53, %v1448_v52 }
 0x10d   :  { %1179 = vrcp.f32 %v772_v37  ;;  %v773_v56 = vadd.f32 1.0, %v765_v61  ;;  %v634_v54 = vmul.f32 0.25103718, %v1502_v49  ;;  %v1518_v16 = vand.u32 2147483647, %v1502_v49 }
 0x10e   :  { %v728_v47 = vadd.f32 0.38976192, %v720_v50  ;;  %v632_v59 = vmul.f32 0.25103718, %v1489_v35  ;;  %v1523_v24 = vadd.f32 %v1460_v17, %v496_v57  ;;  %v633_v11 = vmul.f32 0.25103718, %v1505_v55 }
 0x10f   :  { %1181 = vrcp.f32 %v773_v56  ;;  %v642_v60 = vadd.f32 1.4854801, %v634_v54  ;;  %v722_v2 = vmul.f32 0.33267534, %v1518_v16  ;;  %v694_v4 = vmul.f32 %v686_v42, %v1425_v25 }
 0x110   :  { %v736_v8 = vmul.f32 %v728_v47, %v1497_v43  ;;  %v684_v62 = vadd.f32 0.6183774, %v676_v46  ;;  %v635_v0 = vmul.f32 0.25103718, %v1523_v24  ;;  %v1531_v5 = vand.u32 2147483647, %v1523_v24 }
 0x111   :  { %v650_v17 = vmul.f32 %v642_v60, %v1502_v49  ;;  %v730_v13 = vadd.f32 0.38976192, %v722_v2  ;;  %v1539_v28 = vand.u32 2147483647, %v1505_v55  ;;  %v695_v31 = vmul.f32 %v687_v19, %v1438_v40  ;;  %v1550_v40 = vpop.f32.mrf.mxu1 }
 0x112   :  { %v744_v22 = vadd.f32 2.3816075, %v736_v8  ;;  %v685_v25 = vadd.f32 0.6183774, %v677_v48  ;;  %v643_v26 = vadd.f32 1.4854801, %v635_v0  ;;  %v1075_v37 = vadd.f32 %v1417_v18, %v1415_v15  ;;  %v1059_v8 = vpop.f32.mrf.mxu0 }
 0x113   :  { %v723_v41 = vmul.f32 0.33267534, %v1531_v5  ;;  %v658_v27 = vadd.f32 3.0520265, %v650_v17  ;;  %v738_v29 = vmul.f32 %v730_v13, %v1518_v16  ;;  %v640_v30 = vadd.f32 1.4854801, %v632_v59  ;;  %v174_v13 = vpop.permute.xlu0 %173 }
 0x114   :  { %v641_v33 = vadd.f32 1.4854801, %v633_v11  ;;  %v752_v38 = vmul.f32 %v744_v22, %v1497_v43  ;;  %v651_v39 = vmul.f32 %v643_v26, %v1523_v24  ;;  %v1176_v44 = vpop.eup %1175  ;;  %v702_v53 = vadd.f32 0.02979246, %v694_v4  ;;  %v613_v11 = vpop.f32.mrf.mxu1 }
 0x115   :  { %v731_v42 = vadd.f32 0.38976192, %v723_v41  ;;  %v692_v61 = vmul.f32 %v684_v62, %v1431_v32  ;;  %v746_v63 = vadd.f32 2.3816075, %v738_v29  ;;  %v721_v46 = vmul.f32 0.33267534, %v1539_v28 }
 0x116   :  { %v703_v50 = vadd.f32 0.02979246, %v695_v31  ;;  %v693_v19 = vmul.f32 %v685_v25, %v1448_v52  ;;  %v659_v15 = vadd.f32 3.0520265, %v651_v39  ;;  %v666_v57 = vmul.f32 %v658_v27, %v1502_v49  ;;  %v179_v27 = vpop.permute.xlu1 %178 }
 0x117   :  { %v739_v18 = vmul.f32 %v731_v42, %v1531_v5  ;;  %v754_v54 = vmul.f32 %v746_v63, %v1518_v16  ;;  %v648_v47 = vmul.f32 %v640_v30, %v1489_v35  ;;  %v649_v48 = vmul.f32 %v641_v33, %v1505_v55  ;;  %v1105_v63 = vpop.f32.mrf.mxu1 }
 0x118   :  { %v790_v59 = vmul.f32 %v1176_v44, %v702_v53  ;;  %v760_v60 = vadd.f32 1.1413246, %v752_v38  ;;  %v700_v52 = vadd.f32 0.02979246, %v692_v61  ;;  %v667_v0 = vmul.f32 %v659_v15, %v1523_v24  ;;  %v1061_v61 = vpop.f32.mrf.mxu0 }
 0x119   :  { %v1178_v56 = vpop.eup %1177  ;;  %v747_v2 = vadd.f32 2.3816075, %v739_v18  ;;  %v762_v62 = vadd.f32 1.1413246, %v754_v54  ;;  %v729_v17 = vadd.f32 0.38976192, %v721_v46  ;;  %v1054_v26 = vadd.f32 %v1491_v34, %v1474_v23 }
 0x11a   :  { %v791_v32 = vmul.f32 %v1178_v56, %v703_v50  ;;  %v1180_v4 = vpop.eup %1179  ;;  %v701_v31 = vadd.f32 0.02979246, %v693_v19  ;;  %v674_v29 = vadd.f32 2.323352, %v666_v57  ;;  %v656_v33 = vadd.f32 3.0520265, %v648_v47 }
 0x11b   :  { %v755_v25 = vmul.f32 %v747_v2, %v1531_v5  ;;  %v770_v30 = vmul.f32 %v762_v62, %v1518_v16  ;;  %v657_v38 = vadd.f32 3.0520265, %v649_v48  ;;  %v788_v39 = vmul.f32 %v1180_v4, %v700_v52  ;;  %v616_v48 = vpop.f32.mrf.mxu1 }
 0x11c   :  { %v974_v22 = vpack.c.bf16 %v791_v32, %v790_v59  ;;  %v1182_v41 = vpop.eup %1181  ;;  %v768_v44 = vmul.f32 %v760_v60, %v1497_v43  ;;  %v525_v23 = vadd.f32 %v1514_v14, %v174_v13  ;;  %v675_v46 = vadd.f32 2.323352, %v667_v0 }
 0x11d   :  { %v789_v42 = vmul.f32 %v1182_v41, %v701_v31  ;;  %v763_v53 = vadd.f32 1.1413246, %v755_v25  ;;  %v778_v34 = vadd.f32 1.0, %v770_v30  ;;  %v737_v50 = vmul.f32 %v729_v17, %v1539_v28 }
 0x11e   :  { %1006 = vst [vmem:[%s1622_s3 + $0x8] sm:$0xff] %v974_v22   ;;  %v528_v16 = vadd.f32 %v1075_v37, %v179_v27  ;;  %v501_v18 = vadd.f32 %v1054_v26, %v1435_v36  ;;  %v682_v56 = vmul.f32 %v674_v29, %v1502_v49  ;;  %v664_v57 = vmul.f32 %v656_v33, %v1489_v35 }
 0x11f   :  { %v969_v19 = vpack.c.bf16 %v789_v42, %v788_v39  ;;  %v771_v15 = vmul.f32 %v763_v53, %v1531_v5  ;;  %v665_v43 = vmul.f32 %v657_v38, %v1505_v55  ;;  %v745_v54 = vadd.f32 2.3816075, %v737_v50  ;;  %v1062_v5 = vpop.f32.mrf.mxu0 }
 0x120   :  { %1183 = vrcp.f32 %v778_v34  ;;  %v776_v14 = vadd.f32 1.0, %v768_v44  ;;  %v1057_v37 = vadd.f32 %v1533_v7, %v1508_v58  ;;  %v683_v36 = vmul.f32 %v675_v46, %v1523_v24 }
 0x121   :  { %970 = vst [vmem:[%s1622_s3] sm:$0xff] %v969_v19   ;;  %v779_v47 = vadd.f32 1.0, %v771_v15  ;;  %v753_v59 = vmul.f32 %v745_v54, %v1539_v28  ;;  %v622_v32 = vadd.f32 %v1550_v40, %v525_v23  ;;  %v1060_v60 = vadd.f32 %v1059_v8, %v1548_v51 }
 0x122   :  { %v504_v2 = vadd.f32 %v1057_v37, %v1443_v45  ;;  %v614_v4 = vadd.f32 %v613_v11, %v1478_v6  ;;  %v625_v52 = vadd.f32 %v1105_v63, %v528_v16  ;;  %v1063_v58 = vadd.f32 %v1062_v5, %v1061_v61 }
 0x123   :  { %1185 = vrcp.f32 %v779_v47  ;;  %v761_v62 = vadd.f32 1.1413246, %v753_v59  ;;  %v509_v0 = vadd.f32 %v1060_v60, %v1455_v1  ;;  %v617_v7 = vadd.f32 %v616_v48, %v1484_v21 }
 0x124   :  { %v672_v17 = vadd.f32 2.323352, %v664_v57  ;;  %v598_v13 = vadd.f32 %v1493_v9, %v501_v18  ;;  %v601_v22 = vadd.f32 %v1535_v10, %v504_v2  ;;  %v1004_v40 = vpack.c.bf16 %v625_v52, %v622_v32 }
 0x125   :  { %v673_v31 = vadd.f32 2.323352, %v665_v43  ;;  %v769_v51 = vmul.f32 %v761_v62, %v1539_v28  ;;  %v512_v45 = vadd.f32 %v1063_v58, %v1462_v20  ;;  %v999_v8 = vpack.c.bf16 %v617_v7, %v614_v4 }
 0x126   :  { %v690_v6 = vadd.f32 0.6183774, %v682_v56  ;;  %v691_v11 = vadd.f32 0.6183774, %v683_v36  ;;  %v989_v25 = vpack.c.bf16 %v601_v22, %v598_v13  ;;  %1011 = vst [vmem:[%s1623_s4 + $0x18] sm:$0xff] %v1004_v40   ;;  %1187 = vrcp.f32 %v776_v14 }
 0x127   :  { %v777_v1 = vadd.f32 1.0, %v769_v51  ;;  %v606_v21 = vadd.f32 %v1476_v3, %v509_v0  ;;  %v609_v9 = vadd.f32 %v1510_v12, %v512_v45  ;;  %1010 = vst [vmem:[%s1623_s4 + $0x10] sm:$0xff] %v999_v8   ;;  %v680_v20 = vmul.f32 %v672_v17, %v1489_v35 }
 0x128   :  { %990 = vst [vmem:[%s1623_s4] sm:$0xff] %v989_v25   ;;  %v681_v10 = vmul.f32 %v673_v31, %v1505_v55  ;;  %v698_v26 = vmul.f32 %v690_v6, %v1502_v49  ;;  %v699_v3 = vmul.f32 %v691_v11, %v1523_v24 }
 0x129   :  { %1189 = vrcp.f32 %v777_v1  ;;  %v994_v28 = vpack.c.bf16 %v609_v9, %v606_v21  ;;  %v688_v41 = vadd.f32 0.6183774, %v680_v20 }
 0x12a   :  { %v689_v27 = vadd.f32 0.6183774, %v681_v10  ;;  %v706_v29 = vadd.f32 0.02979246, %v698_v26  ;;  %v707_v30 = vadd.f32 0.02979246, %v699_v3 }
 0x12b   :  { %1009 = vst [vmem:[%s1623_s4 + $0x8] sm:$0xff] %v994_v28   ;;  %v696_v42 = vmul.f32 %v688_v41, %v1489_v35 }
 0x12c   :  { %v697_v44 = vmul.f32 %v689_v27, %v1505_v55 }
 0x12d   :  { %v1184_v12 = vpop.eup %1183  ;;  %v704_v24 = vadd.f32 0.02979246, %v696_v42 }
 0x12e   :  { %v794_v38 = vmul.f32 %v1184_v12, %v706_v29  ;;  %v705_v61 = vadd.f32 0.02979246, %v697_v44 }
 0x130   :  { %v1186_v33 = vpop.eup %1185 }
 0x131   :  { %v795_v39 = vmul.f32 %v1186_v33, %v707_v30 }
 0x133   :  { %v984_v53 = vpack.c.bf16 %v795_v39, %v794_v38  ;;  %v1188_v49 = vpop.eup %1187 }
 0x134   :  { %v792_v23 = vmul.f32 %v1188_v49, %v704_v24 }
 0x135   :  { %1008 = vst [vmem:[%s1622_s3 + $0x18] sm:$0xff] %v984_v53  }
 0x136   :  { %v1190_v63 = vpop.eup %1189 }
 0x137   :  { %v793_v34 = vmul.f32 %v1190_v63, %v705_v61 }
 0x139   :  { %v979_v46 = vpack.c.bf16 %v793_v34, %v792_v23 }
 0x13b   :  { %1007 = vst [vmem:[%s1622_s3 + $0x10] sm:$0xff] %v979_v46  }

// kernel: _lambda_.13
= control target key start
LH: loop header
LB: loop body
LE: loop exit
PB: predicated region body
PF: predicated region fallthrough
CT: control target
= control target key end

     0   :  { %v1235_v1 = vmov 0   ;;  %vm478_vm0 = vcmask 523264   ;;  %s1636_s2 = inlined_call_operand.vmem [shape: bf16[576,128], index: 2, kind: input, shape index: {}]   ;;  %s1637_s0 = inlined_call_operand.vmem [shape: bf16[64,576], index: 0, kind: input, shape index: {}]   ;;  %s1638_s1 = inlined_call_operand.vmem [shape: f32[64,1], index: 1, kind: input, shape index: {}]   ;;  %s1639_s3 = inlined_call_operand.vmem [shape: bf16[64,128], index: 3, kind: input, shape index: {}]   ;;  %s1640_s4 = inlined_call_operand.vmem [shape: bf16[64,128], index: 4, kind: output, shape index: {}]  }
   0x1   :  { %v1155_v0 = vld [vmem:[%s1636_s2 + $0x78] sm:$0xff]   ;;  %1153 = vset.pattern.permute.xlu0 %v1235_v1  ;;  %1154 = vset.pattern.permute.xlu1 %v1235_v1  ;;  %v1159_v5 = vld [vmem:[%s1636_s2 + $0x70] sm:$0xff]   ;;  %v1163_v9 = vld [vmem:[%s1636_s2 + $0x68] sm:$0xff]  }
   0x2   :  { %v1156_v2 = vld [vmem:[%s1636_s2 + $0xf8] sm:$0xff]   ;;  %1040 = vmatprep.subr.bf16.mxu0 %v1155_v0  ;;  %v1160_v6 = vld [vmem:[%s1636_s2 + $0xf0] sm:$0xff]   ;;  %v1164_v10 = vld [vmem:[%s1636_s2 + $0xe8] sm:$0xff]  }
   0x3   :  { %v1157_v3 = vld [vmem:[%s1636_s2 + $0x38] sm:$0xff]   ;;  %1080 = vmatprep.subr.bf16.mxu1 %v1156_v2  ;;  %v1161_v7 = vld [vmem:[%s1636_s2 + $0x30] sm:$0xff]   ;;  %v1165_v11 = vld [vmem:[%s1636_s2 + $0x28] sm:$0xff]  }
   0x4   :  { %v1158_v4 = vld [vmem:[%s1636_s2 + $0xb8] sm:$0xff]   ;;  %1041 = vmatpush3.bf16.msra.mxu0 %v1157_v3  ;;  %v1162_v8 = vld [vmem:[%s1636_s2 + $0xb0] sm:$0xff]   ;;  %v1166_v12 = vld [vmem:[%s1636_s2 + $0xa8] sm:$0xff]  }
   0x5   :  { %1081 = vmatpush3.bf16.msra.mxu1 %v1158_v4  ;;  %1042 = vmatprep.subr.bf16.mxu0 %v1159_v5  ;;  %v1167_v13 = vld [vmem:[%s1636_s2 + $0x60] sm:$0xff]   ;;  %v1171_v17 = vld [vmem:[%s1636_s2 + $0x58] sm:$0xff]   ;;  %v1175_v21 = vld [vmem:[%s1636_s2 + $0x50] sm:$0xff]  }
   0x6   :  { %1082 = vmatprep.subr.bf16.mxu1 %v1160_v6  ;;  %v1168_v14 = vld [vmem:[%s1636_s2 + $0xe0] sm:$0xff]   ;;  %v1172_v18 = vld [vmem:[%s1636_s2 + $0xd8] sm:$0xff]   ;;  %v1176_v22 = vld [vmem:[%s1636_s2 + $0xd0] sm:$0xff]  }
   0x7   :  { %v1169_v15 = vld [vmem:[%s1636_s2 + $0x20] sm:$0xff]   ;;  %v1173_v19 = vld [vmem:[%s1636_s2 + $0x18] sm:$0xff]   ;;  %v1177_v23 = vld [vmem:[%s1636_s2 + $0x10] sm:$0xff]  }
   0x8   :  { %1043 = vmatpush3.bf16.msra.mxu0 %v1161_v7  ;;  %v1170_v16 = vld [vmem:[%s1636_s2 + $0xa0] sm:$0xff]   ;;  %v1174_v20 = vld [vmem:[%s1636_s2 + $0x98] sm:$0xff]   ;;  %v1178_v24 = vld [vmem:[%s1636_s2 + $0x90] sm:$0xff]  }
   0x9   :  { %1083 = vmatpush3.bf16.msra.mxu1 %v1162_v8  ;;  %1044 = vmatprep.subr.bf16.mxu0 %v1163_v9  ;;  %v1179_v25 = vld [vmem:[%s1636_s2 + $0x48] sm:$0xff]   ;;  %v1183_v29 = vld [vmem:[%s1636_s2 + $0x40] sm:$0xff]   ;;  %v1193_v37 = vld [vmem:[%s1636_s2 + $0x118] sm:$0xff]  }
   0xa   :  { %1084 = vmatprep.subr.bf16.mxu1 %v1164_v10  ;;  %v1180_v26 = vld [vmem:[%s1636_s2 + $0xc8] sm:$0xff]   ;;  %v1184_v30 = vld [vmem:[%s1636_s2 + $0xc0] sm:$0xff]   ;;  %v1200_v40 = vld [vmem:[%s1636_s2 + $0x110] sm:$0xff]  }
   0xb   :  { %v1181_v27 = vld [vmem:[%s1636_s2 + $0x8] sm:$0xff]   ;;  %v1185_v31 = vld [vmem:[%s1636_s2] sm:$0xff]   ;;  %v1203_v44 = vld [vmem:[%s1637_s0 + $0x5c] ss:$20 sps:$4 sm:$0xff]  }
   0xc   :  { %1045 = vmatpush3.bf16.msra.mxu0 %v1165_v11  ;;  %v1182_v28 = vld [vmem:[%s1636_s2 + $0x88] sm:$0xff]   ;;  %v1186_v32 = vld [vmem:[%s1636_s2 + $0x80] sm:$0xff]   ;;  %v1208_v49 = vld [vmem:[%s1637_s0 + $0x7c] ss:$20 sps:$4 sm:$0xff]  }
   0xd   :  { %1085 = vmatpush3.bf16.msra.mxu1 %v1166_v12  ;;  %1046 = vmatprep.subr.bf16.mxu0 %v1167_v13  ;;  %v1187_v33 = vld [vmem:[%s1637_s0] ss:$20 sps:$4 sm:$0xff]   ;;  %v1189_v34 = vld [vmem:[%s1637_s0 + $0x4] ss:$20 sps:$4 sm:$0xff]   ;;  %v1190_v35 = vld [vmem:[%s1637_s0 + $0x8] ss:$20 sps:$4 sm:$0xff]  }
   0xe   :  { %1086 = vmatprep.subr.bf16.mxu1 %v1168_v14  ;;  %v1192_v36 = vld [vmem:[%s1637_s0 + $0xc] ss:$20 sps:$4 sm:$0xff]   ;;  %523 = vmatprep.mubr.bf16.mxu0 %v1189_v34  ;;  %v1196_v39 = vld [vmem:[%s1637_s0 + $0x34] ss:$20 sps:$4 sm:$0xff]   ;;  %v1199_v42 = vld [vmem:[%s1637_s0 + $0x30] ss:$20 sps:$4 sm:$0xff]  }
   0xf   :  { %588 = vmatprep.mubr.bf16.mxu1 %v1192_v36  ;;  %v1194_v38 = vld [vmem:[%s1637_s0 + $0x2c] ss:$20 sps:$4 sm:$0xff]   ;;  %v1198_v41 = vld [vmem:[%s1637_s0 + $0x28] ss:$20 sps:$4 sm:$0xff]   ;;  %v1205_v47 = vld [vmem:[%s1637_s0 + $0x50] ss:$20 sps:$4 sm:$0xff]  }
  0x10   :  { %1047 = vmatpush3.bf16.msra.mxu0 %v1169_v15  ;;  %v1201_v43 = vld [vmem:[%s1637_s0 + $0x54] ss:$20 sps:$4 sm:$0xff]   ;;  %v1214_v46 = vld [vmem:[%s1636_s2 + $0x100] sm:$0xff]   ;;  %v1206_v48 = vld [vmem:[%s1637_s0 + $0x58] ss:$20 sps:$4 sm:$0xff]  }
  0x11   :  { %1087 = vmatpush3.bf16.msra.mxu1 %v1170_v16  ;;  %1048 = vmatprep.subr.bf16.mxu0 %v1171_v17  ;;  %v1207_v45 = vld [vmem:[%s1636_s2 + $0x108] sm:$0xff]   ;;  %v1210_v50 = vld [vmem:[%s1637_s0 + $0x84] ss:$20 sps:$4 sm:$0xff]   ;;  %v116_v52 = vld [vmem:[%s1638_s1 + $0x10] sm:$0xff] }
  0x12   :  { %1088 = vmatprep.subr.bf16.mxu1 %v1172_v18  ;;  %v114_v51 = vld [vmem:[%s1638_s1] sm:$0xff]  ;;  %v115_v53 = vld [vmem:[%s1638_s1 + $0x8] sm:$0xff]  ;;  %134 = vperm.xlu1 %1154, %v116_v52   ;;  %v117_v54 = vld [vmem:[%s1638_s1 + $0x18] sm:$0xff] }
  0x13   :  { %124 = vperm.xlu0 %1153, %v114_v51   ;;  %v1212_v55 = vld [vmem:[%s1637_s0 + $0x78] ss:$20 sps:$4 sm:$0xff]   ;;  %v1213_v56 = vld [vmem:[%s1637_s0 + $0x80] ss:$20 sps:$4 sm:$0xff]   ;;  %v1215_v57 = vld [vmem:[%s1637_s0 + $0x10] ss:$20 sps:$4 sm:$0xff]  }
  0x14   :  { %1049 = vmatpush3.bf16.msra.mxu0 %v1173_v19  ;;  %v118_v58 = vld [vmem:[%s1638_s1 + $0x20] sm:$0xff]  ;;  %v119_v60 = vld [vmem:[%s1638_s1 + $0x28] sm:$0xff]  ;;  %v120_v61 = vld [vmem:[%s1638_s1 + $0x30] sm:$0xff] }
  0x15   :  { %1089 = vmatpush3.bf16.msra.mxu1 %v1174_v20  ;;  %1050 = vmatprep.subr.bf16.mxu0 %v1175_v21  ;;  %v1216_v59 = vld [vmem:[%s1637_s0 + $0x60] ss:$20 sps:$4 sm:$0xff]   ;;  %v121_v62 = vld [vmem:[%s1638_s1 + $0x38] sm:$0xff] }
  0x16   :  { %1090 = vmatprep.subr.bf16.mxu1 %v1176_v22  ;;  %139 = vperm.xlu1 %1154, %v117_v54   ;;  %v1217_v63 = vld [vmem:[%s1637_s0 + $0x38] ss:$20 sps:$4 sm:$0xff]   ;;  %v1218_v0 = vld [vmem:[%s1637_s0 + $0x88] ss:$20 sps:$4 sm:$0xff]  }
  0x17   :  { %129 = vperm.xlu0 %1153, %v115_v53  }
  0x18   :  { %1051 = vmatpush3.bf16.msra.mxu0 %v1177_v23 }
  0x19   :  { %1091 = vmatpush3.bf16.msra.mxu1 %v1178_v24  ;;  %1052 = vmatprep.subr.bf16.mxu0 %v1179_v25 }
  0x1a   :  { %1092 = vmatprep.subr.bf16.mxu1 %v1180_v26  ;;  %149 = vperm.xlu1 %1154, %v119_v60  }
  0x1b   :  { %144 = vperm.xlu0 %1153, %v118_v58  }
  0x1c   :  { %1053 = vmatpush3.bf16.msra.mxu0 %v1181_v27 }
  0x1d   :  { %1093 = vmatpush3.bf16.msra.mxu1 %v1182_v28  ;;  %1054 = vmatprep.subr.bf16.mxu0 %v1183_v29 }
  0x1e   :  { %1094 = vmatprep.subr.bf16.mxu1 %v1184_v30  ;;  %159 = vperm.xlu1 %1154, %v121_v62  }
  0x1f   :  { %154 = vperm.xlu0 %1153, %v120_v61  }
  0x20   :  { %1055 = vmatpush3.bf16.msra.mxu0 %v1185_v31 }
  0x21   :  { %1095 = vmatpush3.bf16.msra.mxu1 %v1186_v32  ;;  %1128 = vmatprep.subr.bf16.mxu0 %v1193_v37 }
  0x22   :  { %1144 = vmatprep.subr.bf16.mxu1 %v1193_v37 }
  0x23   :  { %524 = vmatmul.mubr.bf16.vlgmr.msra.gmra.mxu0 %v1187_v33 }
  0x24   :  { %589 = vmatmul.mubr.bf16.vlgmr.msra.gmra.mxu1 %v1190_v35  ;;  %1129 = vmatpush3.bf16.msra.mxu0 %v1193_v37 }
  0x25   :  { %1148 = vmatpush3.bf16.msra.mxu1 %v1193_v37  ;;  %531 = vmatprep.mubr.bf16.mxu0 %v1194_v38 }
  0x26   :  { %596 = vmatprep.mubr.bf16.mxu1 %v1196_v39  ;;  %1130 = vmatprep.subr.bf16.mxu0 %v1200_v40 }
  0x27   :  { %1145 = vmatprep.subr.bf16.mxu1 %v1200_v40 }
  0x28   :  { %1131 = vmatpush3.bf16.msra.mxu0 %v1200_v40 }
  0x29   :  { %1149 = vmatpush3.bf16.msra.mxu1 %v1200_v40  ;;  %1132 = vmatprep.subr.bf16.mxu0 %v1207_v45  ;;  %v1486_v40 = vld [vmem:[%s1639_s3 + $0x8] sm:$0xff]  }
  0x2a   :  { %1146 = vmatprep.subr.bf16.mxu1 %v1207_v45  ;;  %v1004_v53 = vunpack.c.l.bf16 %v1486_v40 }
  0x2b   :  { %532 = vmatmul.mubr.bf16.gmra.mxu0 %v1198_v41 }
  0x2c   :  { %597 = vmatmul.mubr.bf16.gmra.mxu1 %v1199_v42  ;;  %539 = vmatprep.mubr.bf16.mxu0 %v1201_v43 }
  0x2d   :  { %604 = vmatprep.mubr.bf16.mxu1 %v1203_v44  ;;  %1133 = vmatpush3.bf16.msra.mxu0 %v1207_v45 }
  0x2e   :  { %1150 = vmatpush3.bf16.msra.mxu1 %v1207_v45  ;;  %1134 = vmatprep.subr.bf16.mxu0 %v1214_v46 }
  0x2f   :  { %1147 = vmatprep.subr.bf16.mxu1 %v1214_v46 }
  0x31   :  { %1135 = vmatpush3.bf16.msra.mxu0 %v1214_v46 }
  0x32   :  { %1151 = vmatpush3.bf16.msra.mxu1 %v1214_v46 }
  0x33   :  { %540 = vmatmul.mubr.bf16.gmra.mxu0 %v1205_v47  ;;  %v1491_v47 = vld [vmem:[%s1639_s3 + $0x18] sm:$0xff]  }
  0x34   :  { %605 = vmatmul.mubr.bf16.gmra.mxu1 %v1206_v48  ;;  %547 = vmatprep.mubr.bf16.mxu0 %v1208_v49  ;;  %v1496_v49 = vld [vmem:[%s1639_s3] sm:$0xff]  }
  0x35   :  { %612 = vmatprep.mubr.bf16.mxu1 %v1210_v50  ;;  %v1000_v61 = vunpack.c.l.bf16 %v1496_v49 }
  0x3b   :  { %548 = vmatmul.mubr.bf16.gmra.mxu0 %v1212_v55 }
  0x3c   :  { %613 = vmatmul.mubr.bf16.gmra.mxu1 %v1213_v56  ;;  %1136 = vmatprep.mubr.msk.bf16.mxu0 %vm478_vm0, %v1215_v57  ;;  %v1012_v57 = vunpack.c.l.bf16 %v1491_v47 }
  0x3d   :  { %1140 = vmatprep.mubr.msk.bf16.mxu1 %vm478_vm0, %v1216_v59 }
  0x43   :  { %1137 = vmatmul.mubr.msk.bf16.vlgmr.msra.gmra.mxu0 %vm478_vm0, %v1217_v63 }
  0x44   :  { %1141 = vmatmul.mubr.msk.bf16.vlgmr.msra.gmra.mxu1 %vm478_vm0, %v1218_v0 }
  0x8d   :  { %v135_v28 = vpop.permute.xlu1 %134 }
  0x8e   :  { %v125_v13 = vpop.permute.xlu0 %124 }
  0x91   :  { %v140_v43 = vpop.permute.xlu1 %139 }
  0x92   :  { %v1473_v20 = vpop.permute.xlu0 %129 }
  0x96   :  { %v145_v25 = vpop.permute.xlu0 %144 }
  0x9a   :  { %v155_v38 = vpop.permute.xlu0 %154 }
  0xe3   :  { %v1056_v1 = vpop.f32.mrf.mxu0 }
  0xe4   :  { %v1096_v2 = vpop.f32.mrf.mxu1 }
  0xe5   :  { %v1057_v3 = vpop.f32.mrf.mxu0 }
  0xe6   :  { %v1097_v4 = vpop.f32.mrf.mxu1  ;;  %v1058_v31 = vadd.f32 %v1057_v3, %v1056_v1  ;;  %v150_v1 = vpop.permute.xlu1 %149 }
  0xe7   :  { %v1457_v5 = vpop.f32.mrf.mxu0  ;;  %v1098_v50 = vadd.f32 %v1097_v4, %v1096_v2 }
  0xe8   :  { %v1459_v6 = vpop.f32.mrf.mxu1  ;;  %v526_v41 = vadd.f32 %v1058_v31, %v125_v13 }
  0xe9   :  { %v1461_v7 = vpop.f32.mrf.mxu0 }
  0xea   :  { %v1463_v8 = vpop.f32.mrf.mxu1  ;;  %v591_v60 = vadd.f32 %v1098_v50, %v526_v41 }
  0xeb   :  { %v1062_v9 = vpop.f32.mrf.mxu0 }
  0xec   :  { %v1102_v10 = vpop.f32.mrf.mxu1 }
  0xed   :  { %v1063_v11 = vpop.f32.mrf.mxu0 }
  0xee   :  { %v1103_v12 = vpop.f32.mrf.mxu1  ;;  %v1064_v27 = vadd.f32 %v1063_v11, %v1062_v9  ;;  %v1506_v9 = vld [vmem:[%s1639_s3 + $0x10] sm:$0xff]  }
  0xef   :  { %v1465_v14 = vpop.f32.mrf.mxu0  ;;  %v1104_v42 = vadd.f32 %v1103_v12, %v1102_v10 }
  0xf0   :  { %v1467_v15 = vpop.f32.mrf.mxu1  ;;  %v534_v34 = vadd.f32 %v1064_v27, %v135_v28 }
  0xf1   :  { %v1469_v16 = vpop.f32.mrf.mxu0 }
  0xf2   :  { %v1471_v17 = vpop.f32.mrf.mxu1  ;;  %v599_v52 = vadd.f32 %v1104_v42, %v534_v34  ;;  %v1067_v27 = vadd.f32 %v1469_v16, %v1465_v14 }
  0xf3   :  { %v1068_v18 = vpop.f32.mrf.mxu0 }
  0xf4   :  { %v1108_v19 = vpop.f32.mrf.mxu1 }
  0xf5   :  { %v1069_v21 = vpop.f32.mrf.mxu0 }
  0xf6   :  { %v1109_v22 = vpop.f32.mrf.mxu1  ;;  %v1070_v37 = vadd.f32 %v1069_v21, %v1068_v18 }
  0xf7   :  { %v1475_v23 = vpop.f32.mrf.mxu0  ;;  %v1110_v62 = vadd.f32 %v1109_v22, %v1108_v19 }
  0xf8   :  { %v1477_v24 = vpop.f32.mrf.mxu1  ;;  %v542_v55 = vadd.f32 %v1070_v37, %v145_v25  ;;  %v1008_v25 = vunpack.c.l.bf16 %v1506_v9 }
  0xf9   :  { %v1479_v26 = vpop.f32.mrf.mxu0 }
  0xfa   :  { %v1481_v29 = vpop.f32.mrf.mxu1  ;;  %v607_v11 = vadd.f32 %v1110_v62, %v542_v55 }
  0xfb   :  { %v1074_v30 = vpop.f32.mrf.mxu0 }
  0xfc   :  { %v1114_v32 = vpop.f32.mrf.mxu1 }
  0xfd   :  { %v1075_v33 = vpop.f32.mrf.mxu0 }
  0xfe   :  { %v1076_v35 = vadd.f32 %v1075_v33, %v1074_v30  ;;  %v1115_v36 = vpop.f32.mrf.mxu1  ;;  %v160_v33 = vpop.permute.xlu1 %159 }
  0xff   :  { %v1077_v39 = vpop.f32.mrf.mxu0  ;;  %v1116_v45 = vadd.f32 %v1115_v36, %v1114_v32 }
 0x100   :  { %v550_v44 = vadd.f32 %v1076_v35, %v155_v38  ;;  %v1117_v46 = vpop.f32.mrf.mxu1  ;;  %v537_v38 = vadd.f32 %v1067_v27, %v140_v43  ;;  %v1061_v43 = vadd.f32 %v1461_v7, %v1457_v5 }
 0x101   :  { %v1078_v48 = vpop.f32.mrf.mxu0 }
 0x102   :  { %v1118_v51 = vpop.f32.mrf.mxu1  ;;  %v615_v54 = vadd.f32 %v1116_v45, %v550_v44  ;;  %v1079_v19 = vadd.f32 %v1078_v48, %v1077_v39  ;;  %v1107_v44 = vadd.f32 %v1471_v17, %v1467_v15  ;;  %v1073_v15 = vadd.f32 %v1479_v26, %v1475_v23 }
 0x103   :  { %v1138_v56 = vpop.f32.mrf.mxu0  ;;  %v1119_v41 = vadd.f32 %v1118_v51, %v1117_v46 }
 0x104   :  { %v664_v58 = vadd.f32 %v1138_v56, %v599_v52  ;;  %v1142_v59 = vpop.f32.mrf.mxu1  ;;  %v553_v36 = vadd.f32 %v1079_v19, %v160_v33  ;;  %v602_v51 = vadd.f32 %v1107_v44, %v537_v38  ;;  %v545_v26 = vadd.f32 %v1073_v15, %v150_v1 }
 0x105   :  { %v680_v63 = vadd.f32 %v1142_v59, %v615_v54  ;;  %v655_v0 = vpop.f32.mrf.mxu0 }
 0x106   :  { %v1501_v3 = vadd.f32 %v1004_v53, %v664_v58  ;;  %v656_v2 = vadd.f32 %v655_v0, %v591_v60  ;;  %v671_v4 = vpop.f32.mrf.mxu1  ;;  %v618_v54 = vadd.f32 %v1119_v41, %v553_v36  ;;  %v529_v0 = vadd.f32 %v1061_v43, %v1473_v20 }
 0x107   :  { %v1508_v10 = vadd.f32 %v1012_v57, %v680_v63  ;;  %v672_v22 = vadd.f32 %v671_v4, %v607_v11  ;;  %v1139_v53 = vpop.f32.mrf.mxu0  ;;  %v1013_v63 = vunpack.c.h.bf16 %v1491_v47 }
 0x108   :  { %v712_v12 = vmul.f32 0.25103718, %v1501_v3  ;;  %v1512_v13 = vand.u32 2147483647, %v1501_v3  ;;  %v1514_v18 = vadd.f32 %v1000_v61, %v656_v2  ;;  %v1143_v55 = vpop.f32.mrf.mxu1  ;;  %v667_v60 = vadd.f32 %v1139_v53, %v602_v51 }
 0x109   :  { %v1517_v21 = vand.u32 2147483647, %v1508_v10  ;;  %v716_v31 = vmul.f32 0.25103718, %v1508_v10  ;;  %v1529_v37 = vadd.f32 %v1008_v25, %v672_v22  ;;  %v1005_v61 = vunpack.c.h.bf16 %v1486_v40  ;;  %v658_v33 = vpop.f32.mrf.mxu0 }
 0x10a   :  { %v800_v28 = vmul.f32 0.33267534, %v1512_v13  ;;  %v720_v30 = vadd.f32 1.4854801, %v712_v12  ;;  %v710_v34 = vmul.f32 0.25103718, %v1514_v18  ;;  %v683_v7 = vadd.f32 %v1143_v55, %v618_v54 }
 0x10b   :  { %v804_v32 = vmul.f32 0.33267534, %v1517_v21  ;;  %v1527_v35 = vand.u32 2147483647, %v1514_v18  ;;  %v724_v16 = vadd.f32 1.4854801, %v716_v31  ;;  %v1101_v12 = vadd.f32 %v1463_v8, %v1459_v6 }
 0x10c   :  { %v808_v39 = vadd.f32 0.38976192, %v800_v28  ;;  %v728_v14 = vmul.f32 %v720_v30, %v1501_v3  ;;  %v718_v45 = vadd.f32 1.4854801, %v710_v34  ;;  %v714_v50 = vmul.f32 0.25103718, %v1529_v37 }
 0x10d   :  { %v812_v42 = vadd.f32 0.38976192, %v804_v32  ;;  %v798_v48 = vmul.f32 0.33267534, %v1527_v35  ;;  %v1537_v52 = vand.u32 2147483647, %v1529_v37  ;;  %v732_v56 = vmul.f32 %v724_v16, %v1508_v10 }
 0x10e   :  { %v816_v46 = vmul.f32 %v808_v39, %v1512_v13  ;;  %v736_v17 = vadd.f32 3.0520265, %v728_v14  ;;  %v726_v58 = vmul.f32 %v718_v45, %v1514_v18  ;;  %v722_v62 = vadd.f32 1.4854801, %v714_v50  ;;  %v674_v39 = vpop.f32.mrf.mxu1 }
 0x10f   :  { %v820_v57 = vmul.f32 %v812_v42, %v1517_v21  ;;  %v806_v59 = vadd.f32 0.38976192, %v798_v48  ;;  %v802_v5 = vmul.f32 0.33267534, %v1537_v52  ;;  %v740_v4 = vadd.f32 3.0520265, %v732_v56 }
 0x110   :  { %v824_v23 = vadd.f32 2.3816075, %v816_v46  ;;  %v744_v2 = vmul.f32 %v736_v17, %v1501_v3  ;;  %v734_v19 = vadd.f32 3.0520265, %v726_v58  ;;  %v1555_v22 = vadd.f32 %v1005_v61, %v667_v60 }
 0x111   :  { %v828_v11 = vadd.f32 2.3816075, %v820_v57  ;;  %v814_v40 = vmul.f32 %v806_v59, %v1527_v35  ;;  %v1113_v25 = vadd.f32 %v1481_v29, %v1477_v24  ;;  %v730_v47 = vmul.f32 %v722_v62, %v1529_v37 }
 0x112   :  { %v810_v20 = vadd.f32 0.38976192, %v802_v5  ;;  %v1560_v27 = vadd.f32 %v1013_v63, %v683_v7  ;;  %v832_v1 = vmul.f32 %v824_v23, %v1512_v13  ;;  %v594_v28 = vadd.f32 %v1101_v12, %v529_v0 }
 0x113   :  { %v1001_v30 = vunpack.c.h.bf16 %v1496_v49  ;;  %v1009_v6 = vunpack.c.h.bf16 %v1506_v9  ;;  %v752_v8 = vadd.f32 2.323352, %v744_v2  ;;  %v748_v31 = vmul.f32 %v740_v4, %v1508_v10 }
 0x114   :  { %v836_v32 = vmul.f32 %v828_v11, %v1517_v21  ;;  %v610_v34 = vadd.f32 %v1113_v25, %v545_v26  ;;  %v1568_v24 = vmul.f32 %v734_v19, %v1514_v18  ;;  %v822_v29 = vadd.f32 2.3816075, %v814_v40 }
 0x115   :  { %v713_v36 = vmul.f32 0.25103718, %v1555_v22  ;;  %v793_v38 = vand.u32 2147483647, %v1555_v22  ;;  %v1572_v41 = vadd.f32 3.0520265, %v730_v47  ;;  %v818_v49 = vmul.f32 %v810_v20, %v1537_v52 }
 0x116   :  { %v717_v9 = vmul.f32 0.25103718, %v1560_v27  ;;  %v797_v14 = vand.u32 2147483647, %v1560_v27  ;;  %v840_v16 = vadd.f32 1.1413246, %v832_v1  ;;  %v659_v45 = vadd.f32 %v658_v33, %v594_v28 }
 0x117   :  { %v721_v42 = vadd.f32 1.4854801, %v713_v36  ;;  %v801_v44 = vmul.f32 0.33267534, %v793_v38  ;;  %v844_v48 = vadd.f32 1.1413246, %v836_v32  ;;  %v675_v54 = vadd.f32 %v674_v39, %v610_v34 }
 0x118   :  { %v725_v50 = vadd.f32 1.4854801, %v717_v9  ;;  %v805_v53 = vmul.f32 0.33267534, %v797_v14  ;;  %v830_v43 = vmul.f32 %v822_v29, %v1527_v35  ;;  %v1579_v55 = vadd.f32 %v1001_v30, %v659_v45 }
 0x119   :  { %v729_v46 = vmul.f32 %v721_v42, %v1555_v22  ;;  %v809_v51 = vadd.f32 0.38976192, %v801_v44  ;;  %v826_v15 = vadd.f32 2.3816075, %v818_v49  ;;  %v1582_v57 = vadd.f32 %v1009_v6, %v675_v54 }
 0x11a   :  { %v733_v17 = vmul.f32 %v725_v50, %v1560_v27  ;;  %v813_v56 = vadd.f32 0.38976192, %v805_v53  ;;  %v711_v60 = vmul.f32 0.25103718, %v1579_v55  ;;  %v791_v61 = vand.u32 2147483647, %v1579_v55 }
 0x11b   :  { %v737_v58 = vadd.f32 3.0520265, %v729_v46  ;;  %v817_v59 = vmul.f32 %v809_v51, %v793_v38  ;;  %v715_v7 = vmul.f32 0.25103718, %v1582_v57  ;;  %v1588_v63 = vand.u32 2147483647, %v1582_v57 }
 0x11c   :  { %v741_v62 = vadd.f32 3.0520265, %v733_v17  ;;  %v821_v5 = vmul.f32 %v813_v56, %v797_v14  ;;  %v848_v0 = vmul.f32 %v840_v16, %v1512_v13  ;;  %v719_v26 = vadd.f32 1.4854801, %v711_v60 }
 0x11d   :  { %v825_v23 = vadd.f32 2.3816075, %v817_v59  ;;  %v799_v2 = vmul.f32 0.33267534, %v791_v61  ;;  %v852_v4 = vmul.f32 %v844_v48, %v1517_v21  ;;  %v838_v11 = vadd.f32 1.1413246, %v830_v43 }
 0x11e   :  { %v745_v12 = vmul.f32 %v737_v58, %v1555_v22  ;;  %v829_v19 = vadd.f32 2.3816075, %v821_v5  ;;  %v749_v25 = vmul.f32 %v741_v62, %v1560_v27  ;;  %v727_v47 = vmul.f32 %v719_v26, %v1579_v55 }
 0x11f   :  { %v833_v40 = vmul.f32 %v825_v23, %v793_v38  ;;  %v807_v20 = vadd.f32 0.38976192, %v799_v2  ;;  %v756_v1 = vadd.f32 2.323352, %v748_v31  ;;  %v723_v30 = vadd.f32 1.4854801, %v715_v7 }
 0x120   :  { %v837_v28 = vmul.f32 %v829_v19, %v797_v14  ;;  %v803_v13 = vmul.f32 0.33267534, %v1588_v63  ;;  %v760_v6 = vmul.f32 %v752_v8, %v1501_v3  ;;  %v856_v32 = vadd.f32 1.0, %v848_v0 }
 0x121   :  { %v834_v21 = vmul.f32 %v826_v15, %v1537_v52  ;;  %v841_v33 = vadd.f32 1.1413246, %v833_v40  ;;  %v860_v34 = vadd.f32 1.0, %v852_v4  ;;  %v735_v36 = vadd.f32 3.0520265, %v727_v47 }
 0x122   :  { %v845_v29 = vadd.f32 1.1413246, %v837_v28  ;;  %v815_v39 = vmul.f32 %v807_v20, %v791_v61  ;;  %v846_v49 = vmul.f32 %v838_v11, %v1527_v35  ;;  %v753_v9 = vadd.f32 2.323352, %v745_v12 }
 0x123   :  { %v849_v16 = vmul.f32 %v841_v33, %v793_v38  ;;  %v757_v42 = vadd.f32 2.323352, %v749_v25  ;;  %v731_v45 = vmul.f32 %v723_v30, %v1582_v57  ;;  %v811_v48 = vadd.f32 0.38976192, %v803_v13 }
 0x124   :  { %v853_v31 = vmul.f32 %v845_v29, %v797_v14  ;;  %v823_v44 = vadd.f32 2.3816075, %v815_v39  ;;  %1219 = vrcp.f32 %v856_v32  ;;  %v764_v8 = vmul.f32 %v756_v1, %v1508_v10 }
 0x125   :  { %v842_v50 = vadd.f32 1.1413246, %v834_v21  ;;  %v857_v53 = vadd.f32 1.0, %v849_v16  ;;  %1221 = vrcp.f32 %v860_v34  ;;  %v743_v43 = vmul.f32 %v735_v36, %v1579_v55 }
 0x126   :  { %v861_v54 = vadd.f32 1.0, %v853_v31  ;;  %v831_v46 = vmul.f32 %v823_v44, %v791_v61  ;;  %v854_v51 = vadd.f32 1.0, %v846_v49  ;;  %v761_v35 = vmul.f32 %v753_v9, %v1555_v22 }
 0x127   :  { %1223 = vrcp.f32 %v857_v53  ;;  %v765_v38 = vmul.f32 %v757_v42, %v1560_v27  ;;  %v739_v15 = vadd.f32 3.0520265, %v731_v45  ;;  %v819_v17 = vmul.f32 %v811_v48, %v1588_v63 }
 0x128   :  { %1225 = vrcp.f32 %v861_v54  ;;  %v839_v14 = vadd.f32 1.1413246, %v831_v46  ;;  %v750_v56 = vadd.f32 2.323352, %v1568_v24  ;;  %v746_v58 = vmul.f32 %v1572_v41, %v1529_v37 }
 0x129   :  { %v850_v59 = vmul.f32 %v842_v50, %v1537_v52  ;;  %v751_v60 = vadd.f32 2.323352, %v743_v43  ;;  %v827_v5 = vadd.f32 2.3816075, %v819_v17  ;;  %v768_v7 = vadd.f32 0.6183774, %v760_v6 }
 0x12a   :  { %v847_v62 = vmul.f32 %v839_v14, %v791_v61  ;;  %v772_v0 = vadd.f32 0.6183774, %v764_v8  ;;  %1227 = vrcp.f32 %v854_v51  ;;  %v769_v23 = vadd.f32 0.6183774, %v761_v35 }
 0x12b   :  { %v773_v26 = vadd.f32 0.6183774, %v765_v38  ;;  %v747_v4 = vmul.f32 %v739_v15, %v1582_v57  ;;  %v835_v11 = vmul.f32 %v827_v5, %v1588_v63  ;;  %v758_v24 = vmul.f32 %v750_v56, %v1514_v18 }
 0x12c   :  { %v855_v2 = vadd.f32 1.0, %v847_v62  ;;  %v858_v12 = vadd.f32 1.0, %v850_v59  ;;  %v759_v41 = vmul.f32 %v751_v60, %v1579_v55  ;;  %v776_v61 = vmul.f32 %v768_v7, %v1501_v3 }
 0x12d   :  { %v843_v52 = vadd.f32 1.1413246, %v835_v11  ;;  %v754_v19 = vadd.f32 2.323352, %v746_v58  ;;  %v777_v40 = vmul.f32 %v769_v23, %v1555_v22  ;;  %v780_v25 = vmul.f32 %v772_v0, %v1508_v10 }
 0x12e   :  { %1229 = vrcp.f32 %v855_v2  ;;  %v781_v47 = vmul.f32 %v773_v26, %v1560_v27  ;;  %v755_v20 = vadd.f32 2.323352, %v747_v4  ;;  %v766_v30 = vadd.f32 0.6183774, %v758_v24 }
 0x12f   :  { %v851_v1 = vmul.f32 %v843_v52, %v1588_v63  ;;  %1231 = vrcp.f32 %v858_v12  ;;  %v767_v13 = vadd.f32 0.6183774, %v759_v41  ;;  %v784_v21 = vadd.f32 0.02979246, %v776_v61 }
 0x130   :  { %v762_v33 = vmul.f32 %v754_v19, %v1529_v37  ;;  %v785_v3 = vadd.f32 0.02979246, %v777_v40  ;;  %v788_v29 = vadd.f32 0.02979246, %v780_v25  ;;  %v789_v22 = vadd.f32 0.02979246, %v781_v47 }
 0x131   :  { %v1220_v28 = vpop.eup %1219  ;;  %v859_v6 = vadd.f32 1.0, %v851_v1  ;;  %v763_v10 = vmul.f32 %v755_v20, %v1582_v57  ;;  %v774_v49 = vmul.f32 %v766_v30, %v1514_v18  ;;  %v775_v16 = vmul.f32 %v767_v13, %v1579_v55 }
 0x132   :  { %v1222_v32 = vpop.eup %1221  ;;  %v872_v36 = vmul.f32 %v1220_v28, %v784_v21  ;;  %v770_v44 = vadd.f32 0.6183774, %v762_v33 }
 0x133   :  { %1233 = vrcp.f32 %v859_v6  ;;  %v876_v63 = vmul.f32 %v1222_v32, %v788_v29  ;;  %v771_v48 = vadd.f32 0.6183774, %v763_v10  ;;  %v782_v8 = vadd.f32 0.02979246, %v774_v49 }
 0x134   :  { %v1224_v34 = vpop.eup %1223  ;;  %v783_v50 = vadd.f32 0.02979246, %v775_v16  ;;  %v778_v54 = vmul.f32 %v770_v44, %v1529_v37 }
 0x135   :  { %v1226_v27 = vpop.eup %1225  ;;  %v873_v39 = vmul.f32 %v1224_v34, %v785_v3  ;;  %v779_v43 = vmul.f32 %v771_v48, %v1582_v57 }
 0x136   :  { %v877_v9 = vmul.f32 %v1226_v27, %v789_v22  ;;  %v786_v35 = vadd.f32 0.02979246, %v778_v54 }
 0x137   :  { %v1022_v42 = vpack.c.bf16 %v873_v39, %v872_v36  ;;  %v1228_v31 = vpop.eup %1227  ;;  %v787_v38 = vadd.f32 0.02979246, %v779_v43 }
 0x138   :  { %v1032_v45 = vpack.c.bf16 %v877_v9, %v876_v63  ;;  %v870_v18 = vmul.f32 %v1228_v31, %v782_v8 }
 0x139   :  { %1037 = vst [vmem:[%s1640_s4 + $0x8] sm:$0xff] %v1022_v42  }
 0x13a   :  { %1039 = vst [vmem:[%s1640_s4 + $0x18] sm:$0xff] %v1032_v45  }
 0x13b   :  { %v1230_v53 = vpop.eup %1229 }
 0x13c   :  { %v871_v55 = vmul.f32 %v1230_v53, %v783_v50  ;;  %v1232_v51 = vpop.eup %1231 }
 0x13d   :  { %v874_v15 = vmul.f32 %v1232_v51, %v786_v35 }
 0x13e   :  { %v1017_v46 = vpack.c.bf16 %v871_v55, %v870_v18 }
 0x140   :  { %1018 = vst [vmem:[%s1640_s4] sm:$0xff] %v1017_v46   ;;  %v1234_v14 = vpop.eup %1233 }
 0x141   :  { %v875_v17 = vmul.f32 %v1234_v14, %v787_v38 }
 0x143   :  { %v1027_v56 = vpack.c.bf16 %v875_v17, %v874_v15 }
 0x145   :  { %1038 = vst [vmem:[%s1640_s4 + $0x10] sm:$0xff] %v1027_v56  }

</bundles_post_ra>
